<compile_context>
chip_gen: v6e
topology: v6e:2x2x1
jax: 0.10.0
libtpu: 0.0.40
codegen_flags: <defaults>
</compile_context>

<pallas_src>
import math
from functools import partial

import jax
import jax.numpy as jnp
from jax import lax
from jax.experimental import pallas as pl
from jax.experimental.pallas import tpu as pltpu

# ----------------------------- configuration --------------------------------
D_MODEL   = 32
N_HEADS   = 4
HEAD_DIM  = D_MODEL // N_HEADS
D_FF      = 4 * D_MODEL
N_LAYERS  = 4
GROUP_SZ  = 2
N_REPEATS = N_LAYERS // GROUP_SZ
LN_EPS    = 1e-5
_VEC_ROWS = 8      # padded sublane rows of the stacked per-layer vector buffer


# ------------------------------ fused kernel ---------------------------------
def _fused_kernel(x_ref, mask_ref,
                  wqkv_ref, wo_ref, w1_ref, w2_ref, vecd_ref, fb1_ref,
                  o_ref, *, n_repeats, group_size, n_heads):
    """All n_repeats * group_size weight-tied pre-LN layers for a (Bt, S, D) block.

    x_ref    : (Bt, S, D)   f32   residual stream (Bt batch rows folded per step)
    mask_ref : (S, S)       f32   additive attention mask (shared across batch/head)
    wqkv_ref : (G, D, 3D)   bf16  fused Q|K|V projection
    wo_ref   : (G, D, D)    bf16  attention output projection
    w1_ref   : (G, D, Dff)  bf16  FFN in
    w2_ref   : (G, Dff, D)  bf16  FFN out
    vecd_ref : (G, 8, D)    f32   rows: [ln1_g, ln1_b, ln2_g, ln2_b, ffn_b2, pad]
    fb1_ref  : (G, 1, Dff)  f32   FFN hidden bias
    o_ref    : (Bt, S, D)
    """
    Bt, S, D = x_ref.shape
    head_dim = D // n_heads
    HB = n_heads * Bt                      # combined (head, batch) attention batch
    M = Bt * S                             # folded row count for all dense matmuls
    scale = 1.0 / math.sqrt(head_dim)

    x0 = x_ref[...].astype(jnp.float32).reshape(M, D)          # (M, D)

    # Hoisted once — JAX does not CSE broadcast_in_dim across the unrolled loop.
    mask_hb = jnp.broadcast_to(
        mask_ref[...].astype(jnp.float32)[None], (HB, S, S))

    def split_heads(qkv3, proj):
        """(Bt, S, 3D) -> (H*Bt, S, hd); combined index = h*Bt + b.

        Only lane slices + a leading-axis concat (layout-safe; no general
        transpose, which Mosaic may not lower for sub-tile shapes)."""
        base = proj * D
        return jnp.concatenate(
            [qkv3[:, :, base + h * head_dim: base + (h + 1) * head_dim]
             for h in range(n_heads)], axis=0)

    def one_layer(x, li):                  # li is a static (unrolled) index
        wqkv = wqkv_ref[li]                # (D, 3D)  bf16
        wo   = wo_ref[li]                  # (D, D)   bf16
        w1   = w1_ref[li]                  # (D, Dff) bf16
        w2   = w2_ref[li]                  # (Dff, D) bf16
        vd   = vecd_ref[li]                # (8, D)   f32
        fb1  = fb1_ref[li]                 # (1, Dff) f32
        g1, b1 = vd[0:1], vd[1:2]
        g2, b2 = vd[2:3], vd[3:4]
        fb2    = vd[4:5]

        # ---- pre-LN 1 (f32) --------------------------------------------------
        mu  = jnp.mean(x, axis=-1, keepdims=True)
        xc  = x - mu
        var = jnp.mean(xc * xc, axis=-1, keepdims=True)
        h   = xc * lax.rsqrt(var + LN_EPS) * g1 + b1            # (M, D)

        # ---- fused QKV projection (bf16 operands, f32 accumulation) ----------
        qkv = jnp.dot(h.astype(jnp.bfloat16), wqkv,
                      preferred_element_type=jnp.float32)        # (M, 3D)
        qkv3 = qkv.reshape(Bt, S, 3 * D)                         # tile-aligned split
        qh = split_heads(qkv3, 0).astype(jnp.bfloat16)           # (HB, S, hd)
        kh = split_heads(qkv3, 1).astype(jnp.bfloat16)
        vh = split_heads(qkv3, 2).astype(jnp.bfloat16)

        # ---- attention, batched over (head, batch); bf16 MXU, f32 softmax ----
        s = jnp.einsum('bqd,bkd->bqk', qh, kh,
                       preferred_element_type=jnp.float32)       # (HB, S, S) f32
        s = s * scale + mask_hb                                  # mask add in f32
        s = s - jnp.max(s, axis=-1, keepdims=True)
        p = jnp.exp(s)
        p = p * pl.reciprocal(jnp.sum(p, axis=-1, keepdims=True), approx=True)
        ah = jnp.einsum('bqk,bkd->bqd', p.astype(jnp.bfloat16), vh,
                        preferred_element_type=jnp.float32)      # (HB, S, hd)

        # ---- head merge + single K=D output projection ------------------------
        merged = jnp.concatenate(
            [ah[hh * Bt:(hh + 1) * Bt] for hh in range(n_heads)], axis=-1)  # (Bt,S,D)
        attn = jnp.dot(merged.reshape(M, D).astype(jnp.bfloat16), wo,
                       preferred_element_type=jnp.float32)       # (M, D)
        x = x + attn                                             # residual, strength=1

        # ---- pre-LN 2 + FFN ---------------------------------------------------
        mu2  = jnp.mean(x, axis=-1, keepdims=True)
        xc2  = x - mu2
        var2 = jnp.mean(xc2 * xc2, axis=-1, keepdims=True)
        h2   = xc2 * lax.rsqrt(var2 + LN_EPS) * g2 + b2

        f = jnp.dot(h2.astype(jnp.bfloat16), w1,
                    preferred_element_type=jnp.float32) + fb1
        f = jnp.maximum(f, 0.0)                                  # ReLU
        x = x + jnp.dot(f.astype(jnp.bfloat16), w2,
                        preferred_element_type=jnp.float32) + fb2
        return x

    def repeat_body(_, x):
        for li in range(group_size):       # static weight indices (weight-tied group)
            x = one_layer(x, li)
        return x

    # n_repeats=2 here: full unroll is right.  For large n_repeats prefer a rolled
    # outer loop (unroll=False) with the inner group still unrolled.
    x = lax.fori_loop(0, n_repeats, repeat_body, x0, unroll=True)
    o_ref[...] = x.reshape(Bt, S, D).astype(o_ref.dtype)


# ------------------------- parameter init & packing --------------------------
def init_universal_transformer_params(key, d_model=D_MODEL, d_ff=D_FF,
                                      group_size=GROUP_SZ, n_repeats=N_REPEATS,
                                      init_scale=None):
    """Deterministic init; scale = sqrt(2 / (n_repeats * group_size))."""
    scale = math.sqrt(2.0 / (n_repeats * group_size)) if init_scale is None else init_scale
    layers = []
    for li in range(group_size):
        k = jax.random.fold_in(key, li)
        k_wq, k_wk, k_wv, k_wo, k_w1, k_w2 = jax.random.split(k, 6)

        def w(kk, fan_in, shape):
            return (scale / math.sqrt(fan_in)) * jax.random.normal(kk, shape, jnp.float32)

        layers.append(dict(
            wq=w(k_wq, d_model, (d_model, d_model)),
            wk=w(k_wk, d_model, (d_model, d_model)),
            wv=w(k_wv, d_model, (d_model, d_model)),
            wo=w(k_wo, d_model, (d_model, d_model)),
            g1=jnp.ones((d_model,), jnp.float32),
            b1=jnp.zeros((d_model,), jnp.float32),
            g2=jnp.ones((d_model,), jnp.float32),
            b2=jnp.zeros((d_model,), jnp.float32),
            w1=w(k_w1, d_model, (d_model, d_ff)),
            fb1=jnp.zeros((d_ff,), jnp.float32),
            w2=w(k_w2, d_ff, (d_ff, d_model)),
            fb2=jnp.zeros((d_model,), jnp.float32),
        ))
    return layers


def pack_params(layers):
    """Stack the group_size layers into kernel-ready buffers (bf16 matmul weights)."""
    f32, bf16 = jnp.float32, jnp.bfloat16
    d = layers[0]["g1"].shape[-1]
    pad = jnp.zeros((_VEC_ROWS - 5, d), f32)
    return dict(
        wqkv=jnp.stack([jnp.concatenate([l["wq"], l["wk"], l["wv"]], axis=1)
                        for l in layers]).astype(bf16),                  # (G, D, 3D)
        wo=jnp.stack([l["wo"] for l in layers]).astype(bf16),            # (G, D, D)
        w1=jnp.stack([l["w1"] for l in layers]).astype(bf16),            # (G, D, Dff)
        w2=jnp.stack([l["w2"] for l in layers]).astype(bf16),            # (G, Dff, D)
        vecd=jnp.stack([jnp.concatenate(
            [l["g1"][None], l["b1"][None], l["g2"][None], l["b2"][None],
             l["fb2"][None], pad], axis=0)
            for l in layers]).astype(f32),                               # (G, 8, D)
        fb1=jnp.stack([l["fb1"][None] for l in layers]).astype(f32),     # (G, 1, Dff)
    )


# ------------------------------ grid sizing -----------------------------------
def _num_grid_steps(batch):
    """Single-TC chips (v5e/v6e): fold the whole batch into one grid step (the
    grid is a serial loop).  Multi-TC chips (v7x / megacore): keep 2 parallel
    grid steps so both TensorCores get work."""
    try:
        kind = jax.devices()[0].device_kind.lower()
    except Exception:
        kind = ""
    single_tc = any(t in kind for t in
                    ("v5e", "v5 lite", "v5lite", "v6e", "v6 lite", "v6lite"))
    if (not single_tc) and batch >= 2 and batch % 2 == 0:
        return 2
    return 1


# ------------------------------ forward pass ---------------------------------
@partial(jax.jit, static_argnames=("n_repeats", "group_size", "n_heads"))
def universal_transformer_forward(x, packed, mask=None,
                                  n_repeats=N_REPEATS, group_size=GROUP_SZ,
                                  n_heads=N_HEADS):
    """Mirrors UniversalTransformer.forward (kv_cache=None path):
       for r in range(n_repeats): for layer in layers: x = layer(x, mask)
       — the whole loop fused into one pallas_call."""
    B, S, D = x.shape
    d_ff = packed["w1"].shape[-1]
    if mask is None:
        mask = jnp.zeros((S, S), jnp.float32)
    mask = mask.astype(jnp.float32)

    n_steps = _num_grid_steps(B)
    bt = B // n_steps

    kernel = partial(_fused_kernel, n_repeats=n_repeats,
                     group_size=group_size, n_heads=n_heads)

    def full(shape):   # grid-invariant (VMEM-resident) parameter buffers
        return pl.BlockSpec(shape, lambda b: (0,) * len(shape))

    return pl.pallas_call(
        kernel,
        out_shape=jax.ShapeDtypeStruct((B, S, D), x.dtype),
        grid_spec=pltpu.PrefetchScalarGridSpec(
            num_scalar_prefetch=0,
            grid=(n_steps,),
            in_specs=[
                pl.BlockSpec((bt, S, D), lambda b: (b, 0, 0)),    # x (batch-folded)
                full((S, S)),                                     # mask (shared)
                full((group_size, D, 3 * D)),                     # fused QKV
                full((group_size, D, D)),                         # wo
                full((group_size, D, d_ff)),                      # w1
                full((group_size, d_ff, D)),                      # w2
                full((group_size, _VEC_ROWS, D)),                 # LN gains/biases + fb2
                full((group_size, 1, d_ff)),                      # fb1
            ],
            out_specs=pl.BlockSpec((bt, S, D), lambda b: (b, 0, 0)),
        ),
        compiler_params=pltpu.CompilerParams(
            dimension_semantics=("parallel",)),
    )(x, mask, packed["wqkv"], packed["wo"], packed["w1"], packed["w2"],
      packed["vecd"], packed["fb1"])


# --------------------------- pure-JAX reference --------------------------------
def _reference_forward(x, layers, mask, n_repeats):
    """f32 reference (exact softmax) used only for a loose correctness check —
    bf16 matmul weights in the kernel give ~1e-2 relative deviations."""
    B, S, D = x.shape
    H, hd = N_HEADS, HEAD_DIM

    def ln(y, g, b):
        mu = y.mean(-1, keepdims=True)
        var = ((y - mu) ** 2).mean(-1, keepdims=True)
        return (y - mu) / jnp.sqrt(var + LN_EPS) * g + b

    for _ in range(n_repeats):
        for l in layers:
            h = ln(x, l["g1"], l["b1"])
            q = (h @ l["wq"]).reshape(B, S, H, hd).transpose(0, 2, 1, 3)
            k = (h @ l["wk"]).reshape(B, S, H, hd).transpose(0, 2, 1, 3)
            v = (h @ l["wv"]).reshape(B, S, H, hd).transpose(0, 2, 1, 3)
            s = (q @ k.transpose(0, 1, 3, 2)) / math.sqrt(hd) + mask[None, None]
            p = jax.nn.softmax(s, axis=-1)
            a = (p @ v).transpose(0, 2, 1, 3).reshape(B, S, D)
            x = x + a @ l["wo"]
            h2 = ln(x, l["g2"], l["b2"])
            f = jnp.maximum(h2 @ l["w1"] + l["fb1"], 0.0)
            x = x + f @ l["w2"] + l["fb2"]
    return x


# ---------------------------------- main --------------------------------------
if __name__ == "__main__":
    key = jax.random.PRNGKey(0)
    k_x, k_p = jax.random.split(key)

    B, S = 2, 8
    x = jax.random.normal(k_x, (B, S, D_MODEL), jnp.float32)

    layers = init_universal_transformer_params(k_p)
    packed = pack_params(layers)

    # causal additive mask, shared across batch / heads
    causal = jnp.where(
        jnp.tril(jnp.ones((S, S), jnp.bool_)), 0.0, -1e30).astype(jnp.float32)

    out = universal_transformer_forward(x, packed, mask=causal)
    out = jax.block_until_ready(out)

    assert out.shape == (B, S, D_MODEL)
    assert bool(jnp.all(jnp.isfinite(out)))

    # Loose check vs f32 reference (kernel uses bf16 matmul weights + approx recip).
    ref = _reference_forward(x, layers, causal, N_REPEATS)
    max_err = float(jnp.max(jnp.abs(out - ref)))
    assert max_err < 0.25, f"mismatch vs reference: max_err={max_err}"

    print("KERNEL_OK")
</pallas_src>

<mosaic_0001>
module attributes {stable_mosaic.version = 11 : i64} {
  func.func @_fused_kernel(%arg0: i32, %arg1: memref<1x8x32xf32, #tpu.memory_space<vmem>>, %arg2: memref<8x8xf32, #tpu.memory_space<vmem>>, %arg3: memref<2x32x96xbf16, #tpu.memory_space<vmem>>, %arg4: memref<2x32x32xbf16, #tpu.memory_space<vmem>>, %arg5: memref<2x32x128xbf16, #tpu.memory_space<vmem>>, %arg6: memref<2x128x32xbf16, #tpu.memory_space<vmem>>, %arg7: memref<2x8x32xf32, #tpu.memory_space<vmem>>, %arg8: memref<2x1x128xf32, #tpu.memory_space<vmem>>, %arg9: memref<1x8x32xf32, #tpu.memory_space<vmem>>) attributes {dimension_semantics = [#tpu.dimension_semantics<parallel>], iteration_bounds = array<i64: 2>, scalar_prefetch = 0 : i64, scratch_operands = 0 : i64, tpu.core_type = #tpu.core_type<tc>, window_params = [{transform_indices = @transform_0, window_bounds = array<i64: 1, 8, 32>}, {pipeline_mode = #tpu.pipeline_mode<synchronous>, transform_indices = @transform_1, window_bounds = array<i64: 8, 8>}, {pipeline_mode = #tpu.pipeline_mode<synchronous>, transform_indices = @transform_2, window_bounds = array<i64: 2, 32, 96>}, {pipeline_mode = #tpu.pipeline_mode<synchronous>, transform_indices = @transform_3, window_bounds = array<i64: 2, 32, 32>}, {pipeline_mode = #tpu.pipeline_mode<synchronous>, transform_indices = @transform_4, window_bounds = array<i64: 2, 32, 128>}, {pipeline_mode = #tpu.pipeline_mode<synchronous>, transform_indices = @transform_5, window_bounds = array<i64: 2, 128, 32>}, {pipeline_mode = #tpu.pipeline_mode<synchronous>, transform_indices = @transform_6, window_bounds = array<i64: 2, 8, 32>}, {pipeline_mode = #tpu.pipeline_mode<synchronous>, transform_indices = @transform_7, window_bounds = array<i64: 2, 1, 128>}, {transform_indices = @transform_8, window_bounds = array<i64: 1, 8, 32>}]} {
    %c0 = arith.constant 0 : index
    %c0_0 = arith.constant 0 : index
    %c0_1 = arith.constant 0 : index
    %0 = vector.load %arg1[%c0, %c0_0, %c0_1] : memref<1x8x32xf32, #tpu.memory_space<vmem>>, vector<1x8x32xf32>
    %1 = vector.shape_cast %0 : vector<1x8x32xf32> to vector<8x32xf32>
    %c0_2 = arith.constant 0 : index
    %c0_3 = arith.constant 0 : index
    %2 = vector.load %arg2[%c0_2, %c0_3] : memref<8x8xf32, #tpu.memory_space<vmem>>, vector<8x8xf32>
    %3 = vector.shape_cast %2 : vector<8x8xf32> to vector<1x8x8xf32>
    %4 = vector.shape_cast %3 : vector<1x8x8xf32> to vector<1x8x8xf32>
    %5 = vector.broadcast %4 : vector<1x8x8xf32> to vector<4x8x8xf32>
    %c0_i32 = arith.constant 0 : i32
    %c0_4 = arith.constant 0 : index
    %c0_5 = arith.constant 0 : index
    %c0_6 = arith.constant 0 : index
    %6 = vector.load %arg3[%c0_4, %c0_5, %c0_6] : memref<2x32x96xbf16, #tpu.memory_space<vmem>>, vector<1x32x96xbf16>
    %7 = vector.shape_cast %6 : vector<1x32x96xbf16> to vector<32x96xbf16>
    %c0_7 = arith.constant 0 : index
    %c0_8 = arith.constant 0 : index
    %c0_9 = arith.constant 0 : index
    %8 = vector.load %arg4[%c0_7, %c0_8, %c0_9] : memref<2x32x32xbf16, #tpu.memory_space<vmem>>, vector<1x32x32xbf16>
    %9 = vector.shape_cast %8 : vector<1x32x32xbf16> to vector<32x32xbf16>
    %c0_10 = arith.constant 0 : index
    %c0_11 = arith.constant 0 : index
    %c0_12 = arith.constant 0 : index
    %10 = vector.load %arg5[%c0_10, %c0_11, %c0_12] : memref<2x32x128xbf16, #tpu.memory_space<vmem>>, vector<1x32x128xbf16>
    %11 = vector.shape_cast %10 : vector<1x32x128xbf16> to vector<32x128xbf16>
    %c0_13 = arith.constant 0 : index
    %c0_14 = arith.constant 0 : index
    %c0_15 = arith.constant 0 : index
    %12 = vector.load %arg6[%c0_13, %c0_14, %c0_15] : memref<2x128x32xbf16, #tpu.memory_space<vmem>>, vector<1x128x32xbf16>
    %13 = vector.shape_cast %12 : vector<1x128x32xbf16> to vector<128x32xbf16>
    %c0_16 = arith.constant 0 : index
    %c0_17 = arith.constant 0 : index
    %c0_18 = arith.constant 0 : index
    %14 = vector.load %arg7[%c0_16, %c0_17, %c0_18] : memref<2x8x32xf32, #tpu.memory_space<vmem>>, vector<1x8x32xf32>
    %15 = vector.shape_cast %14 : vector<1x8x32xf32> to vector<8x32xf32>
    %c0_19 = arith.constant 0 : index
    %c0_20 = arith.constant 0 : index
    %c0_21 = arith.constant 0 : index
    %16 = vector.load %arg8[%c0_19, %c0_20, %c0_21] : memref<2x1x128xf32, #tpu.memory_space<vmem>>, vector<1x1x128xf32>
    %17 = vector.shape_cast %16 : vector<1x1x128xf32> to vector<1x128xf32>
    %18 = vector.extract_strided_slice %15 {offsets = [0, 0], sizes = [1, 32], strides = [1, 1]} : vector<8x32xf32> to vector<1x32xf32>
    %19 = vector.extract_strided_slice %15 {offsets = [1, 0], sizes = [1, 32], strides = [1, 1]} : vector<8x32xf32> to vector<1x32xf32>
    %20 = vector.extract_strided_slice %15 {offsets = [2, 0], sizes = [1, 32], strides = [1, 1]} : vector<8x32xf32> to vector<1x32xf32>
    %21 = vector.extract_strided_slice %15 {offsets = [3, 0], sizes = [1, 32], strides = [1, 1]} : vector<8x32xf32> to vector<1x32xf32>
    %22 = vector.extract_strided_slice %15 {offsets = [4, 0], sizes = [1, 32], strides = [1, 1]} : vector<8x32xf32> to vector<1x32xf32>
    %cst = arith.constant dense<0.000000e+00> : vector<8xf32>
    %23 = vector.multi_reduction <add>, %1, %cst [1] : vector<8x32xf32> to vector<8xf32>
    %24 = vector.shape_cast %23 : vector<8xf32> to vector<8x1xf32>
    %cst_22 = arith.constant 3.200000e+01 : f32
    %25 = vector.broadcast %cst_22 : f32 to vector<8x1xf32>
    %26 = arith.divf %24, %25 : vector<8x1xf32>
    %27 = vector.broadcast %26 : vector<8x1xf32> to vector<8x32xf32>
    %28 = arith.subf %1, %27 : vector<8x32xf32>
    %29 = arith.mulf %28, %28 : vector<8x32xf32>
    %cst_23 = arith.constant dense<0.000000e+00> : vector<8xf32>
    %30 = vector.multi_reduction <add>, %29, %cst_23 [1] : vector<8x32xf32> to vector<8xf32>
    %31 = vector.shape_cast %30 : vector<8xf32> to vector<8x1xf32>
    %cst_24 = arith.constant 3.200000e+01 : f32
    %32 = vector.broadcast %cst_24 : f32 to vector<8x1xf32>
    %33 = arith.divf %31, %32 : vector<8x1xf32>
    %cst_25 = arith.constant 9.99999974E-6 : f32
    %34 = vector.broadcast %cst_25 : f32 to vector<8x1xf32>
    %35 = arith.addf %33, %34 : vector<8x1xf32>
    %36 = math.rsqrt %35 : vector<8x1xf32>
    %37 = vector.broadcast %36 : vector<8x1xf32> to vector<8x32xf32>
    %38 = arith.mulf %28, %37 : vector<8x32xf32>
    %39 = vector.broadcast %18 : vector<1x32xf32> to vector<8x32xf32>
    %40 = arith.mulf %38, %39 : vector<8x32xf32>
    %41 = vector.broadcast %19 : vector<1x32xf32> to vector<8x32xf32>
    %42 = arith.addf %40, %41 : vector<8x32xf32>
    %43 = arith.truncf %42 : vector<8x32xf32> to vector<8x32xbf16>
    %cst_26 = arith.constant dense<0.000000e+00> : vector<8x96xf32>
    %44 = tpu.matmul %43, %7, %cst_26 {dimension_numbers = #tpu.dot_dimension_numbers<[1], [0], [0], [1], [0, 0, 1, 1], [], []>} : vector<8x32xbf16>, vector<32x96xbf16>, vector<8x96xf32> -> vector<8x96xf32>
    %45 = vector.shape_cast %44 : vector<8x96xf32> to vector<1x8x96xf32>
    %46 = vector.extract_strided_slice %45 {offsets = [0, 0, 0], sizes = [1, 8, 8], strides = [1, 1, 1]} : vector<1x8x96xf32> to vector<1x8x8xf32>
    %47 = vector.extract_strided_slice %45 {offsets = [0, 0, 8], sizes = [1, 8, 8], strides = [1, 1, 1]} : vector<1x8x96xf32> to vector<1x8x8xf32>
    %48 = vector.extract_strided_slice %45 {offsets = [0, 0, 16], sizes = [1, 8, 8], strides = [1, 1, 1]} : vector<1x8x96xf32> to vector<1x8x8xf32>
    %49 = vector.extract_strided_slice %45 {offsets = [0, 0, 24], sizes = [1, 8, 8], strides = [1, 1, 1]} : vector<1x8x96xf32> to vector<1x8x8xf32>
    %50 = tpu.concatenate %46, %47, %48, %49 in 0 : vector<1x8x8xf32>, vector<1x8x8xf32>, vector<1x8x8xf32>, vector<1x8x8xf32> -> vector<4x8x8xf32>
    %51 = arith.truncf %50 : vector<4x8x8xf32> to vector<4x8x8xbf16>
    %52 = vector.extract_strided_slice %45 {offsets = [0, 0, 32], sizes = [1, 8, 8], strides = [1, 1, 1]} : vector<1x8x96xf32> to vector<1x8x8xf32>
    %53 = vector.extract_strided_slice %45 {offsets = [0, 0, 40], sizes = [1, 8, 8], strides = [1, 1, 1]} : vector<1x8x96xf32> to vector<1x8x8xf32>
    %54 = vector.extract_strided_slice %45 {offsets = [0, 0, 48], sizes = [1, 8, 8], strides = [1, 1, 1]} : vector<1x8x96xf32> to vector<1x8x8xf32>
    %55 = vector.extract_strided_slice %45 {offsets = [0, 0, 56], sizes = [1, 8, 8], strides = [1, 1, 1]} : vector<1x8x96xf32> to vector<1x8x8xf32>
    %56 = tpu.concatenate %52, %53, %54, %55 in 0 : vector<1x8x8xf32>, vector<1x8x8xf32>, vector<1x8x8xf32>, vector<1x8x8xf32> -> vector<4x8x8xf32>
    %57 = arith.truncf %56 : vector<4x8x8xf32> to vector<4x8x8xbf16>
    %58 = vector.extract_strided_slice %45 {offsets = [0, 0, 64], sizes = [1, 8, 8], strides = [1, 1, 1]} : vector<1x8x96xf32> to vector<1x8x8xf32>
    %59 = vector.extract_strided_slice %45 {offsets = [0, 0, 72], sizes = [1, 8, 8], strides = [1, 1, 1]} : vector<1x8x96xf32> to vector<1x8x8xf32>
    %60 = vector.extract_strided_slice %45 {offsets = [0, 0, 80], sizes = [1, 8, 8], strides = [1, 1, 1]} : vector<1x8x96xf32> to vector<1x8x8xf32>
    %61 = vector.extract_strided_slice %45 {offsets = [0, 0, 88], sizes = [1, 8, 8], strides = [1, 1, 1]} : vector<1x8x96xf32> to vector<1x8x8xf32>
    %62 = tpu.concatenate %58, %59, %60, %61 in 0 : vector<1x8x8xf32>, vector<1x8x8xf32>, vector<1x8x8xf32>, vector<1x8x8xf32> -> vector<4x8x8xf32>
    %63 = arith.truncf %62 : vector<4x8x8xf32> to vector<4x8x8xbf16>
    "tpu.trace_start"() <{level = 10 : i32, message = "bqd,bkd->bqk"}> : () -> ()
    %cst_27 = arith.constant dense<0.000000e+00> : vector<4x8x8xf32>
    %64 = tpu.matmul %51, %57, %cst_27 {dimension_numbers = #tpu.dot_dimension_numbers<[2], [2], [1], [1], [0, 0, 0, 1, 1, 1], [0], [0]>} : vector<4x8x8xbf16>, vector<4x8x8xbf16>, vector<4x8x8xf32> -> vector<4x8x8xf32>
    "tpu.trace_stop"() : () -> ()
    %cst_28 = arith.constant 0.353553385 : f32
    %65 = vector.broadcast %cst_28 : f32 to vector<4x8x8xf32>
    %66 = arith.mulf %64, %65 : vector<4x8x8xf32>
    %67 = arith.addf %66, %5 : vector<4x8x8xf32>
    %cst_29 = arith.constant dense<0xFF800000> : vector<4x8xf32>
    %68 = vector.multi_reduction <maximumf>, %67, %cst_29 [2] : vector<4x8x8xf32> to vector<4x8xf32>
    %69 = vector.shape_cast %68 : vector<4x8xf32> to vector<4x8x1xf32>
    %70 = vector.broadcast %69 : vector<4x8x1xf32> to vector<4x8x8xf32>
    %71 = arith.subf %67, %70 : vector<4x8x8xf32>
    %72 = math.exp %71 : vector<4x8x8xf32>
    %cst_30 = arith.constant dense<0.000000e+00> : vector<4x8xf32>
    %73 = vector.multi_reduction <add>, %72, %cst_30 [2] : vector<4x8x8xf32> to vector<4x8xf32>
    %74 = vector.shape_cast %73 : vector<4x8xf32> to vector<4x8x1xf32>
    %75 = tpu.reciprocal %74 {approx = true} : vector<4x8x1xf32> -> vector<4x8x1xf32>
    %76 = vector.broadcast %75 : vector<4x8x1xf32> to vector<4x8x8xf32>
    %77 = arith.mulf %72, %76 : vector<4x8x8xf32>
    %78 = arith.truncf %77 : vector<4x8x8xf32> to vector<4x8x8xbf16>
    "tpu.trace_start"() <{level = 10 : i32, message = "bqk,bkd->bqd"}> : () -> ()
    %cst_31 = arith.constant dense<0.000000e+00> : vector<4x8x8xf32>
    %79 = tpu.matmul %78, %63, %cst_31 {dimension_numbers = #tpu.dot_dimension_numbers<[2], [1], [1], [2], [0, 0, 0, 1, 1, 2], [0], [0]>} : vector<4x8x8xbf16>, vector<4x8x8xbf16>, vector<4x8x8xf32> -> vector<4x8x8xf32>
    "tpu.trace_stop"() : () -> ()
    %80 = vector.extract_strided_slice %79 {offsets = [0, 0, 0], sizes = [1, 8, 8], strides = [1, 1, 1]} : vector<4x8x8xf32> to vector<1x8x8xf32>
    %81 = vector.extract_strided_slice %79 {offsets = [1, 0, 0], sizes = [1, 8, 8], strides = [1, 1, 1]} : vector<4x8x8xf32> to vector<1x8x8xf32>
    %82 = vector.extract_strided_slice %79 {offsets = [2, 0, 0], sizes = [1, 8, 8], strides = [1, 1, 1]} : vector<4x8x8xf32> to vector<1x8x8xf32>
    %83 = vector.extract_strided_slice %79 {offsets = [3, 0, 0], sizes = [1, 8, 8], strides = [1, 1, 1]} : vector<4x8x8xf32> to vector<1x8x8xf32>
    %84 = tpu.concatenate %80, %81, %82, %83 in 2 : vector<1x8x8xf32>, vector<1x8x8xf32>, vector<1x8x8xf32>, vector<1x8x8xf32> -> vector<1x8x32xf32>
    %85 = vector.shape_cast %84 : vector<1x8x32xf32> to vector<8x32xf32>
    %86 = arith.truncf %85 : vector<8x32xf32> to vector<8x32xbf16>
    %cst_32 = arith.constant dense<0.000000e+00> : vector<8x32xf32>
    %87 = tpu.matmul %86, %9, %cst_32 {dimension_numbers = #tpu.dot_dimension_numbers<[1], [0], [0], [1], [0, 0, 1, 1], [], []>} : vector<8x32xbf16>, vector<32x32xbf16>, vector<8x32xf32> -> vector<8x32xf32>
    %88 = arith.addf %1, %87 : vector<8x32xf32>
    %cst_33 = arith.constant dense<0.000000e+00> : vector<8xf32>
    %89 = vector.multi_reduction <add>, %88, %cst_33 [1] : vector<8x32xf32> to vector<8xf32>
    %90 = vector.shape_cast %89 : vector<8xf32> to vector<8x1xf32>
    %cst_34 = arith.constant 3.200000e+01 : f32
    %91 = vector.broadcast %cst_34 : f32 to vector<8x1xf32>
    %92 = arith.divf %90, %91 : vector<8x1xf32>
    %93 = vector.broadcast %92 : vector<8x1xf32> to vector<8x32xf32>
    %94 = arith.subf %88, %93 : vector<8x32xf32>
    %95 = arith.mulf %94, %94 : vector<8x32xf32>
    %cst_35 = arith.constant dense<0.000000e+00> : vector<8xf32>
    %96 = vector.multi_reduction <add>, %95, %cst_35 [1] : vector<8x32xf32> to vector<8xf32>
    %97 = vector.shape_cast %96 : vector<8xf32> to vector<8x1xf32>
    %cst_36 = arith.constant 3.200000e+01 : f32
    %98 = vector.broadcast %cst_36 : f32 to vector<8x1xf32>
    %99 = arith.divf %97, %98 : vector<8x1xf32>
    %cst_37 = arith.constant 9.99999974E-6 : f32
    %100 = vector.broadcast %cst_37 : f32 to vector<8x1xf32>
    %101 = arith.addf %99, %100 : vector<8x1xf32>
    %102 = math.rsqrt %101 : vector<8x1xf32>
    %103 = vector.broadcast %102 : vector<8x1xf32> to vector<8x32xf32>
    %104 = arith.mulf %94, %103 : vector<8x32xf32>
    %105 = vector.broadcast %20 : vector<1x32xf32> to vector<8x32xf32>
    %106 = arith.mulf %104, %105 : vector<8x32xf32>
    %107 = vector.broadcast %21 : vector<1x32xf32> to vector<8x32xf32>
    %108 = arith.addf %106, %107 : vector<8x32xf32>
    %109 = arith.truncf %108 : vector<8x32xf32> to vector<8x32xbf16>
    %cst_38 = arith.constant dense<0.000000e+00> : vector<8x128xf32>
    %110 = tpu.matmul %109, %11, %cst_38 {dimension_numbers = #tpu.dot_dimension_numbers<[1], [0], [0], [1], [0, 0, 1, 1], [], []>} : vector<8x32xbf16>, vector<32x128xbf16>, vector<8x128xf32> -> vector<8x128xf32>
    %111 = vector.broadcast %17 : vector<1x128xf32> to vector<8x128xf32>
    %112 = arith.addf %110, %111 : vector<8x128xf32>
    %cst_39 = arith.constant 0.000000e+00 : f32
    %113 = vector.broadcast %cst_39 : f32 to vector<8x128xf32>
    %114 = arith.maximumf %112, %113 : vector<8x128xf32>
    %115 = arith.truncf %114 : vector<8x128xf32> to vector<8x128xbf16>
    %cst_40 = arith.constant dense<0.000000e+00> : vector<8x32xf32>
    %116 = tpu.matmul %115, %13, %cst_40 {dimension_numbers = #tpu.dot_dimension_numbers<[1], [0], [0], [1], [0, 0, 1, 1], [], []>} : vector<8x128xbf16>, vector<128x32xbf16>, vector<8x32xf32> -> vector<8x32xf32>
    %117 = arith.addf %88, %116 : vector<8x32xf32>
    %118 = vector.broadcast %22 : vector<1x32xf32> to vector<8x32xf32>
    %119 = arith.addf %117, %118 : vector<8x32xf32>
    %c1 = arith.constant 1 : index
    %c0_41 = arith.constant 0 : index
    %c0_42 = arith.constant 0 : index
    %120 = vector.load %arg3[%c1, %c0_41, %c0_42] : memref<2x32x96xbf16, #tpu.memory_space<vmem>>, vector<1x32x96xbf16>
    %121 = vector.shape_cast %120 : vector<1x32x96xbf16> to vector<32x96xbf16>
    %c1_43 = arith.constant 1 : index
    %c0_44 = arith.constant 0 : index
    %c0_45 = arith.constant 0 : index
    %122 = vector.load %arg4[%c1_43, %c0_44, %c0_45] : memref<2x32x32xbf16, #tpu.memory_space<vmem>>, vector<1x32x32xbf16>
    %123 = vector.shape_cast %122 : vector<1x32x32xbf16> to vector<32x32xbf16>
    %c1_46 = arith.constant 1 : index
    %c0_47 = arith.constant 0 : index
    %c0_48 = arith.constant 0 : index
    %124 = vector.load %arg5[%c1_46, %c0_47, %c0_48] : memref<2x32x128xbf16, #tpu.memory_space<vmem>>, vector<1x32x128xbf16>
    %125 = vector.shape_cast %124 : vector<1x32x128xbf16> to vector<32x128xbf16>
    %c1_49 = arith.constant 1 : index
    %c0_50 = arith.constant 0 : index
    %c0_51 = arith.constant 0 : index
    %126 = vector.load %arg6[%c1_49, %c0_50, %c0_51] : memref<2x128x32xbf16, #tpu.memory_space<vmem>>, vector<1x128x32xbf16>
    %127 = vector.shape_cast %126 : vector<1x128x32xbf16> to vector<128x32xbf16>
    %c1_52 = arith.constant 1 : index
    %c0_53 = arith.constant 0 : index
    %c0_54 = arith.constant 0 : index
    %128 = vector.load %arg7[%c1_52, %c0_53, %c0_54] : memref<2x8x32xf32, #tpu.memory_space<vmem>>, vector<1x8x32xf32>
    %129 = vector.shape_cast %128 : vector<1x8x32xf32> to vector<8x32xf32>
    %c1_55 = arith.constant 1 : index
    %c0_56 = arith.constant 0 : index
    %c0_57 = arith.constant 0 : index
    %130 = vector.load %arg8[%c1_55, %c0_56, %c0_57] : memref<2x1x128xf32, #tpu.memory_space<vmem>>, vector<1x1x128xf32>
    %131 = vector.shape_cast %130 : vector<1x1x128xf32> to vector<1x128xf32>
    %132 = vector.extract_strided_slice %129 {offsets = [0, 0], sizes = [1, 32], strides = [1, 1]} : vector<8x32xf32> to vector<1x32xf32>
    %133 = vector.extract_strided_slice %129 {offsets = [1, 0], sizes = [1, 32], strides = [1, 1]} : vector<8x32xf32> to vector<1x32xf32>
    %134 = vector.extract_strided_slice %129 {offsets = [2, 0], sizes = [1, 32], strides = [1, 1]} : vector<8x32xf32> to vector<1x32xf32>
    %135 = vector.extract_strided_slice %129 {offsets = [3, 0], sizes = [1, 32], strides = [1, 1]} : vector<8x32xf32> to vector<1x32xf32>
    %136 = vector.extract_strided_slice %129 {offsets = [4, 0], sizes = [1, 32], strides = [1, 1]} : vector<8x32xf32> to vector<1x32xf32>
    %cst_58 = arith.constant dense<0.000000e+00> : vector<8xf32>
    %137 = vector.multi_reduction <add>, %119, %cst_58 [1] : vector<8x32xf32> to vector<8xf32>
    %138 = vector.shape_cast %137 : vector<8xf32> to vector<8x1xf32>
    %cst_59 = arith.constant 3.200000e+01 : f32
    %139 = vector.broadcast %cst_59 : f32 to vector<8x1xf32>
    %140 = arith.divf %138, %139 : vector<8x1xf32>
    %141 = vector.broadcast %140 : vector<8x1xf32> to vector<8x32xf32>
    %142 = arith.subf %119, %141 : vector<8x32xf32>
    %143 = arith.mulf %142, %142 : vector<8x32xf32>
    %cst_60 = arith.constant dense<0.000000e+00> : vector<8xf32>
    %144 = vector.multi_reduction <add>, %143, %cst_60 [1] : vector<8x32xf32> to vector<8xf32>
    %145 = vector.shape_cast %144 : vector<8xf32> to vector<8x1xf32>
    %cst_61 = arith.constant 3.200000e+01 : f32
    %146 = vector.broadcast %cst_61 : f32 to vector<8x1xf32>
    %147 = arith.divf %145, %146 : vector<8x1xf32>
    %cst_62 = arith.constant 9.99999974E-6 : f32
    %148 = vector.broadcast %cst_62 : f32 to vector<8x1xf32>
    %149 = arith.addf %147, %148 : vector<8x1xf32>
    %150 = math.rsqrt %149 : vector<8x1xf32>
    %151 = vector.broadcast %150 : vector<8x1xf32> to vector<8x32xf32>
    %152 = arith.mulf %142, %151 : vector<8x32xf32>
    %153 = vector.broadcast %132 : vector<1x32xf32> to vector<8x32xf32>
    %154 = arith.mulf %152, %153 : vector<8x32xf32>
    %155 = vector.broadcast %133 : vector<1x32xf32> to vector<8x32xf32>
    %156 = arith.addf %154, %155 : vector<8x32xf32>
    %157 = arith.truncf %156 : vector<8x32xf32> to vector<8x32xbf16>
    %cst_63 = arith.constant dense<0.000000e+00> : vector<8x96xf32>
    %158 = tpu.matmul %157, %121, %cst_63 {dimension_numbers = #tpu.dot_dimension_numbers<[1], [0], [0], [1], [0, 0, 1, 1], [], []>} : vector<8x32xbf16>, vector<32x96xbf16>, vector<8x96xf32> -> vector<8x96xf32>
    %159 = vector.shape_cast %158 : vector<8x96xf32> to vector<1x8x96xf32>
    %160 = vector.extract_strided_slice %159 {offsets = [0, 0, 0], sizes = [1, 8, 8], strides = [1, 1, 1]} : vector<1x8x96xf32> to vector<1x8x8xf32>
    %161 = vector.extract_strided_slice %159 {offsets = [0, 0, 8], sizes = [1, 8, 8], strides = [1, 1, 1]} : vector<1x8x96xf32> to vector<1x8x8xf32>
    %162 = vector.extract_strided_slice %159 {offsets = [0, 0, 16], sizes = [1, 8, 8], strides = [1, 1, 1]} : vector<1x8x96xf32> to vector<1x8x8xf32>
    %163 = vector.extract_strided_slice %159 {offsets = [0, 0, 24], sizes = [1, 8, 8], strides = [1, 1, 1]} : vector<1x8x96xf32> to vector<1x8x8xf32>
    %164 = tpu.concatenate %160, %161, %162, %163 in 0 : vector<1x8x8xf32>, vector<1x8x8xf32>, vector<1x8x8xf32>, vector<1x8x8xf32> -> vector<4x8x8xf32>
    %165 = arith.truncf %164 : vector<4x8x8xf32> to vector<4x8x8xbf16>
    %166 = vector.extract_strided_slice %159 {offsets = [0, 0, 32], sizes = [1, 8, 8], strides = [1, 1, 1]} : vector<1x8x96xf32> to vector<1x8x8xf32>
    %167 = vector.extract_strided_slice %159 {offsets = [0, 0, 40], sizes = [1, 8, 8], strides = [1, 1, 1]} : vector<1x8x96xf32> to vector<1x8x8xf32>
    %168 = vector.extract_strided_slice %159 {offsets = [0, 0, 48], sizes = [1, 8, 8], strides = [1, 1, 1]} : vector<1x8x96xf32> to vector<1x8x8xf32>
    %169 = vector.extract_strided_slice %159 {offsets = [0, 0, 56], sizes = [1, 8, 8], strides = [1, 1, 1]} : vector<1x8x96xf32> to vector<1x8x8xf32>
    %170 = tpu.concatenate %166, %167, %168, %169 in 0 : vector<1x8x8xf32>, vector<1x8x8xf32>, vector<1x8x8xf32>, vector<1x8x8xf32> -> vector<4x8x8xf32>
    %171 = arith.truncf %170 : vector<4x8x8xf32> to vector<4x8x8xbf16>
    %172 = vector.extract_strided_slice %159 {offsets = [0, 0, 64], sizes = [1, 8, 8], strides = [1, 1, 1]} : vector<1x8x96xf32> to vector<1x8x8xf32>
    %173 = vector.extract_strided_slice %159 {offsets = [0, 0, 72], sizes = [1, 8, 8], strides = [1, 1, 1]} : vector<1x8x96xf32> to vector<1x8x8xf32>
    %174 = vector.extract_strided_slice %159 {offsets = [0, 0, 80], sizes = [1, 8, 8], strides = [1, 1, 1]} : vector<1x8x96xf32> to vector<1x8x8xf32>
    %175 = vector.extract_strided_slice %159 {offsets = [0, 0, 88], sizes = [1, 8, 8], strides = [1, 1, 1]} : vector<1x8x96xf32> to vector<1x8x8xf32>
    %176 = tpu.concatenate %172, %173, %174, %175 in 0 : vector<1x8x8xf32>, vector<1x8x8xf32>, vector<1x8x8xf32>, vector<1x8x8xf32> -> vector<4x8x8xf32>
    %177 = arith.truncf %176 : vector<4x8x8xf32> to vector<4x8x8xbf16>
    "tpu.trace_start"() <{level = 10 : i32, message = "bqd,bkd->bqk"}> : () -> ()
    %cst_64 = arith.constant dense<0.000000e+00> : vector<4x8x8xf32>
    %178 = tpu.matmul %165, %171, %cst_64 {dimension_numbers = #tpu.dot_dimension_numbers<[2], [2], [1], [1], [0, 0, 0, 1, 1, 1], [0], [0]>} : vector<4x8x8xbf16>, vector<4x8x8xbf16>, vector<4x8x8xf32> -> vector<4x8x8xf32>
    "tpu.trace_stop"() : () -> ()
    %cst_65 = arith.constant 0.353553385 : f32
    %179 = vector.broadcast %cst_65 : f32 to vector<4x8x8xf32>
    %180 = arith.mulf %178, %179 : vector<4x8x8xf32>
    %181 = arith.addf %180, %5 : vector<4x8x8xf32>
    %cst_66 = arith.constant dense<0xFF800000> : vector<4x8xf32>
    %182 = vector.multi_reduction <maximumf>, %181, %cst_66 [2] : vector<4x8x8xf32> to vector<4x8xf32>
    %183 = vector.shape_cast %182 : vector<4x8xf32> to vector<4x8x1xf32>
    %184 = vector.broadcast %183 : vector<4x8x1xf32> to vector<4x8x8xf32>
    %185 = arith.subf %181, %184 : vector<4x8x8xf32>
    %186 = math.exp %185 : vector<4x8x8xf32>
    %cst_67 = arith.constant dense<0.000000e+00> : vector<4x8xf32>
    %187 = vector.multi_reduction <add>, %186, %cst_67 [2] : vector<4x8x8xf32> to vector<4x8xf32>
    %188 = vector.shape_cast %187 : vector<4x8xf32> to vector<4x8x1xf32>
    %189 = tpu.reciprocal %188 {approx = true} : vector<4x8x1xf32> -> vector<4x8x1xf32>
    %190 = vector.broadcast %189 : vector<4x8x1xf32> to vector<4x8x8xf32>
    %191 = arith.mulf %186, %190 : vector<4x8x8xf32>
    %192 = arith.truncf %191 : vector<4x8x8xf32> to vector<4x8x8xbf16>
    "tpu.trace_start"() <{level = 10 : i32, message = "bqk,bkd->bqd"}> : () -> ()
    %cst_68 = arith.constant dense<0.000000e+00> : vector<4x8x8xf32>
    %193 = tpu.matmul %192, %177, %cst_68 {dimension_numbers = #tpu.dot_dimension_numbers<[2], [1], [1], [2], [0, 0, 0, 1, 1, 2], [0], [0]>} : vector<4x8x8xbf16>, vector<4x8x8xbf16>, vector<4x8x8xf32> -> vector<4x8x8xf32>
    "tpu.trace_stop"() : () -> ()
    %194 = vector.extract_strided_slice %193 {offsets = [0, 0, 0], sizes = [1, 8, 8], strides = [1, 1, 1]} : vector<4x8x8xf32> to vector<1x8x8xf32>
    %195 = vector.extract_strided_slice %193 {offsets = [1, 0, 0], sizes = [1, 8, 8], strides = [1, 1, 1]} : vector<4x8x8xf32> to vector<1x8x8xf32>
    %196 = vector.extract_strided_slice %193 {offsets = [2, 0, 0], sizes = [1, 8, 8], strides = [1, 1, 1]} : vector<4x8x8xf32> to vector<1x8x8xf32>
    %197 = vector.extract_strided_slice %193 {offsets = [3, 0, 0], sizes = [1, 8, 8], strides = [1, 1, 1]} : vector<4x8x8xf32> to vector<1x8x8xf32>
    %198 = tpu.concatenate %194, %195, %196, %197 in 2 : vector<1x8x8xf32>, vector<1x8x8xf32>, vector<1x8x8xf32>, vector<1x8x8xf32> -> vector<1x8x32xf32>
    %199 = vector.shape_cast %198 : vector<1x8x32xf32> to vector<8x32xf32>
    %200 = arith.truncf %199 : vector<8x32xf32> to vector<8x32xbf16>
    %cst_69 = arith.constant dense<0.000000e+00> : vector<8x32xf32>
    %201 = tpu.matmul %200, %123, %cst_69 {dimension_numbers = #tpu.dot_dimension_numbers<[1], [0], [0], [1], [0, 0, 1, 1], [], []>} : vector<8x32xbf16>, vector<32x32xbf16>, vector<8x32xf32> -> vector<8x32xf32>
    %202 = arith.addf %119, %201 : vector<8x32xf32>
    %cst_70 = arith.constant dense<0.000000e+00> : vector<8xf32>
    %203 = vector.multi_reduction <add>, %202, %cst_70 [1] : vector<8x32xf32> to vector<8xf32>
    %204 = vector.shape_cast %203 : vector<8xf32> to vector<8x1xf32>
    %cst_71 = arith.constant 3.200000e+01 : f32
    %205 = vector.broadcast %cst_71 : f32 to vector<8x1xf32>
    %206 = arith.divf %204, %205 : vector<8x1xf32>
    %207 = vector.broadcast %206 : vector<8x1xf32> to vector<8x32xf32>
    %208 = arith.subf %202, %207 : vector<8x32xf32>
    %209 = arith.mulf %208, %208 : vector<8x32xf32>
    %cst_72 = arith.constant dense<0.000000e+00> : vector<8xf32>
    %210 = vector.multi_reduction <add>, %209, %cst_72 [1] : vector<8x32xf32> to vector<8xf32>
    %211 = vector.shape_cast %210 : vector<8xf32> to vector<8x1xf32>
    %cst_73 = arith.constant 3.200000e+01 : f32
    %212 = vector.broadcast %cst_73 : f32 to vector<8x1xf32>
    %213 = arith.divf %211, %212 : vector<8x1xf32>
    %cst_74 = arith.constant 9.99999974E-6 : f32
    %214 = vector.broadcast %cst_74 : f32 to vector<8x1xf32>
    %215 = arith.addf %213, %214 : vector<8x1xf32>
    %216 = math.rsqrt %215 : vector<8x1xf32>
    %217 = vector.broadcast %216 : vector<8x1xf32> to vector<8x32xf32>
    %218 = arith.mulf %208, %217 : vector<8x32xf32>
    %219 = vector.broadcast %134 : vector<1x32xf32> to vector<8x32xf32>
    %220 = arith.mulf %218, %219 : vector<8x32xf32>
    %221 = vector.broadcast %135 : vector<1x32xf32> to vector<8x32xf32>
    %222 = arith.addf %220, %221 : vector<8x32xf32>
    %223 = arith.truncf %222 : vector<8x32xf32> to vector<8x32xbf16>
    %cst_75 = arith.constant dense<0.000000e+00> : vector<8x128xf32>
    %224 = tpu.matmul %223, %125, %cst_75 {dimension_numbers = #tpu.dot_dimension_numbers<[1], [0], [0], [1], [0, 0, 1, 1], [], []>} : vector<8x32xbf16>, vector<32x128xbf16>, vector<8x128xf32> -> vector<8x128xf32>
    %225 = vector.broadcast %131 : vector<1x128xf32> to vector<8x128xf32>
    %226 = arith.addf %224, %225 : vector<8x128xf32>
    %cst_76 = arith.constant 0.000000e+00 : f32
    %227 = vector.broadcast %cst_76 : f32 to vector<8x128xf32>
    %228 = arith.maximumf %226, %227 : vector<8x128xf32>
    %229 = arith.truncf %228 : vector<8x128xf32> to vector<8x128xbf16>
    %cst_77 = arith.constant dense<0.000000e+00> : vector<8x32xf32>
    %230 = tpu.matmul %229, %127, %cst_77 {dimension_numbers = #tpu.dot_dimension_numbers<[1], [0], [0], [1], [0, 0, 1, 1], [], []>} : vector<8x128xbf16>, vector<128x32xbf16>, vector<8x32xf32> -> vector<8x32xf32>
    %231 = arith.addf %202, %230 : vector<8x32xf32>
    %232 = vector.broadcast %136 : vector<1x32xf32> to vector<8x32xf32>
    %233 = arith.addf %231, %232 : vector<8x32xf32>
    %c1_i32 = arith.constant 1 : i32
    %c0_78 = arith.constant 0 : index
    %c0_79 = arith.constant 0 : index
    %c0_80 = arith.constant 0 : index
    %234 = vector.load %arg3[%c0_78, %c0_79, %c0_80] : memref<2x32x96xbf16, #tpu.memory_space<vmem>>, vector<1x32x96xbf16>
    %235 = vector.shape_cast %234 : vector<1x32x96xbf16> to vector<32x96xbf16>
    %c0_81 = arith.constant 0 : index
    %c0_82 = arith.constant 0 : index
    %c0_83 = arith.constant 0 : index
    %236 = vector.load %arg4[%c0_81, %c0_82, %c0_83] : memref<2x32x32xbf16, #tpu.memory_space<vmem>>, vector<1x32x32xbf16>
    %237 = vector.shape_cast %236 : vector<1x32x32xbf16> to vector<32x32xbf16>
    %c0_84 = arith.constant 0 : index
    %c0_85 = arith.constant 0 : index
    %c0_86 = arith.constant 0 : index
    %238 = vector.load %arg5[%c0_84, %c0_85, %c0_86] : memref<2x32x128xbf16, #tpu.memory_space<vmem>>, vector<1x32x128xbf16>
    %239 = vector.shape_cast %238 : vector<1x32x128xbf16> to vector<32x128xbf16>
    %c0_87 = arith.constant 0 : index
    %c0_88 = arith.constant 0 : index
    %c0_89 = arith.constant 0 : index
    %240 = vector.load %arg6[%c0_87, %c0_88, %c0_89] : memref<2x128x32xbf16, #tpu.memory_space<vmem>>, vector<1x128x32xbf16>
    %241 = vector.shape_cast %240 : vector<1x128x32xbf16> to vector<128x32xbf16>
    %c0_90 = arith.constant 0 : index
    %c0_91 = arith.constant 0 : index
    %c0_92 = arith.constant 0 : index
    %242 = vector.load %arg7[%c0_90, %c0_91, %c0_92] : memref<2x8x32xf32, #tpu.memory_space<vmem>>, vector<1x8x32xf32>
    %243 = vector.shape_cast %242 : vector<1x8x32xf32> to vector<8x32xf32>
    %c0_93 = arith.constant 0 : index
    %c0_94 = arith.constant 0 : index
    %c0_95 = arith.constant 0 : index
    %244 = vector.load %arg8[%c0_93, %c0_94, %c0_95] : memref<2x1x128xf32, #tpu.memory_space<vmem>>, vector<1x1x128xf32>
    %245 = vector.shape_cast %244 : vector<1x1x128xf32> to vector<1x128xf32>
    %246 = vector.extract_strided_slice %243 {offsets = [0, 0], sizes = [1, 32], strides = [1, 1]} : vector<8x32xf32> to vector<1x32xf32>
    %247 = vector.extract_strided_slice %243 {offsets = [1, 0], sizes = [1, 32], strides = [1, 1]} : vector<8x32xf32> to vector<1x32xf32>
    %248 = vector.extract_strided_slice %243 {offsets = [2, 0], sizes = [1, 32], strides = [1, 1]} : vector<8x32xf32> to vector<1x32xf32>
    %249 = vector.extract_strided_slice %243 {offsets = [3, 0], sizes = [1, 32], strides = [1, 1]} : vector<8x32xf32> to vector<1x32xf32>
    %250 = vector.extract_strided_slice %243 {offsets = [4, 0], sizes = [1, 32], strides = [1, 1]} : vector<8x32xf32> to vector<1x32xf32>
    %cst_96 = arith.constant dense<0.000000e+00> : vector<8xf32>
    %251 = vector.multi_reduction <add>, %233, %cst_96 [1] : vector<8x32xf32> to vector<8xf32>
    %252 = vector.shape_cast %251 : vector<8xf32> to vector<8x1xf32>
    %cst_97 = arith.constant 3.200000e+01 : f32
    %253 = vector.broadcast %cst_97 : f32 to vector<8x1xf32>
    %254 = arith.divf %252, %253 : vector<8x1xf32>
    %255 = vector.broadcast %254 : vector<8x1xf32> to vector<8x32xf32>
    %256 = arith.subf %233, %255 : vector<8x32xf32>
    %257 = arith.mulf %256, %256 : vector<8x32xf32>
    %cst_98 = arith.constant dense<0.000000e+00> : vector<8xf32>
    %258 = vector.multi_reduction <add>, %257, %cst_98 [1] : vector<8x32xf32> to vector<8xf32>
    %259 = vector.shape_cast %258 : vector<8xf32> to vector<8x1xf32>
    %cst_99 = arith.constant 3.200000e+01 : f32
    %260 = vector.broadcast %cst_99 : f32 to vector<8x1xf32>
    %261 = arith.divf %259, %260 : vector<8x1xf32>
    %cst_100 = arith.constant 9.99999974E-6 : f32
    %262 = vector.broadcast %cst_100 : f32 to vector<8x1xf32>
    %263 = arith.addf %261, %262 : vector<8x1xf32>
    %264 = math.rsqrt %263 : vector<8x1xf32>
    %265 = vector.broadcast %264 : vector<8x1xf32> to vector<8x32xf32>
    %266 = arith.mulf %256, %265 : vector<8x32xf32>
    %267 = vector.broadcast %246 : vector<1x32xf32> to vector<8x32xf32>
    %268 = arith.mulf %266, %267 : vector<8x32xf32>
    %269 = vector.broadcast %247 : vector<1x32xf32> to vector<8x32xf32>
    %270 = arith.addf %268, %269 : vector<8x32xf32>
    %271 = arith.truncf %270 : vector<8x32xf32> to vector<8x32xbf16>
    %cst_101 = arith.constant dense<0.000000e+00> : vector<8x96xf32>
    %272 = tpu.matmul %271, %235, %cst_101 {dimension_numbers = #tpu.dot_dimension_numbers<[1], [0], [0], [1], [0, 0, 1, 1], [], []>} : vector<8x32xbf16>, vector<32x96xbf16>, vector<8x96xf32> -> vector<8x96xf32>
    %273 = vector.shape_cast %272 : vector<8x96xf32> to vector<1x8x96xf32>
    %274 = vector.extract_strided_slice %273 {offsets = [0, 0, 0], sizes = [1, 8, 8], strides = [1, 1, 1]} : vector<1x8x96xf32> to vector<1x8x8xf32>
    %275 = vector.extract_strided_slice %273 {offsets = [0, 0, 8], sizes = [1, 8, 8], strides = [1, 1, 1]} : vector<1x8x96xf32> to vector<1x8x8xf32>
    %276 = vector.extract_strided_slice %273 {offsets = [0, 0, 16], sizes = [1, 8, 8], strides = [1, 1, 1]} : vector<1x8x96xf32> to vector<1x8x8xf32>
    %277 = vector.extract_strided_slice %273 {offsets = [0, 0, 24], sizes = [1, 8, 8], strides = [1, 1, 1]} : vector<1x8x96xf32> to vector<1x8x8xf32>
    %278 = tpu.concatenate %274, %275, %276, %277 in 0 : vector<1x8x8xf32>, vector<1x8x8xf32>, vector<1x8x8xf32>, vector<1x8x8xf32> -> vector<4x8x8xf32>
    %279 = arith.truncf %278 : vector<4x8x8xf32> to vector<4x8x8xbf16>
    %280 = vector.extract_strided_slice %273 {offsets = [0, 0, 32], sizes = [1, 8, 8], strides = [1, 1, 1]} : vector<1x8x96xf32> to vector<1x8x8xf32>
    %281 = vector.extract_strided_slice %273 {offsets = [0, 0, 40], sizes = [1, 8, 8], strides = [1, 1, 1]} : vector<1x8x96xf32> to vector<1x8x8xf32>
    %282 = vector.extract_strided_slice %273 {offsets = [0, 0, 48], sizes = [1, 8, 8], strides = [1, 1, 1]} : vector<1x8x96xf32> to vector<1x8x8xf32>
    %283 = vector.extract_strided_slice %273 {offsets = [0, 0, 56], sizes = [1, 8, 8], strides = [1, 1, 1]} : vector<1x8x96xf32> to vector<1x8x8xf32>
    %284 = tpu.concatenate %280, %281, %282, %283 in 0 : vector<1x8x8xf32>, vector<1x8x8xf32>, vector<1x8x8xf32>, vector<1x8x8xf32> -> vector<4x8x8xf32>
    %285 = arith.truncf %284 : vector<4x8x8xf32> to vector<4x8x8xbf16>
    %286 = vector.extract_strided_slice %273 {offsets = [0, 0, 64], sizes = [1, 8, 8], strides = [1, 1, 1]} : vector<1x8x96xf32> to vector<1x8x8xf32>
    %287 = vector.extract_strided_slice %273 {offsets = [0, 0, 72], sizes = [1, 8, 8], strides = [1, 1, 1]} : vector<1x8x96xf32> to vector<1x8x8xf32>
    %288 = vector.extract_strided_slice %273 {offsets = [0, 0, 80], sizes = [1, 8, 8], strides = [1, 1, 1]} : vector<1x8x96xf32> to vector<1x8x8xf32>
    %289 = vector.extract_strided_slice %273 {offsets = [0, 0, 88], sizes = [1, 8, 8], strides = [1, 1, 1]} : vector<1x8x96xf32> to vector<1x8x8xf32>
    %290 = tpu.concatenate %286, %287, %288, %289 in 0 : vector<1x8x8xf32>, vector<1x8x8xf32>, vector<1x8x8xf32>, vector<1x8x8xf32> -> vector<4x8x8xf32>
    %291 = arith.truncf %290 : vector<4x8x8xf32> to vector<4x8x8xbf16>
    "tpu.trace_start"() <{level = 10 : i32, message = "bqd,bkd->bqk"}> : () -> ()
    %cst_102 = arith.constant dense<0.000000e+00> : vector<4x8x8xf32>
    %292 = tpu.matmul %279, %285, %cst_102 {dimension_numbers = #tpu.dot_dimension_numbers<[2], [2], [1], [1], [0, 0, 0, 1, 1, 1], [0], [0]>} : vector<4x8x8xbf16>, vector<4x8x8xbf16>, vector<4x8x8xf32> -> vector<4x8x8xf32>
    "tpu.trace_stop"() : () -> ()
    %cst_103 = arith.constant 0.353553385 : f32
    %293 = vector.broadcast %cst_103 : f32 to vector<4x8x8xf32>
    %294 = arith.mulf %292, %293 : vector<4x8x8xf32>
    %295 = arith.addf %294, %5 : vector<4x8x8xf32>
    %cst_104 = arith.constant dense<0xFF800000> : vector<4x8xf32>
    %296 = vector.multi_reduction <maximumf>, %295, %cst_104 [2] : vector<4x8x8xf32> to vector<4x8xf32>
    %297 = vector.shape_cast %296 : vector<4x8xf32> to vector<4x8x1xf32>
    %298 = vector.broadcast %297 : vector<4x8x1xf32> to vector<4x8x8xf32>
    %299 = arith.subf %295, %298 : vector<4x8x8xf32>
    %300 = math.exp %299 : vector<4x8x8xf32>
    %cst_105 = arith.constant dense<0.000000e+00> : vector<4x8xf32>
    %301 = vector.multi_reduction <add>, %300, %cst_105 [2] : vector<4x8x8xf32> to vector<4x8xf32>
    %302 = vector.shape_cast %301 : vector<4x8xf32> to vector<4x8x1xf32>
    %303 = tpu.reciprocal %302 {approx = true} : vector<4x8x1xf32> -> vector<4x8x1xf32>
    %304 = vector.broadcast %303 : vector<4x8x1xf32> to vector<4x8x8xf32>
    %305 = arith.mulf %300, %304 : vector<4x8x8xf32>
    %306 = arith.truncf %305 : vector<4x8x8xf32> to vector<4x8x8xbf16>
    "tpu.trace_start"() <{level = 10 : i32, message = "bqk,bkd->bqd"}> : () -> ()
    %cst_106 = arith.constant dense<0.000000e+00> : vector<4x8x8xf32>
    %307 = tpu.matmul %306, %291, %cst_106 {dimension_numbers = #tpu.dot_dimension_numbers<[2], [1], [1], [2], [0, 0, 0, 1, 1, 2], [0], [0]>} : vector<4x8x8xbf16>, vector<4x8x8xbf16>, vector<4x8x8xf32> -> vector<4x8x8xf32>
    "tpu.trace_stop"() : () -> ()
    %308 = vector.extract_strided_slice %307 {offsets = [0, 0, 0], sizes = [1, 8, 8], strides = [1, 1, 1]} : vector<4x8x8xf32> to vector<1x8x8xf32>
    %309 = vector.extract_strided_slice %307 {offsets = [1, 0, 0], sizes = [1, 8, 8], strides = [1, 1, 1]} : vector<4x8x8xf32> to vector<1x8x8xf32>
    %310 = vector.extract_strided_slice %307 {offsets = [2, 0, 0], sizes = [1, 8, 8], strides = [1, 1, 1]} : vector<4x8x8xf32> to vector<1x8x8xf32>
    %311 = vector.extract_strided_slice %307 {offsets = [3, 0, 0], sizes = [1, 8, 8], strides = [1, 1, 1]} : vector<4x8x8xf32> to vector<1x8x8xf32>
    %312 = tpu.concatenate %308, %309, %310, %311 in 2 : vector<1x8x8xf32>, vector<1x8x8xf32>, vector<1x8x8xf32>, vector<1x8x8xf32> -> vector<1x8x32xf32>
    %313 = vector.shape_cast %312 : vector<1x8x32xf32> to vector<8x32xf32>
    %314 = arith.truncf %313 : vector<8x32xf32> to vector<8x32xbf16>
    %cst_107 = arith.constant dense<0.000000e+00> : vector<8x32xf32>
    %315 = tpu.matmul %314, %237, %cst_107 {dimension_numbers = #tpu.dot_dimension_numbers<[1], [0], [0], [1], [0, 0, 1, 1], [], []>} : vector<8x32xbf16>, vector<32x32xbf16>, vector<8x32xf32> -> vector<8x32xf32>
    %316 = arith.addf %233, %315 : vector<8x32xf32>
    %cst_108 = arith.constant dense<0.000000e+00> : vector<8xf32>
    %317 = vector.multi_reduction <add>, %316, %cst_108 [1] : vector<8x32xf32> to vector<8xf32>
    %318 = vector.shape_cast %317 : vector<8xf32> to vector<8x1xf32>
    %cst_109 = arith.constant 3.200000e+01 : f32
    %319 = vector.broadcast %cst_109 : f32 to vector<8x1xf32>
    %320 = arith.divf %318, %319 : vector<8x1xf32>
    %321 = vector.broadcast %320 : vector<8x1xf32> to vector<8x32xf32>
    %322 = arith.subf %316, %321 : vector<8x32xf32>
    %323 = arith.mulf %322, %322 : vector<8x32xf32>
    %cst_110 = arith.constant dense<0.000000e+00> : vector<8xf32>
    %324 = vector.multi_reduction <add>, %323, %cst_110 [1] : vector<8x32xf32> to vector<8xf32>
    %325 = vector.shape_cast %324 : vector<8xf32> to vector<8x1xf32>
    %cst_111 = arith.constant 3.200000e+01 : f32
    %326 = vector.broadcast %cst_111 : f32 to vector<8x1xf32>
    %327 = arith.divf %325, %326 : vector<8x1xf32>
    %cst_112 = arith.constant 9.99999974E-6 : f32
    %328 = vector.broadcast %cst_112 : f32 to vector<8x1xf32>
    %329 = arith.addf %327, %328 : vector<8x1xf32>
    %330 = math.rsqrt %329 : vector<8x1xf32>
    %331 = vector.broadcast %330 : vector<8x1xf32> to vector<8x32xf32>
    %332 = arith.mulf %322, %331 : vector<8x32xf32>
    %333 = vector.broadcast %248 : vector<1x32xf32> to vector<8x32xf32>
    %334 = arith.mulf %332, %333 : vector<8x32xf32>
    %335 = vector.broadcast %249 : vector<1x32xf32> to vector<8x32xf32>
    %336 = arith.addf %334, %335 : vector<8x32xf32>
    %337 = arith.truncf %336 : vector<8x32xf32> to vector<8x32xbf16>
    %cst_113 = arith.constant dense<0.000000e+00> : vector<8x128xf32>
    %338 = tpu.matmul %337, %239, %cst_113 {dimension_numbers = #tpu.dot_dimension_numbers<[1], [0], [0], [1], [0, 0, 1, 1], [], []>} : vector<8x32xbf16>, vector<32x128xbf16>, vector<8x128xf32> -> vector<8x128xf32>
    %339 = vector.broadcast %245 : vector<1x128xf32> to vector<8x128xf32>
    %340 = arith.addf %338, %339 : vector<8x128xf32>
    %cst_114 = arith.constant 0.000000e+00 : f32
    %341 = vector.broadcast %cst_114 : f32 to vector<8x128xf32>
    %342 = arith.maximumf %340, %341 : vector<8x128xf32>
    %343 = arith.truncf %342 : vector<8x128xf32> to vector<8x128xbf16>
    %cst_115 = arith.constant dense<0.000000e+00> : vector<8x32xf32>
    %344 = tpu.matmul %343, %241, %cst_115 {dimension_numbers = #tpu.dot_dimension_numbers<[1], [0], [0], [1], [0, 0, 1, 1], [], []>} : vector<8x128xbf16>, vector<128x32xbf16>, vector<8x32xf32> -> vector<8x32xf32>
    %345 = arith.addf %316, %344 : vector<8x32xf32>
    %346 = vector.broadcast %250 : vector<1x32xf32> to vector<8x32xf32>
    %347 = arith.addf %345, %346 : vector<8x32xf32>
    %c1_116 = arith.constant 1 : index
    %c0_117 = arith.constant 0 : index
    %c0_118 = arith.constant 0 : index
    %348 = vector.load %arg3[%c1_116, %c0_117, %c0_118] : memref<2x32x96xbf16, #tpu.memory_space<vmem>>, vector<1x32x96xbf16>
    %349 = vector.shape_cast %348 : vector<1x32x96xbf16> to vector<32x96xbf16>
    %c1_119 = arith.constant 1 : index
    %c0_120 = arith.constant 0 : index
    %c0_121 = arith.constant 0 : index
    %350 = vector.load %arg4[%c1_119, %c0_120, %c0_121] : memref<2x32x32xbf16, #tpu.memory_space<vmem>>, vector<1x32x32xbf16>
    %351 = vector.shape_cast %350 : vector<1x32x32xbf16> to vector<32x32xbf16>
    %c1_122 = arith.constant 1 : index
    %c0_123 = arith.constant 0 : index
    %c0_124 = arith.constant 0 : index
    %352 = vector.load %arg5[%c1_122, %c0_123, %c0_124] : memref<2x32x128xbf16, #tpu.memory_space<vmem>>, vector<1x32x128xbf16>
    %353 = vector.shape_cast %352 : vector<1x32x128xbf16> to vector<32x128xbf16>
    %c1_125 = arith.constant 1 : index
    %c0_126 = arith.constant 0 : index
    %c0_127 = arith.constant 0 : index
    %354 = vector.load %arg6[%c1_125, %c0_126, %c0_127] : memref<2x128x32xbf16, #tpu.memory_space<vmem>>, vector<1x128x32xbf16>
    %355 = vector.shape_cast %354 : vector<1x128x32xbf16> to vector<128x32xbf16>
    %c1_128 = arith.constant 1 : index
    %c0_129 = arith.constant 0 : index
    %c0_130 = arith.constant 0 : index
    %356 = vector.load %arg7[%c1_128, %c0_129, %c0_130] : memref<2x8x32xf32, #tpu.memory_space<vmem>>, vector<1x8x32xf32>
    %357 = vector.shape_cast %356 : vector<1x8x32xf32> to vector<8x32xf32>
    %c1_131 = arith.constant 1 : index
    %c0_132 = arith.constant 0 : index
    %c0_133 = arith.constant 0 : index
    %358 = vector.load %arg8[%c1_131, %c0_132, %c0_133] : memref<2x1x128xf32, #tpu.memory_space<vmem>>, vector<1x1x128xf32>
    %359 = vector.shape_cast %358 : vector<1x1x128xf32> to vector<1x128xf32>
    %360 = vector.extract_strided_slice %357 {offsets = [0, 0], sizes = [1, 32], strides = [1, 1]} : vector<8x32xf32> to vector<1x32xf32>
    %361 = vector.extract_strided_slice %357 {offsets = [1, 0], sizes = [1, 32], strides = [1, 1]} : vector<8x32xf32> to vector<1x32xf32>
    %362 = vector.extract_strided_slice %357 {offsets = [2, 0], sizes = [1, 32], strides = [1, 1]} : vector<8x32xf32> to vector<1x32xf32>
    %363 = vector.extract_strided_slice %357 {offsets = [3, 0], sizes = [1, 32], strides = [1, 1]} : vector<8x32xf32> to vector<1x32xf32>
    %364 = vector.extract_strided_slice %357 {offsets = [4, 0], sizes = [1, 32], strides = [1, 1]} : vector<8x32xf32> to vector<1x32xf32>
    %cst_134 = arith.constant dense<0.000000e+00> : vector<8xf32>
    %365 = vector.multi_reduction <add>, %347, %cst_134 [1] : vector<8x32xf32> to vector<8xf32>
    %366 = vector.shape_cast %365 : vector<8xf32> to vector<8x1xf32>
    %cst_135 = arith.constant 3.200000e+01 : f32
    %367 = vector.broadcast %cst_135 : f32 to vector<8x1xf32>
    %368 = arith.divf %366, %367 : vector<8x1xf32>
    %369 = vector.broadcast %368 : vector<8x1xf32> to vector<8x32xf32>
    %370 = arith.subf %347, %369 : vector<8x32xf32>
    %371 = arith.mulf %370, %370 : vector<8x32xf32>
    %cst_136 = arith.constant dense<0.000000e+00> : vector<8xf32>
    %372 = vector.multi_reduction <add>, %371, %cst_136 [1] : vector<8x32xf32> to vector<8xf32>
    %373 = vector.shape_cast %372 : vector<8xf32> to vector<8x1xf32>
    %cst_137 = arith.constant 3.200000e+01 : f32
    %374 = vector.broadcast %cst_137 : f32 to vector<8x1xf32>
    %375 = arith.divf %373, %374 : vector<8x1xf32>
    %cst_138 = arith.constant 9.99999974E-6 : f32
    %376 = vector.broadcast %cst_138 : f32 to vector<8x1xf32>
    %377 = arith.addf %375, %376 : vector<8x1xf32>
    %378 = math.rsqrt %377 : vector<8x1xf32>
    %379 = vector.broadcast %378 : vector<8x1xf32> to vector<8x32xf32>
    %380 = arith.mulf %370, %379 : vector<8x32xf32>
    %381 = vector.broadcast %360 : vector<1x32xf32> to vector<8x32xf32>
    %382 = arith.mulf %380, %381 : vector<8x32xf32>
    %383 = vector.broadcast %361 : vector<1x32xf32> to vector<8x32xf32>
    %384 = arith.addf %382, %383 : vector<8x32xf32>
    %385 = arith.truncf %384 : vector<8x32xf32> to vector<8x32xbf16>
    %cst_139 = arith.constant dense<0.000000e+00> : vector<8x96xf32>
    %386 = tpu.matmul %385, %349, %cst_139 {dimension_numbers = #tpu.dot_dimension_numbers<[1], [0], [0], [1], [0, 0, 1, 1], [], []>} : vector<8x32xbf16>, vector<32x96xbf16>, vector<8x96xf32> -> vector<8x96xf32>
    %387 = vector.shape_cast %386 : vector<8x96xf32> to vector<1x8x96xf32>
    %388 = vector.extract_strided_slice %387 {offsets = [0, 0, 0], sizes = [1, 8, 8], strides = [1, 1, 1]} : vector<1x8x96xf32> to vector<1x8x8xf32>
    %389 = vector.extract_strided_slice %387 {offsets = [0, 0, 8], sizes = [1, 8, 8], strides = [1, 1, 1]} : vector<1x8x96xf32> to vector<1x8x8xf32>
    %390 = vector.extract_strided_slice %387 {offsets = [0, 0, 16], sizes = [1, 8, 8], strides = [1, 1, 1]} : vector<1x8x96xf32> to vector<1x8x8xf32>
    %391 = vector.extract_strided_slice %387 {offsets = [0, 0, 24], sizes = [1, 8, 8], strides = [1, 1, 1]} : vector<1x8x96xf32> to vector<1x8x8xf32>
    %392 = tpu.concatenate %388, %389, %390, %391 in 0 : vector<1x8x8xf32>, vector<1x8x8xf32>, vector<1x8x8xf32>, vector<1x8x8xf32> -> vector<4x8x8xf32>
    %393 = arith.truncf %392 : vector<4x8x8xf32> to vector<4x8x8xbf16>
    %394 = vector.extract_strided_slice %387 {offsets = [0, 0, 32], sizes = [1, 8, 8], strides = [1, 1, 1]} : vector<1x8x96xf32> to vector<1x8x8xf32>
    %395 = vector.extract_strided_slice %387 {offsets = [0, 0, 40], sizes = [1, 8, 8], strides = [1, 1, 1]} : vector<1x8x96xf32> to vector<1x8x8xf32>
    %396 = vector.extract_strided_slice %387 {offsets = [0, 0, 48], sizes = [1, 8, 8], strides = [1, 1, 1]} : vector<1x8x96xf32> to vector<1x8x8xf32>
    %397 = vector.extract_strided_slice %387 {offsets = [0, 0, 56], sizes = [1, 8, 8], strides = [1, 1, 1]} : vector<1x8x96xf32> to vector<1x8x8xf32>
    %398 = tpu.concatenate %394, %395, %396, %397 in 0 : vector<1x8x8xf32>, vector<1x8x8xf32>, vector<1x8x8xf32>, vector<1x8x8xf32> -> vector<4x8x8xf32>
    %399 = arith.truncf %398 : vector<4x8x8xf32> to vector<4x8x8xbf16>
    %400 = vector.extract_strided_slice %387 {offsets = [0, 0, 64], sizes = [1, 8, 8], strides = [1, 1, 1]} : vector<1x8x96xf32> to vector<1x8x8xf32>
    %401 = vector.extract_strided_slice %387 {offsets = [0, 0, 72], sizes = [1, 8, 8], strides = [1, 1, 1]} : vector<1x8x96xf32> to vector<1x8x8xf32>
    %402 = vector.extract_strided_slice %387 {offsets = [0, 0, 80], sizes = [1, 8, 8], strides = [1, 1, 1]} : vector<1x8x96xf32> to vector<1x8x8xf32>
    %403 = vector.extract_strided_slice %387 {offsets = [0, 0, 88], sizes = [1, 8, 8], strides = [1, 1, 1]} : vector<1x8x96xf32> to vector<1x8x8xf32>
    %404 = tpu.concatenate %400, %401, %402, %403 in 0 : vector<1x8x8xf32>, vector<1x8x8xf32>, vector<1x8x8xf32>, vector<1x8x8xf32> -> vector<4x8x8xf32>
    %405 = arith.truncf %404 : vector<4x8x8xf32> to vector<4x8x8xbf16>
    "tpu.trace_start"() <{level = 10 : i32, message = "bqd,bkd->bqk"}> : () -> ()
    %cst_140 = arith.constant dense<0.000000e+00> : vector<4x8x8xf32>
    %406 = tpu.matmul %393, %399, %cst_140 {dimension_numbers = #tpu.dot_dimension_numbers<[2], [2], [1], [1], [0, 0, 0, 1, 1, 1], [0], [0]>} : vector<4x8x8xbf16>, vector<4x8x8xbf16>, vector<4x8x8xf32> -> vector<4x8x8xf32>
    "tpu.trace_stop"() : () -> ()
    %cst_141 = arith.constant 0.353553385 : f32
    %407 = vector.broadcast %cst_141 : f32 to vector<4x8x8xf32>
    %408 = arith.mulf %406, %407 : vector<4x8x8xf32>
    %409 = arith.addf %408, %5 : vector<4x8x8xf32>
    %cst_142 = arith.constant dense<0xFF800000> : vector<4x8xf32>
    %410 = vector.multi_reduction <maximumf>, %409, %cst_142 [2] : vector<4x8x8xf32> to vector<4x8xf32>
    %411 = vector.shape_cast %410 : vector<4x8xf32> to vector<4x8x1xf32>
    %412 = vector.broadcast %411 : vector<4x8x1xf32> to vector<4x8x8xf32>
    %413 = arith.subf %409, %412 : vector<4x8x8xf32>
    %414 = math.exp %413 : vector<4x8x8xf32>
    %cst_143 = arith.constant dense<0.000000e+00> : vector<4x8xf32>
    %415 = vector.multi_reduction <add>, %414, %cst_143 [2] : vector<4x8x8xf32> to vector<4x8xf32>
    %416 = vector.shape_cast %415 : vector<4x8xf32> to vector<4x8x1xf32>
    %417 = tpu.reciprocal %416 {approx = true} : vector<4x8x1xf32> -> vector<4x8x1xf32>
    %418 = vector.broadcast %417 : vector<4x8x1xf32> to vector<4x8x8xf32>
    %419 = arith.mulf %414, %418 : vector<4x8x8xf32>
    %420 = arith.truncf %419 : vector<4x8x8xf32> to vector<4x8x8xbf16>
    "tpu.trace_start"() <{level = 10 : i32, message = "bqk,bkd->bqd"}> : () -> ()
    %cst_144 = arith.constant dense<0.000000e+00> : vector<4x8x8xf32>
    %421 = tpu.matmul %420, %405, %cst_144 {dimension_numbers = #tpu.dot_dimension_numbers<[2], [1], [1], [2], [0, 0, 0, 1, 1, 2], [0], [0]>} : vector<4x8x8xbf16>, vector<4x8x8xbf16>, vector<4x8x8xf32> -> vector<4x8x8xf32>
    "tpu.trace_stop"() : () -> ()
    %422 = vector.extract_strided_slice %421 {offsets = [0, 0, 0], sizes = [1, 8, 8], strides = [1, 1, 1]} : vector<4x8x8xf32> to vector<1x8x8xf32>
    %423 = vector.extract_strided_slice %421 {offsets = [1, 0, 0], sizes = [1, 8, 8], strides = [1, 1, 1]} : vector<4x8x8xf32> to vector<1x8x8xf32>
    %424 = vector.extract_strided_slice %421 {offsets = [2, 0, 0], sizes = [1, 8, 8], strides = [1, 1, 1]} : vector<4x8x8xf32> to vector<1x8x8xf32>
    %425 = vector.extract_strided_slice %421 {offsets = [3, 0, 0], sizes = [1, 8, 8], strides = [1, 1, 1]} : vector<4x8x8xf32> to vector<1x8x8xf32>
    %426 = tpu.concatenate %422, %423, %424, %425 in 2 : vector<1x8x8xf32>, vector<1x8x8xf32>, vector<1x8x8xf32>, vector<1x8x8xf32> -> vector<1x8x32xf32>
    %427 = vector.shape_cast %426 : vector<1x8x32xf32> to vector<8x32xf32>
    %428 = arith.truncf %427 : vector<8x32xf32> to vector<8x32xbf16>
    %cst_145 = arith.constant dense<0.000000e+00> : vector<8x32xf32>
    %429 = tpu.matmul %428, %351, %cst_145 {dimension_numbers = #tpu.dot_dimension_numbers<[1], [0], [0], [1], [0, 0, 1, 1], [], []>} : vector<8x32xbf16>, vector<32x32xbf16>, vector<8x32xf32> -> vector<8x32xf32>
    %430 = arith.addf %347, %429 : vector<8x32xf32>
    %cst_146 = arith.constant dense<0.000000e+00> : vector<8xf32>
    %431 = vector.multi_reduction <add>, %430, %cst_146 [1] : vector<8x32xf32> to vector<8xf32>
    %432 = vector.shape_cast %431 : vector<8xf32> to vector<8x1xf32>
    %cst_147 = arith.constant 3.200000e+01 : f32
    %433 = vector.broadcast %cst_147 : f32 to vector<8x1xf32>
    %434 = arith.divf %432, %433 : vector<8x1xf32>
    %435 = vector.broadcast %434 : vector<8x1xf32> to vector<8x32xf32>
    %436 = arith.subf %430, %435 : vector<8x32xf32>
    %437 = arith.mulf %436, %436 : vector<8x32xf32>
    %cst_148 = arith.constant dense<0.000000e+00> : vector<8xf32>
    %438 = vector.multi_reduction <add>, %437, %cst_148 [1] : vector<8x32xf32> to vector<8xf32>
    %439 = vector.shape_cast %438 : vector<8xf32> to vector<8x1xf32>
    %cst_149 = arith.constant 3.200000e+01 : f32
    %440 = vector.broadcast %cst_149 : f32 to vector<8x1xf32>
    %441 = arith.divf %439, %440 : vector<8x1xf32>
    %cst_150 = arith.constant 9.99999974E-6 : f32
    %442 = vector.broadcast %cst_150 : f32 to vector<8x1xf32>
    %443 = arith.addf %441, %442 : vector<8x1xf32>
    %444 = math.rsqrt %443 : vector<8x1xf32>
    %445 = vector.broadcast %444 : vector<8x1xf32> to vector<8x32xf32>
    %446 = arith.mulf %436, %445 : vector<8x32xf32>
    %447 = vector.broadcast %362 : vector<1x32xf32> to vector<8x32xf32>
    %448 = arith.mulf %446, %447 : vector<8x32xf32>
    %449 = vector.broadcast %363 : vector<1x32xf32> to vector<8x32xf32>
    %450 = arith.addf %448, %449 : vector<8x32xf32>
    %451 = arith.truncf %450 : vector<8x32xf32> to vector<8x32xbf16>
    %cst_151 = arith.constant dense<0.000000e+00> : vector<8x128xf32>
    %452 = tpu.matmul %451, %353, %cst_151 {dimension_numbers = #tpu.dot_dimension_numbers<[1], [0], [0], [1], [0, 0, 1, 1], [], []>} : vector<8x32xbf16>, vector<32x128xbf16>, vector<8x128xf32> -> vector<8x128xf32>
    %453 = vector.broadcast %359 : vector<1x128xf32> to vector<8x128xf32>
    %454 = arith.addf %452, %453 : vector<8x128xf32>
    %cst_152 = arith.constant 0.000000e+00 : f32
    %455 = vector.broadcast %cst_152 : f32 to vector<8x128xf32>
    %456 = arith.maximumf %454, %455 : vector<8x128xf32>
    %457 = arith.truncf %456 : vector<8x128xf32> to vector<8x128xbf16>
    %cst_153 = arith.constant dense<0.000000e+00> : vector<8x32xf32>
    %458 = tpu.matmul %457, %355, %cst_153 {dimension_numbers = #tpu.dot_dimension_numbers<[1], [0], [0], [1], [0, 0, 1, 1], [], []>} : vector<8x128xbf16>, vector<128x32xbf16>, vector<8x32xf32> -> vector<8x32xf32>
    %459 = arith.addf %430, %458 : vector<8x32xf32>
    %460 = vector.broadcast %364 : vector<1x32xf32> to vector<8x32xf32>
    %461 = arith.addf %459, %460 : vector<8x32xf32>
    %462 = vector.shape_cast %461 : vector<8x32xf32> to vector<1x8x32xf32>
    %c0_154 = arith.constant 0 : index
    %c0_155 = arith.constant 0 : index
    %c0_156 = arith.constant 0 : index
    %463 = vector.load %arg9[%c0_154, %c0_155, %c0_156] : memref<1x8x32xf32, #tpu.memory_space<vmem>>, vector<1x8x32xf32>
    tpu.vector_store %arg9[%c0_154, %c0_155, %c0_156], %462 {strides = array<i32>} : memref<1x8x32xf32, #tpu.memory_space<vmem>>, vector<1x8x32xf32>,
    return
  }
  func.func @transform_0(%arg0: i32) -> (i32, i32, i32) {
    %c0_i32 = arith.constant 0 : i32
    %c0_i32_0 = arith.constant 0 : i32
    %c0_i32_1 = arith.constant 0 : i32
    return %arg0, %c0_i32, %c0_i32_0 : i32, i32, i32
  }
  func.func @transform_1(%arg0: i32) -> (i32, i32) {
    %c0_i32 = arith.constant 0 : i32
    %c0_i32_0 = arith.constant 0 : i32
    %c0_i32_1 = arith.constant 0 : i32
    return %c0_i32, %c0_i32_0 : i32, i32
  }
  func.func @transform_2(%arg0: i32) -> (i32, i32, i32) {
    %c0_i32 = arith.constant 0 : i32
    %c0_i32_0 = arith.constant 0 : i32
    %c0_i32_1 = arith.constant 0 : i32
    %c0_i32_2 = arith.constant 0 : i32
    return %c0_i32, %c0_i32_0, %c0_i32_1 : i32, i32, i32
  }
  func.func @transform_3(%arg0: i32) -> (i32, i32, i32) {
    %c0_i32 = arith.constant 0 : i32
    %c0_i32_0 = arith.constant 0 : i32
    %c0_i32_1 = arith.constant 0 : i32
    %c0_i32_2 = arith.constant 0 : i32
    return %c0_i32, %c0_i32_0, %c0_i32_1 : i32, i32, i32
  }
  func.func @transform_4(%arg0: i32) -> (i32, i32, i32) {
    %c0_i32 = arith.constant 0 : i32
    %c0_i32_0 = arith.constant 0 : i32
    %c0_i32_1 = arith.constant 0 : i32
    %c0_i32_2 = arith.constant 0 : i32
    return %c0_i32, %c0_i32_0, %c0_i32_1 : i32, i32, i32
  }
  func.func @transform_5(%arg0: i32) -> (i32, i32, i32) {
    %c0_i32 = arith.constant 0 : i32
    %c0_i32_0 = arith.constant 0 : i32
    %c0_i32_1 = arith.constant 0 : i32
    %c0_i32_2 = arith.constant 0 : i32
    return %c0_i32, %c0_i32_0, %c0_i32_1 : i32, i32, i32
  }
  func.func @transform_6(%arg0: i32) -> (i32, i32, i32) {
    %c0_i32 = arith.constant 0 : i32
    %c0_i32_0 = arith.constant 0 : i32
    %c0_i32_1 = arith.constant 0 : i32
    %c0_i32_2 = arith.constant 0 : i32
    return %c0_i32, %c0_i32_0, %c0_i32_1 : i32, i32, i32
  }
  func.func @transform_7(%arg0: i32) -> (i32, i32, i32) {
    %c0_i32 = arith.constant 0 : i32
    %c0_i32_0 = arith.constant 0 : i32
    %c0_i32_1 = arith.constant 0 : i32
    %c0_i32_2 = arith.constant 0 : i32
    return %c0_i32, %c0_i32_0, %c0_i32_1 : i32, i32, i32
  }
  func.func @transform_8(%arg0: i32) -> (i32, i32, i32) {
    %c0_i32 = arith.constant 0 : i32
    %c0_i32_0 = arith.constant 0 : i32
    %c0_i32_1 = arith.constant 0 : i32
    return %arg0, %c0_i32, %c0_i32_0 : i32, i32, i32
  }
}

</mosaic_0001>

<bundles_post_ra>
// kernel: universal_transformer_forward.1
= control target key start
LH: loop header
LB: loop body
LE: loop exit
PB: predicated region body
PF: predicated region fallthrough
CT: control target
= control target key end

     0   :  { %s5531_s0 = inlined_call_operand.vmem [shape: f32[2,8,32], index: 0, kind: input, shape index: {}]   ;;  %s5532_s1 = inlined_call_operand.vmem [shape: f32[8,8], index: 1, kind: input, shape index: {}]   ;;  %s5533_s2 = inlined_call_operand.vmem [shape: bf16[2,32,96], index: 2, kind: input, shape index: {}]   ;;  %s5534_s3 = inlined_call_operand.vmem [shape: bf16[2,32,32], index: 3, kind: input, shape index: {}]   ;;  %s5535_s4 = inlined_call_operand.vmem [shape: bf16[2,32,128], index: 4, kind: input, shape index: {}]   ;;  %s5536_s5 = inlined_call_operand.vmem [shape: bf16[2,128,32], index: 5, kind: input, shape index: {}]   ;;  %s5537_s6 = inlined_call_operand.vmem [shape: f32[2,8,32], index: 6, kind: input, shape index: {}]   ;;  %s5538_s7 = inlined_call_operand.vmem [shape: f32[2,1,128], index: 7, kind: input, shape index: {}]   ;;  %s5539_s8 = inlined_call_operand.hbm [shape: f32[2,8,32], index: 8, kind: output, shape index: {}]  }
   0x1   :  { %5554 = sst [smem:[#allocation5_spill]] %s5531_s0 }
   0x2   :  { %13 = vsyncpa [#allocation3], 0 }
   0x3   :  { %15 = vsyncpa [#allocation3 + $0x1], 0  ;;  %s4652_s27 = smov 0   ;;  %s4654_s28 = smov 0  }
   0x4   :  { %s4656_s29 = smov 0   ;;  %s4658_s30 = smov 0  }
   0x5 LB: > { %s4673_s9 = sadd.s32 4294967295, %s4594_s30   ;;  %s3670_s10 = sadd.s32 4294967294, %s4594_s30   ;;  %s4594_s30 = sphi %s4658_s30, %s5569_s30   ;;  %s4590_s29 = sphi %s4656_s29, %s5568_s29   ;;  %s4586_s28 = sphi %s4654_s28, %s5567_s28   ;;  %s4582_s27 = sphi %s4652_s27, %s5566_s27  }
   0x6   : > { %s4677_s11 = sadd.s32 1, %s4594_s30   ;;  %s201_s12 = sadd.s32 1, %s4590_s29 }
   0x7   : > { %s198_s13 = ssub.s32 %s4594_s30, %s4677_s11  ;;  %p211_p0 = scmp.ne.s32.totalorder %s4590_s29, %s4586_s28 }
   0x8   : > { %p199_p1 = scmp.eq.s32.totalorder %s198_s13, 0  ;;  %p212_p2 = scmp.eq.s32.totalorder %s4673_s9, 1 }
   0x9   : > { %p217_p3 = scmp.ne.s32.totalorder %s4586_s28, %s4582_s27  ;;  %p218_p4 = scmp.eq.s32.totalorder %s3670_s10, 1 }
   0xa   : > { %s4688_s14 = scalar_select %p199_p1, %s4590_s29, %s201_s12  }
   0xb   : > { %p4690_p5 = por %p212_p2, %p211_p0  ;;  %p4694_p6 = por %p218_p4, %p217_p3 }
   0xc   : > { %p3673_p7 = scmp.ge.s32.totalorder %s4594_s30, 1  ;;  %p264_p8 = scmp.lt.s32.totalorder %s4594_s30, 3 }
   0xe   : > { %p265_p9 = pnand %p3673_p7, %p264_p8 }
   0xf   : > { %p297_p10 = scmp.lt.s32.totalorder (!%p265_p9), %s4673_s9, 1  ;;  %s5557_s0 = sld [smem:[#allocation5_spill]] (!%p265_p9) }
  0x10   : > { %268 = sbr.rel (%p265_p9) target bundleno = 9950 (0x26de), region = 52  ;;  %s5550_s12 = smov (!%p265_p9), 104  }
  0x11   : > { %s5552_s13 = smov (!%p265_p9), 120   ;;  %s5544_s26 = smov (!%p265_p9), 8  }
  0x12   : > { %s5540_s10 = smov (!%p265_p9), 24   ;;  %s5542_s19 = smov (!%p265_p9), 16  }
  0x13   : > { %s5558_s20 = smov (!%p265_p9), 8   ;;  %s5559_s22 = smov (!%p265_p9), 16  }
  0x14   : > { %s5560_s23 = smov (!%p265_p9), 24   ;;  %s5563_s24 = smov (!%p265_p9), 64  }
  0x15   : > { %s298_s17 = scalar_select %p297_p10, %s4673_s9, 1  ;;  %vm334_vm0 = vcmask 261120   ;;  %v4397_v7 = vld [vmem:[%s5533_s2 + $0x8] sm:$0xff]   ;;  %v4596_v8 = vmov 0.0   ;;  %vm4597_vm1 = vmmov 0   ;;  %v4398_v9 = vld [vmem:[%s5533_s2] sm:$0xff]   ;;  %v349_v13 = vlaneseq }
  0x16   : > { %3980 = vmatprep.subr.bf16.mxu1 %v4596_v8  ;;  %3984 = vmatprep.mubr.msk.bf16.mxu1 %vm4597_vm1, %v4596_v8  ;;  %v4733_v16 = vld [vmem:[%s5537_s6] sm:$0xff]  ;;  %vm432_vm2 = vcmask 64512   ;;  %vm687_vm3 = vcmask 1043456   ;;  %vm888_vm4 = vcmask 130048   ;;  %vm890_vm5 = vcmask 195584  }
  0x17   : > { %s3675_s18 = sshll.u32 %s298_s17, 3  ;;  %3981 = vmatpush3.bf16.msra.mxu1 %v4397_v7  ;;  %4006 = vmatprep.subr.bf16.mxu0 %v4596_v8  ;;  %v4725_v14 = vshrl.u32 %v349_v13, 7  ;;  %s5553_s17 = smov 112   ;;  %v4791_v45 = vld [vmem:[%s5532_s1] sm:$0xff] }
  0x18   : > { %s300_s21 = scalar_lea.vmem %s5557_s0, %s3675_s18  ;;  %3982 = vmatprep.subr.bf16.mxu1 %v4596_v8  ;;  %4008 = vmatprep.mubr.msk.bf16.mxu0 %vm4597_vm1, %v4596_v8  ;;  %s5548_s18 = smov 96  }
  0x19   : > { %v4705_v0 = vld [vmem:[%s300_s21] sm:$0xff]  ;;  %v4728_v15 = vsub.s32 0, %v4725_v14  ;;  %v4736_v17 = vsub.s32 1, %v4725_v14  ;;  %s5546_s21 = smov 64   ;;  %s5565_s0 = smov 120  }
  0x1a   : > { %v335_v1 = vsel %vm334_vm0, %v4705_v0, 0.0 }
  0x1b   : > { %336 = vadd.xlane.f32.xlu0 %v335_v1  ;;  %3983 = vmatpush3.bf16.msra.mxu1 %v4398_v9  ;;  %v352_v18 = vrot.slane %v4733_v16, %v4728_v15  ;;  %v357_v21 = vrot.slane %v4733_v16, %v4736_v17 }
  0x1c   : > { %3988 = vmatprep.subr.bf16.mxu1 %v4596_v8 }
  0xa4   : > { %v337_v2 = vpop.xlane.xlu0 %336 }
  0xa5   : > { %v339_v3 = vmul.f32 0.03125, %v337_v2 }
  0xa7   : > { %v340_v4 = vsub.f32 %v4705_v0, %v339_v3 }
  0xa9   : > { %v341_v5 = vmul.f32 %v340_v4, %v340_v4 }
  0xab   : > { %v342_v6 = vsel %vm334_vm0, %v341_v5, 0.0 }
  0xac   : > { %343 = vadd.xlane.f32.xlu0 %v342_v6 }
 0x135   : > { %v344_v10 = vpop.xlane.xlu0 %343 }
 0x136   : > { %v345_v11 = vmul.f32 0.03125, %v344_v10 }
 0x138   : > { %v346_v12 = vadd.f32 1e-05, %v345_v11 }
 0x13a   : > { %4453 = vrsqrt.f32 %v346_v12 }
 0x147   : > { %v4454_v19 = vpop.eup %4453 }
 0x148   : > { %v348_v20 = vmul.f32 %v4454_v19, %v340_v4 }
 0x14a   : > { %v353_v22 = vmul.f32 %v352_v18, %v348_v20 }
 0x14c   : > { %v358_v23 = vadd.f32 %v357_v21, %v353_v22 }
 0x14e   : > { %v359_v24 = vpack.c.bf16 %v358_v23, %v358_v23 }
 0x150   : > { %3985 = vmatmul.mubr.msk.bf16.vlgmr.msra.gmra.mxu1 %vm334_vm0, %v359_v24 }
 0x151   : > { %3990 = vmatprep.mubr.msk.bf16.mxu1 %vm4597_vm1, %v4596_v8 }
 0x210   : > { %v409_v25 = vpop.f32.mrf.mxu1 }
 0x211   : > { %422 = vrot.lane.b32.xlu0 %v409_v25, %s5550_s12  ;;  %416 = vrot.lane.b32.xlu1 %v409_v25, %s5552_s13  ;;  %v4748_v29 = vpack.c.bf16 %v409_v25, %v409_v25 }
 0x212   : > { %v3986_v26 = vpop.f32.mrf.mxu1 }
 0x214   : > { %v412_v27 = vpop.f32.mrf.mxu1 }
 0x215   : > { %419 = vrot.lane.b32.xlu1 %v409_v25, %s5553_s17 }
 0x216   : > { %v3987_v28 = vpop.f32.mrf.mxu1 }
 0x219   : > { %430 = vrot.lane.b32.xlu1 %v4748_v29, %s5548_s18 }
 0x283   : > { %v417_v30 = vpop.permute.xlu1 %416  ;;  %v423_v34 = vpop.permute.xlu0 %422 }
 0x284   : > { %v4752_v31 = vpack.c.bf16 %v417_v30, %v417_v30  ;;  %v4760_v36 = vpack.c.bf16 %v423_v34, %v423_v34 }
 0x286   : > { %480 = vrot.lane.b32.xlu1 %v4752_v31, %s5548_s18 }
 0x287   : > { %v420_v32 = vpop.permute.xlu1 %419 }
 0x288   : > { %v4756_v33 = vpack.c.bf16 %v420_v32, %v420_v32 }
 0x28a   : > { %529 = vrot.lane.b32.xlu1 %v4756_v33, %s5548_s18 }
 0x28b   : > { %v431_v35 = vpop.permute.xlu1 %430 }
 0x28c   : > { %v437_v37 = vsel %vm432_vm2, %v431_v35, 0 }
 0x28d   : > { %3989 = vmatpush3.bf16.xpose.msra.mxu1 %v437_v37 }
 0x28e   : > { %578 = vrot.lane.b32.xlu1 %v4760_v36, %s5548_s18  ;;  %3994 = vmatprep.subr.bf16.mxu1 %v4596_v8 }
 0x294   : > { %3991 = vmatmul.mubr.msk.bf16.vlgmr.msra.gmra.mxu1 %vm432_vm2, %v4748_v29 }
 0x295   : > { %3996 = vmatprep.mubr.msk.bf16.mxu1 %vm4597_vm1, %v4596_v8 }
 0x2f8   : > { %v481_v38 = vpop.permute.xlu1 %480 }
 0x2f9   : > { %v486_v39 = vsel %vm432_vm2, %v481_v38, 0 }
 0x2fa   : > { %3995 = vmatpush3.bf16.xpose.msra.mxu1 %v486_v39 }
 0x2fb   : > { %4000 = vmatprep.subr.bf16.mxu1 %v4596_v8 }
 0x2fc   : > { %v530_v40 = vpop.permute.xlu1 %529 }
 0x2fd   : > { %v535_v42 = vsel %vm432_vm2, %v530_v40, 0 }
 0x300   : > { %v579_v41 = vpop.permute.xlu1 %578 }
 0x301   : > { %3997 = vmatmul.mubr.msk.bf16.vlgmr.msra.gmra.mxu1 %vm432_vm2, %v4752_v31  ;;  %v584_v43 = vsel %vm432_vm2, %v579_v41, 0 }
 0x302   : > { %4001 = vmatpush3.bf16.xpose.msra.mxu1 %v535_v42  ;;  %4007 = vmatpush3.bf16.xpose.msra.mxu0 %v584_v43 }
 0x303   : > { %4002 = vmatprep.mubr.msk.bf16.mxu1 %vm4597_vm1, %v4596_v8  ;;  %4012 = vmatprep.subr.bf16.mxu1 %v4596_v8 }
 0x304   : > { %4018 = vmatprep.subr.bf16.mxu0 %v4596_v8 }
 0x309   : > { %4003 = vmatmul.mubr.msk.bf16.vlgmr.msra.gmra.mxu1 %vm432_vm2, %v4756_v33  ;;  %4009 = vmatmul.mubr.msk.bf16.vlgmr.msra.gmra.mxu0 %vm432_vm2, %v4760_v36 }
 0x30a   : > { %4014 = vmatprep.mubr.msk.bf16.mxu1 %vm4597_vm1, %v4596_v8  ;;  %4020 = vmatprep.mubr.msk.bf16.mxu0 %vm4597_vm1, %v4596_v8 }
 0x354   : > { %v473_v44 = vpop.f32.mrf.mxu1 }
 0x355   : > { %v626_v46 = vmul.f32 0.35355338, %v473_v44 }
 0x356   : > { %v3992_v47 = vpop.f32.mrf.mxu1 }
 0x357   : > { %v630_v48 = vadd.f32 %v626_v46, %v4791_v45 }
 0x358   : > { %v476_v49 = vpop.f32.mrf.mxu1 }
 0x359   : > { %v634_v50 = vsel %vm432_vm2, %v630_v48, -inf }
 0x35a   : > { %635 = vmax.xlane.f32.xlu1 %v634_v50  ;;  %v3993_v51 = vpop.f32.mrf.mxu1 }
 0x3c1   : > { %v522_v52 = vpop.f32.mrf.mxu1 }
 0x3c2   : > { %v627_v53 = vmul.f32 0.35355338, %v522_v52 }
 0x3c3   : > { %v3998_v54 = vpop.f32.mrf.mxu1 }
 0x3c4   : > { %v631_v55 = vadd.f32 %v627_v53, %v4791_v45 }
 0x3c5   : > { %v525_v56 = vpop.f32.mrf.mxu1 }
 0x3c6   : > { %v637_v57 = vsel %vm432_vm2, %v631_v55, -inf }
 0x3c7   : > { %638 = vmax.xlane.f32.xlu0 %v637_v57  ;;  %v3999_v58 = vpop.f32.mrf.mxu1 }
 0x3c9   : > { %v571_v59 = vpop.f32.mrf.mxu1  ;;  %v620_v60 = vpop.f32.mrf.mxu0 }
 0x3ca   : > { %v628_v61 = vmul.f32 0.35355338, %v571_v59  ;;  %v629_v62 = vmul.f32 0.35355338, %v620_v60 }
 0x3cb   : > { %v4004_v63 = vpop.f32.mrf.mxu1  ;;  %v4010_v1 = vpop.f32.mrf.mxu0 }
 0x3cc   : > { %v633_v2 = vadd.f32 %v629_v62, %v4791_v45  ;;  %v632_v3 = vadd.f32 %v628_v61, %v4791_v45  ;;  %v4399_v1 = vld [vmem:[%s5534_s3 + $0x8] sm:$0xff]  }
 0x3cd   : > { %v574_v4 = vpop.f32.mrf.mxu1  ;;  %v623_v5 = vpop.f32.mrf.mxu0 }
 0x3ce   : > { %v643_v6 = vsel %vm432_vm2, %v633_v2, -inf  ;;  %v640_v7 = vsel %vm432_vm2, %v632_v3, -inf }
 0x3cf   : > { %v4011_v9 = vpop.f32.mrf.mxu0  ;;  %644 = vmax.xlane.f32.xlu0 %v643_v6  ;;  %641 = vmax.xlane.f32.xlu1 %v640_v7  ;;  %v4005_v10 = vpop.f32.mrf.mxu1 }
 0x3e0   : > { %682 = vrot.lane.b32.xlu1 %v4748_v29, %s5546_s21 }
 0x3e3   : > { %v636_v11 = vpop.xlane.xlu1 %635 }
 0x3e4   : > { %v646_v12 = vsub.f32 %v630_v48, %v636_v11 }
 0x3e6   : > { %v650_v13 = vmul.f32 1.442695, %v646_v12 }
 0x3e8   : > { %4455 = vpow2.f32 %v650_v13 }
 0x3f5   : > { %v4456_v18 = vpop.eup %4455 }
 0x3f6   : > { %v658_v19 = vsel %vm432_vm2, %v4456_v18, 0.0 }
 0x404   : > { %659 = vadd.xlane.f32.xlu1 %v658_v19 }
 0x415   : > { %779 = vrot.lane.b32.xlu1 %v4756_v33, %s5546_s21 }
 0x450   : > { %v639_v20 = vpop.xlane.xlu0 %638 }
 0x451   : > { %v647_v21 = vsub.f32 %v631_v55, %v639_v20 }
 0x453   : > { %v652_v22 = vmul.f32 1.442695, %v647_v21 }
 0x455   : > { %4457 = vpow2.f32 %v652_v22 }
 0x458   : > { %v645_v23 = vpop.xlane.xlu0 %644  ;;  %v642_v24 = vpop.xlane.xlu1 %641 }
 0x459   : > { %v649_v25 = vsub.f32 %v633_v2, %v645_v23  ;;  %v648_v26 = vsub.f32 %v632_v3, %v642_v24  ;;  %v4400_v2 = vld [vmem:[%s5534_s3] sm:$0xff]  }
 0x45b   : > { %v656_v27 = vmul.f32 1.442695, %v649_v25  ;;  %v654_v28 = vmul.f32 1.442695, %v648_v26 }
 0x45c   : > { %v683_v29 = vpop.permute.xlu1 %682 }
 0x45d   : > { %4459 = vpow2.f32 %v656_v27  ;;  %v689_v30 = vsel %vm687_vm3, %v683_v29, 0 }
 0x45e   : > { %4461 = vpow2.f32 %v654_v28  ;;  %4013 = vmatpush3.bf16.msra.mxu1 %v689_v30 }
 0x45f   : > { %4024 = vmatprep.subr.bf16.mxu1 %v4596_v8 }
 0x462   : > { %v4458_v32 = vpop.eup %4457 }
 0x463   : > { %v661_v33 = vsel %vm432_vm2, %v4458_v32, 0.0 }
 0x464   : > { %662 = vadd.xlane.f32.xlu0 %v661_v33 }
 0x46a   : > { %v4460_v34 = vpop.eup %4459 }
 0x46b   : > { %v4462_v35 = vpop.eup %4461  ;;  %v667_v37 = vsel %vm432_vm2, %v4460_v34, 0.0 }
 0x46c   : > { %668 = vadd.xlane.f32.xlu0 %v667_v37  ;;  %v664_v38 = vsel %vm432_vm2, %v4462_v35, 0.0 }
 0x46d   : > { %665 = vadd.xlane.f32.xlu1 %v664_v38 }
 0x47e   : > { %827 = vrot.lane.b32.xlu1 %v4760_v36, %s5546_s21 }
 0x482   : > { %731 = vrot.lane.b32.xlu0 %v4752_v31, %s5546_s21 }
 0x48d   : > { %v660_v39 = vpop.xlane.xlu1 %659 }
 0x48e   : > { %4463 = vrcp.f32 %v660_v39 }
 0x491   : > { %v780_v42 = vpop.permute.xlu1 %779 }
 0x492   : > { %v785_v44 = vsel %vm687_vm3, %v780_v42, 0  ;;  %v4404_v42 = vld [vmem:[%s5536_s5 + $0x30] sm:$0xff]  }
 0x49b   : > { %v4464_v40 = vpop.eup %4463 }
 0x49c   : > { %v674_v41 = vmul.f32 %v4464_v40, %v4456_v18  ;;  %v4402_v40 = vld [vmem:[%s5535_s4] sm:$0xff]  }
 0x49e   : > { %v678_v43 = vpack.c.bf16 %v674_v41, %v674_v41  ;;  %v4403_v41 = vld [vmem:[%s5536_s5 + $0x38] sm:$0xff]  }
 0x4a0   : > { %4015 = vmatmul.mubr.msk.bf16.vlgmr.msra.gmra.mxu1 %vm432_vm2, %v678_v43  ;;  %v4405_v43 = vld [vmem:[%s5536_s5 + $0x28] sm:$0xff]  }
 0x4a1   : > { %4025 = vmatpush3.bf16.msra.mxu1 %v785_v44  ;;  %4026 = vmatprep.mubr.msk.bf16.mxu1 %vm4597_vm1, %v4596_v8  ;;  %v4406_v44 = vld [vmem:[%s5536_s5 + $0x20] sm:$0xff]  }
 0x4a2   : > { %4036 = vmatprep.subr.bf16.mxu1 %v4596_v8 }
 0x4ed   : > { %v663_v36 = vpop.xlane.xlu0 %662 }
 0x4ee   : > { %4465 = vrcp.f32 %v663_v36  ;;  %v4407_v36 = vld [vmem:[%s5536_s5 + $0x18] sm:$0xff]  }
 0x4f5   : > { %v669_v46 = vpop.xlane.xlu0 %668 }
 0x4f6   : > { %4467 = vrcp.f32 %v669_v46  ;;  %v666_v31 = vpop.xlane.xlu1 %665  ;;  %v4408_v46 = vld [vmem:[%s5536_s5 + $0x10] sm:$0xff]  }
 0x4f7   : > { %4469 = vrcp.f32 %v666_v31 }
 0x4f9   : > { %v732_v47 = vpop.permute.xlu0 %731 }
 0x4fa   : > { %v737_v48 = vsel %vm687_vm3, %v732_v47, 0  ;;  %v828_v51 = vpop.permute.xlu1 %827 }
 0x4fb   : > { %v4466_v49 = vpop.eup %4465  ;;  %4019 = vmatpush3.bf16.msra.mxu0 %v737_v48  ;;  %v833_v53 = vsel %vm687_vm3, %v828_v51, 0 }
 0x4fc   : > { %4030 = vmatprep.subr.bf16.mxu0 %v4596_v8  ;;  %v675_v50 = vmul.f32 %v4466_v49, %v4458_v32  ;;  %v4890_v49 = vsub.s32 2, %v4725_v14 }
 0x4fe   : > { %v679_v52 = vpack.c.bf16 %v675_v50, %v675_v50  ;;  %v4893_v50 = vsub.s32 3, %v4725_v14  ;;  %v965_v51 = vrot.slane %v4733_v16, %v4890_v49 }
 0x500   : > { %4021 = vmatmul.mubr.msk.bf16.vlgmr.msra.gmra.mxu0 %vm432_vm2, %v679_v52 }
 0x501   : > { %4031 = vmatpush3.bf16.msra.mxu0 %v833_v53  ;;  %4032 = vmatprep.mubr.msk.bf16.mxu0 %vm4597_vm1, %v4596_v8 }
 0x502   : > { %4044 = vmatprep.subr.bf16.mxu0 %v4596_v8 }
 0x503   : > { %v4468_v54 = vpop.eup %4467 }
 0x504   : > { %v4470_v55 = vpop.eup %4469  ;;  %v677_v56 = vmul.f32 %v4468_v54, %v4460_v34  ;;  %v970_v54 = vrot.slane %v4733_v16, %v4893_v50 }
 0x505   : > { %v676_v57 = vmul.f32 %v4470_v55, %v4462_v35 }
 0x506   : > { %v681_v58 = vpack.c.bf16 %v677_v56, %v677_v56 }
 0x507   : > { %v680_v59 = vpack.c.bf16 %v676_v57, %v676_v57 }
 0x508   : > { %4033 = vmatmul.mubr.msk.bf16.vlgmr.msra.gmra.mxu0 %vm432_vm2, %v681_v58  ;;  %v4409_v58 = vld [vmem:[%s5536_s5 + $0x8] sm:$0xff]  }
 0x509   : > { %4027 = vmatmul.mubr.msk.bf16.vlgmr.msra.gmra.mxu1 %vm432_vm2, %v680_v59  ;;  %4048 = vmatprep.mubr.msk.bf16.mxu0 %vm4597_vm1, %v4596_v8  ;;  %v4410_v59 = vld [vmem:[%s5536_s5] sm:$0xff]  }
 0x50a   : > { %4040 = vmatprep.mubr.msk.bf16.mxu1 %vm4597_vm1, %v4596_v8  ;;  %4037 = vmatpush3.bf16.msra.mxu1 %v4399_v1 }
 0x50b   : > { %4038 = vmatprep.subr.bf16.mxu1 %v4596_v8 }
 0x50e   : > { %4039 = vmatpush3.bf16.msra.mxu1 %v4400_v2 }
 0x50f   : > { %4052 = vmatprep.subr.bf16.mxu1 %v4596_v8 }
 0x560   : > { %v725_v60 = vpop.f32.mrf.mxu1 }
 0x562   : > { %v4016_v61 = vpop.f32.mrf.mxu1 }
 0x564   : > { %v728_v62 = vpop.f32.mrf.mxu1 }
 0x566   : > { %v4017_v63 = vpop.f32.mrf.mxu1 }
 0x5c0   : > { %v773_v3 = vpop.f32.mrf.mxu0 }
 0x5c1   : > { %876 = vrot.lane.b32.xlu0 %v773_v3, %s5544_s26 }
 0x5c2   : > { %v4022_v4 = vpop.f32.mrf.mxu0 }
 0x5c4   : > { %v776_v5 = vpop.f32.mrf.mxu0 }
 0x5c5   : > { %v4916_v5 = vsub.s32 4, %v4725_v14 }
 0x5c6   : > { %v4023_v6 = vpop.f32.mrf.mxu0 }
 0x5c7   : > { %v1128_v6 = vrot.slane %v4733_v16, %v4916_v5  ;;  %v4411_v16 = vld [vmem:[%s5533_s2 + $0x18] sm:$0xff]  }
 0x5c8   : > { %v869_v7 = vpop.f32.mrf.mxu0 }
 0x5c9   : > { %v821_v9 = vpop.f32.mrf.mxu1  ;;  %884 = vrot.lane.b32.xlu0 %v869_v7, %s5540_s10 }
 0x5ca   : > { %880 = vrot.lane.b32.xlu1 %v821_v9, %s5542_s19  ;;  %v4034_v10 = vpop.f32.mrf.mxu0 }
 0x5cb   : > { %v4028_v11 = vpop.f32.mrf.mxu1 }
 0x5cc   : > { %v872_v12 = vpop.f32.mrf.mxu0 }
 0x5cd   : > { %v824_v13 = vpop.f32.mrf.mxu1 }
 0x5ce   : > { %v4035_v18 = vpop.f32.mrf.mxu0 }
 0x5cf   : > { %v4029_v19 = vpop.f32.mrf.mxu1 }
 0x633   : > { %v877_v20 = vpop.permute.xlu0 %876 }
 0x634   : > { %v887_v22 = vsel %vm432_vm2, %v725_v60, %v877_v20  ;;  %v3690_v60 = vld [vmem:[%s5538_s7] ss:$0 sm:$0xff] }
 0x63b   : > { %v885_v21 = vpop.permute.xlu0 %884 }
 0x63c   : > { %v881_v23 = vpop.permute.xlu1 %880 }
 0x63d   : > { %v889_v24 = vsel %vm888_vm4, %v887_v22, %v881_v23  ;;  %v4412_v23 = vld [vmem:[%s5533_s2 + $0x10] sm:$0xff]  }
 0x63e   : > { %v891_v25 = vsel %vm890_vm5, %v889_v24, %v885_v21 }
 0x63f   : > { %v892_v26 = vpack.c.bf16 %v891_v25, %v891_v25 }
 0x641   : > { %4041 = vmatmul.mubr.msk.bf16.vlgmr.msra.gmra.mxu1 %vm334_vm0, %v892_v26 }
 0x642   : > { %4068 = vmatprep.mubr.msk.bf16.mxu1 %vm4597_vm1, %v4596_v8  ;;  %4053 = vmatpush3.bf16.msra.mxu1 %v4403_v41 }
 0x643   : > { %4054 = vmatprep.subr.bf16.mxu1 %v4596_v8 }
 0x646   : > { %4055 = vmatpush3.bf16.msra.mxu1 %v4404_v42 }
 0x647   : > { %4056 = vmatprep.subr.bf16.mxu1 %v4596_v8 }
 0x64a   : > { %4057 = vmatpush3.bf16.msra.mxu1 %v4405_v43 }
 0x64b   : > { %4058 = vmatprep.subr.bf16.mxu1 %v4596_v8 }
 0x64e   : > { %4059 = vmatpush3.bf16.msra.mxu1 %v4406_v44 }
 0x64f   : > { %4060 = vmatprep.subr.bf16.mxu1 %v4596_v8 }
 0x652   : > { %4061 = vmatpush3.bf16.msra.mxu1 %v4407_v36 }
 0x653   : > { %4062 = vmatprep.subr.bf16.mxu1 %v4596_v8 }
 0x656   : > { %4063 = vmatpush3.bf16.msra.mxu1 %v4408_v46 }
 0x657   : > { %4064 = vmatprep.subr.bf16.mxu1 %v4596_v8 }
 0x65a   : > { %4065 = vmatpush3.bf16.msra.mxu1 %v4409_v58 }
 0x65b   : > { %4066 = vmatprep.subr.bf16.mxu1 %v4596_v8 }
 0x65e   : > { %4067 = vmatpush3.bf16.msra.mxu1 %v4410_v59 }
 0x65f   : > { %4098 = vmatprep.subr.bf16.mxu1 %v4596_v8 }
 0x701   : > { %v942_v27 = vpop.f32.mrf.mxu1 }
 0x702   : > { %v4851_v28 = vadd.f32 %v942_v27, %v4705_v0  ;;  %v4401_v0 = vld [vmem:[%s5535_s4 + $0x8] sm:$0xff]  }
 0x703   : > { %v4042_v29 = vpop.f32.mrf.mxu1  ;;  %4045 = vmatpush3.bf16.msra.mxu0 %v4401_v0  ;;  %v4938_v27 = vld [vmem:[%s5537_s6 + $0x8] sm:$0xff] }
 0x704   : > { %v949_v30 = vsel %vm334_vm0, %v4851_v28, 0.0  ;;  %4046 = vmatprep.subr.bf16.mxu0 %v4596_v8 }
 0x705   : > { %950 = vadd.xlane.f32.xlu1 %v949_v30  ;;  %v945_v32 = vpop.f32.mrf.mxu1 }
 0x706   : > { %v1187_v32 = vrot.slane %v4938_v27, %v4736_v17 }
 0x707   : > { %v4043_v33 = vpop.f32.mrf.mxu1  ;;  %4047 = vmatpush3.bf16.msra.mxu0 %v4402_v40 }
 0x708   : > { %4072 = vmatprep.subr.bf16.mxu0 %v4596_v8 }
 0x78e   : > { %v951_v34 = vpop.xlane.xlu1 %950 }
 0x78f   : > { %v952_v35 = vmul.f32 0.03125, %v951_v34 }
 0x791   : > { %v953_v37 = vsub.f32 %v4851_v28, %v952_v35 }
 0x793   : > { %v954_v38 = vmul.f32 %v953_v37, %v953_v37 }
 0x795   : > { %v955_v39 = vsel %vm334_vm0, %v954_v38, 0.0 }
 0x796   : > { %956 = vadd.xlane.f32.xlu0 %v955_v39 }
 0x81f   : > { %v957_v31 = vpop.xlane.xlu0 %956 }
 0x820   : > { %v958_v47 = vmul.f32 0.03125, %v957_v31 }
 0x822   : > { %v959_v48 = vadd.f32 1e-05, %v958_v47 }
 0x824   : > { %4471 = vrsqrt.f32 %v959_v48 }
 0x831   : > { %v4472_v52 = vpop.eup %4471 }
 0x832   : > { %v961_v53 = vmul.f32 %v4472_v52, %v953_v37 }
 0x834   : > { %v966_v55 = vmul.f32 %v965_v51, %v961_v53 }
 0x836   : > { %v971_v56 = vadd.f32 %v970_v54, %v966_v55 }
 0x838   : > { %v972_v57 = vpack.c.bf16 %v971_v56, %v971_v56 }
 0x83a   : > { %4049 = vmatmul.mubr.msk.bf16.vlgmr.msra.gmra.mxu0 %vm334_vm0, %v972_v57 }
 0x83b   : > { %4076 = vmatprep.mubr.msk.bf16.mxu0 %vm4597_vm1, %v4596_v8  ;;  %4073 = vmatpush3.bf16.msra.mxu0 %v4411_v16 }
 0x83c   : > { %4074 = vmatprep.subr.bf16.mxu0 %v4596_v8 }
 0x83f   : > { %4075 = vmatpush3.bf16.msra.mxu0 %v4412_v23 }
 0x840   : > { %4080 = vmatprep.subr.bf16.mxu0 %v4596_v8 }
 0x8fa   : > { %v1028_v61 = vpop.f32.mrf.mxu0 }
 0x8fb   : > { %v1029_v62 = vadd.f32 %v3690_v60, %v1028_v61 }
 0x8fc   : > { %v4050_v63 = vpop.f32.mrf.mxu0 }
 0x8fd   : > { %v1034_v1 = vmax.f32 %v1029_v62, 0.0 }
 0x8fe   : > { %v1031_v2 = vpop.f32.mrf.mxu0 }
 0x8ff   : > { %v1035_v3 = vpack.c.bf16 %v1034_v1, %v1034_v1 }
 0x900   : > { %v4051_v4 = vpop.f32.mrf.mxu0 }
 0x901   : > { %4069 = vmatmul.mubr.bf16.vlgmr.msra.gmra.mxu1 %v1035_v3 }
 0x902   : > { %4100 = vmatprep.mubr.msk.bf16.mxu1 %vm4597_vm1, %v4596_v8 }
 0x9c1   : > { %v1118_v7 = vpop.f32.mrf.mxu1 }
 0x9c2   : > { %v1124_v9 = vadd.f32 %v1118_v7, %v4851_v28  ;;  %v1182_v28 = vrot.slane %v4938_v27, %v4728_v15 }
 0x9c3   : > { %v4070_v10 = vpop.f32.mrf.mxu1 }
 0x9c4   : > { %v4921_v11 = vadd.f32 %v1128_v6, %v1124_v9 }
 0x9c5   : > { %v1121_v12 = vpop.f32.mrf.mxu1 }
 0x9c6   : > { %v1166_v13 = vsel %vm334_vm0, %v4921_v11, 0.0 }
 0x9c7   : > { %1167 = vadd.xlane.f32.xlu0 %v1166_v13  ;;  %v4071_v18 = vpop.f32.mrf.mxu1 }
 0xa50   : > { %v1168_v19 = vpop.xlane.xlu0 %1167 }
 0xa51   : > { %v1169_v20 = vmul.f32 0.03125, %v1168_v19 }
 0xa53   : > { %v1170_v14 = vsub.f32 %v4921_v11, %v1169_v20 }
 0xa55   : > { %v1171_v21 = vmul.f32 %v1170_v14, %v1170_v14 }
 0xa57   : > { %v1172_v22 = vsel %vm334_vm0, %v1171_v21, 0.0 }
 0xa58   : > { %1173 = vadd.xlane.f32.xlu1 %v1172_v22 }
 0xae1   : > { %v1174_v24 = vpop.xlane.xlu1 %1173 }
 0xae2   : > { %v1175_v25 = vmul.f32 0.03125, %v1174_v24 }
 0xae4   : > { %v1176_v26 = vadd.f32 1e-05, %v1175_v25 }
 0xae6   : > { %4473 = vrsqrt.f32 %v1176_v26 }
 0xaf3   : > { %v4474_v29 = vpop.eup %4473 }
 0xaf4   : > { %v1178_v30 = vmul.f32 %v4474_v29, %v1170_v14 }
 0xaf6   : > { %v1183_v33 = vmul.f32 %v1182_v28, %v1178_v30 }
 0xaf8   : > { %v1188_v34 = vadd.f32 %v1187_v32, %v1183_v33 }
 0xafa   : > { %v1189_v35 = vpack.c.bf16 %v1188_v34, %v1188_v34 }
 0xafc   : > { %4077 = vmatmul.mubr.msk.bf16.vlgmr.msra.gmra.mxu0 %vm334_vm0, %v1189_v35 }
 0xafd   : > { %4082 = vmatprep.mubr.msk.bf16.mxu0 %vm4597_vm1, %v4596_v8 }
 0xbbc   : > { %v1239_v37 = vpop.f32.mrf.mxu0 }
 0xbbd   : > { %1249 = vrot.lane.b32.xlu1 %v1239_v37, %s5553_s17  ;;  %1246 = vrot.lane.b32.xlu0 %v1239_v37, %s5552_s13  ;;  %v4949_v39 = vpack.c.bf16 %v1239_v37, %v1239_v37 }
 0xbbe   : > { %v4078_v38 = vpop.f32.mrf.mxu0 }
 0xbc0   : > { %v1242_v0 = vpop.f32.mrf.mxu0 }
 0xbc1   : > { %1252 = vrot.lane.b32.xlu1 %v1239_v37, %s5550_s12  ;;  %1260 = vrot.lane.b32.xlu0 %v4949_v39, %s5548_s18  ;;  %s5562_s12 = smov 96  }
 0xbc2   : > { %v4079_v40 = vpop.f32.mrf.mxu0 }
 0xc2f   : > { %v1250_v41 = vpop.permute.xlu1 %1249  ;;  %v1247_v42 = vpop.permute.xlu0 %1246 }
 0xc30   : > { %v4954_v43 = vpack.c.bf16 %v1250_v41, %v1250_v41  ;;  %v4956_v44 = vpack.c.bf16 %v1247_v42, %v1247_v42 }
 0xc32   : > { %1309 = vrot.lane.b32.xlu1 %v4956_v44, %s5548_s18  ;;  %1358 = vrot.lane.b32.xlu0 %v4954_v43, %s5548_s18 }
 0xc33   : > { %v1253_v36 = vpop.permute.xlu1 %1252  ;;  %v1261_v46 = vpop.permute.xlu0 %1260 }
 0xc34   : > { %v4962_v31 = vpack.c.bf16 %v1253_v36, %v1253_v36  ;;  %v1266_v47 = vsel %vm432_vm2, %v1261_v46, 0 }
 0xc35   : > { %4081 = vmatpush3.bf16.xpose.msra.mxu0 %v1266_v47 }
 0xc36   : > { %1407 = vrot.lane.b32.xlu1 %v4962_v31, %s5548_s18  ;;  %4086 = vmatprep.subr.bf16.mxu0 %v4596_v8  ;;  %s4606_s18 = smov [#allocation2]  }
 0xc37   : > { %s4538_s25 = sshll.u32 %s4606_s18, 4  ;;  %s4539_s25 = int_to_ptr.vmem [resolvable:$false] %s4538_s25 }
 0xc38   : > { %s4540_s10 = scalar_lea.vmem %s4539_s25, 256 }
 0xc3c   : > { %4083 = vmatmul.mubr.msk.bf16.vlgmr.msra.gmra.mxu0 %vm432_vm2, %v4949_v39 }
 0xc3d   : > { %4088 = vmatprep.mubr.msk.bf16.mxu0 %vm4597_vm1, %v4596_v8 }
 0xca4   : > { %v1310_v48 = vpop.permute.xlu1 %1309  ;;  %v1359_v54 = vpop.permute.xlu0 %1358 }
 0xca5   : > { %v1315_v51 = vsel %vm432_vm2, %v1310_v48, 0  ;;  %v1364_v55 = vsel %vm432_vm2, %v1359_v54, 0 }
 0xca6   : > { %4087 = vmatpush3.bf16.xpose.msra.mxu0 %v1315_v51 }
 0xca7   : > { %4092 = vmatprep.subr.bf16.mxu0 %v4596_v8 }
 0xca8   : > { %v1408_v52 = vpop.permute.xlu1 %1407 }
 0xca9   : > { %v1413_v53 = vsel %vm432_vm2, %v1408_v52, 0 }
 0xcaa   : > { %4099 = vmatpush3.bf16.xpose.msra.mxu1 %v1413_v53 }
 0xcab   : > { %4110 = vmatprep.subr.bf16.mxu1 %v4596_v8 }
 0xcad   : > { %4089 = vmatmul.mubr.msk.bf16.vlgmr.msra.gmra.mxu0 %vm432_vm2, %v4956_v44 }
 0xcae   : > { %4093 = vmatpush3.bf16.xpose.msra.mxu0 %v1364_v55  ;;  %4094 = vmatprep.mubr.msk.bf16.mxu0 %vm4597_vm1, %v4596_v8 }
 0xcaf   : > { %4104 = vmatprep.subr.bf16.mxu0 %v4596_v8 }
 0xcb1   : > { %4101 = vmatmul.mubr.msk.bf16.vlgmr.msra.gmra.mxu1 %vm432_vm2, %v4962_v31 }
 0xcb2   : > { %4112 = vmatprep.mubr.msk.bf16.mxu1 %vm4597_vm1, %v4596_v8 }
 0xcb5   : > { %4095 = vmatmul.mubr.msk.bf16.vlgmr.msra.gmra.mxu0 %vm432_vm2, %v4954_v43 }
 0xcb6   : > { %4106 = vmatprep.mubr.msk.bf16.mxu0 %vm4597_vm1, %v4596_v8 }
 0xcfc   : > { %v1302_v56 = vpop.f32.mrf.mxu0 }
 0xcfd   : > { %v1455_v57 = vmul.f32 0.35355338, %v1302_v56 }
 0xcfe   : > { %v4084_v58 = vpop.f32.mrf.mxu0 }
 0xcff   : > { %v1459_v59 = vadd.f32 %v1455_v57, %v4791_v45 }
 0xd00   : > { %v1305_v60 = vpop.f32.mrf.mxu0 }
 0xd01   : > { %v1463_v61 = vsel %vm432_vm2, %v1459_v59, -inf }
 0xd02   : > { %1464 = vmax.xlane.f32.xlu0 %v1463_v61  ;;  %v4085_v62 = vpop.f32.mrf.mxu0 }
 0xd6d   : > { %v1351_v63 = vpop.f32.mrf.mxu0 }
 0xd6e   : > { %v1456_v1 = vmul.f32 0.35355338, %v1351_v63 }
 0xd6f   : > { %v4090_v2 = vpop.f32.mrf.mxu0 }
 0xd70   : > { %v1460_v3 = vadd.f32 %v1456_v1, %v4791_v45 }
 0xd71   : > { %v1354_v4 = vpop.f32.mrf.mxu0  ;;  %v1449_v6 = vpop.f32.mrf.mxu1 }
 0xd72   : > { %v1466_v7 = vsel %vm432_vm2, %v1460_v3, -inf  ;;  %v1458_v18 = vmul.f32 0.35355338, %v1449_v6 }
 0xd73   : > { %1467 = vmax.xlane.f32.xlu1 %v1466_v7  ;;  %v4091_v9 = vpop.f32.mrf.mxu0  ;;  %v4102_v10 = vpop.f32.mrf.mxu1 }
 0xd74   : > { %v1462_v23 = vadd.f32 %v1458_v18, %v4791_v45 }
 0xd75   : > { %v1400_v12 = vpop.f32.mrf.mxu0  ;;  %v1452_v13 = vpop.f32.mrf.mxu1 }
 0xd76   : > { %v1457_v19 = vmul.f32 0.35355338, %v1400_v12  ;;  %v1472_v25 = vsel %vm432_vm2, %v1462_v23, -inf }
 0xd77   : > { %v4096_v20 = vpop.f32.mrf.mxu0  ;;  %v4103_v14 = vpop.f32.mrf.mxu1 }
 0xd78   : > { %v1461_v21 = vadd.f32 %v1457_v19, %v4791_v45  ;;  %v4413_v20 = vld [vmem:[%s5534_s3 + $0x18] sm:$0xff]   ;;  %v4414_v14 = vld [vmem:[%s5534_s3 + $0x10] sm:$0xff]  }
 0xd79   : > { %v1403_v22 = vpop.f32.mrf.mxu0 }
 0xd7a   : > { %v1469_v16 = vsel %vm432_vm2, %v1461_v21, -inf }
 0xd7b   : > { %1470 = vmax.xlane.f32.xlu0 %v1469_v16  ;;  %v4097_v24 = vpop.f32.mrf.mxu0 }
 0xd7f   : > { %1473 = vmax.xlane.f32.xlu0 %v1472_v25 }
 0xd84   : > { %1511 = vrot.lane.b32.xlu1 %v4949_v39, %s5546_s21 }
 0xd8b   : > { %v1465_v26 = vpop.xlane.xlu0 %1464 }
 0xd8c   : > { %v1475_v28 = vsub.f32 %v1459_v59, %v1465_v26 }
 0xd8e   : > { %v1479_v29 = vmul.f32 1.442695, %v1475_v28 }
 0xd90   : > { %4475 = vpow2.f32 %v1479_v29 }
 0xd9d   : > { %v4476_v30 = vpop.eup %4475 }
 0xd9e   : > { %v1487_v32 = vsel %vm432_vm2, %v4476_v30, 0.0 }
 0xda8   : > { %1488 = vadd.xlane.f32.xlu1 %v1487_v32 }
 0xdb9   : > { %1607 = vrot.lane.b32.xlu1 %v4954_v43, %s5546_s21 }
 0xdfc   : > { %v1468_v45 = vpop.xlane.xlu1 %1467 }
 0xdfd   : > { %v1476_v33 = vsub.f32 %v1460_v3, %v1468_v45 }
 0xdff   : > { %v1481_v34 = vmul.f32 1.442695, %v1476_v33 }
 0xe00   : > { %v1512_v35 = vpop.permute.xlu1 %1511 }
 0xe01   : > { %4477 = vpow2.f32 %v1481_v34  ;;  %v1517_v37 = vsel %vm687_vm3, %v1512_v35, 0 }
 0xe02   : > { %4105 = vmatpush3.bf16.msra.mxu0 %v1517_v37 }
 0xe03   : > { %4116 = vmatprep.subr.bf16.mxu0 %v4596_v8 }
 0xe04   : > { %v1471_v38 = vpop.xlane.xlu0 %1470 }
 0xe05   : > { %v1477_v39 = vsub.f32 %v1461_v21, %v1471_v38 }
 0xe07   : > { %v1483_v0 = vmul.f32 1.442695, %v1477_v39 }
 0xe08   : > { %v1474_v40 = vpop.xlane.xlu0 %1473 }
 0xe09   : > { %4479 = vpow2.f32 %v1483_v0  ;;  %v1478_v41 = vsub.f32 %v1462_v23, %v1474_v40 }
 0xe0b   : > { %v1485_v42 = vmul.f32 1.442695, %v1478_v41 }
 0xe0d   : > { %4481 = vpow2.f32 %v1485_v42 }
 0xe0e   : > { %v4478_v36 = vpop.eup %4477 }
 0xe0f   : > { %v1490_v43 = vsel %vm432_vm2, %v4478_v36, 0.0 }
 0xe10   : > { %1491 = vadd.xlane.f32.xlu0 %v1490_v43 }
 0xe16   : > { %v4480_v46 = vpop.eup %4479 }
 0xe17   : > { %v1493_v47 = vsel %vm432_vm2, %v4480_v46, 0.0 }
 0xe18   : > { %1494 = vadd.xlane.f32.xlu1 %v1493_v47 }
 0xe1a   : > { %v4482_v48 = vpop.eup %4481 }
 0xe1b   : > { %v1496_v51 = vsel %vm432_vm2, %v4482_v48, 0.0 }
 0xe1c   : > { %1497 = vadd.xlane.f32.xlu0 %v1496_v51 }
 0xe29   : > { %1655 = vrot.lane.b32.xlu1 %v4962_v31, %s5546_s21 }
 0xe31   : > { %v1489_v52 = vpop.xlane.xlu1 %1488 }
 0xe32   : > { %4483 = vrcp.f32 %v1489_v52  ;;  %1559 = vrot.lane.b32.xlu0 %v4956_v44, %s5546_s21  ;;  %s5561_s21 = smov 104  }
 0xe35   : > { %v1608_v55 = vpop.permute.xlu1 %1607 }
 0xe36   : > { %v1613_v57 = vsel %vm687_vm3, %v1608_v55, 0  ;;  %v4417_v55 = vld [vmem:[%s5536_s5 + $0x78] sm:$0xff]  }
 0xe3f   : > { %v4484_v53 = vpop.eup %4483 }
 0xe40   : > { %v1503_v54 = vmul.f32 %v4484_v53, %v4476_v30 }
 0xe42   : > { %v1507_v56 = vpack.c.bf16 %v1503_v54, %v1503_v54  ;;  %v4416_v54 = vld [vmem:[%s5535_s4 + $0x10] sm:$0xff]  }
 0xe44   : > { %4107 = vmatmul.mubr.msk.bf16.vlgmr.msra.gmra.mxu0 %vm432_vm2, %v1507_v56  ;;  %v4418_v56 = vld [vmem:[%s5536_s5 + $0x70] sm:$0xff]  }
 0xe45   : > { %4117 = vmatpush3.bf16.msra.mxu0 %v1613_v57  ;;  %4118 = vmatprep.mubr.msk.bf16.mxu0 %vm4597_vm1, %v4596_v8  ;;  %v4419_v57 = vld [vmem:[%s5536_s5 + $0x68] sm:$0xff]  }
 0xe46   : > { %4128 = vmatprep.subr.bf16.mxu0 %v4596_v8 }
 0xe99   : > { %v1492_v31 = vpop.xlane.xlu0 %1491 }
 0xe9a   : > { %4485 = vrcp.f32 %v1492_v31  ;;  %v4420_v31 = vld [vmem:[%s5536_s5 + $0x60] sm:$0xff]  }
 0xea1   : > { %v1495_v58 = vpop.xlane.xlu1 %1494 }
 0xea2   : > { %4487 = vrcp.f32 %v1495_v58  ;;  %v4421_v58 = vld [vmem:[%s5536_s5 + $0x58] sm:$0xff]  }
 0xea5   : > { %v1498_v59 = vpop.xlane.xlu0 %1497  ;;  %v1656_v63 = vpop.permute.xlu1 %1655 }
 0xea6   : > { %4489 = vrcp.f32 %v1498_v59  ;;  %v1661_v2 = vsel %vm687_vm3, %v1656_v63, 0  ;;  %v4422_v59 = vld [vmem:[%s5536_s5 + $0x50] sm:$0xff]  }
 0xea7   : > { %v4486_v44 = vpop.eup %4485 }
 0xea8   : > { %v1504_v60 = vmul.f32 %v4486_v44, %v4478_v36 }
 0xea9   : > { %v1560_v61 = vpop.permute.xlu0 %1559 }
 0xeaa   : > { %v1565_v62 = vsel %vm687_vm3, %v1560_v61, 0  ;;  %v1508_v1 = vpack.c.bf16 %v1504_v60, %v1504_v60 }
 0xeab   : > { %4111 = vmatpush3.bf16.msra.mxu1 %v1565_v62  ;;  %v1791_v62 = vrot.slane %v4938_v27, %v4890_v49 }
 0xeac   : > { %4122 = vmatprep.subr.bf16.mxu1 %v4596_v8 }
 0xeae   : > { %4113 = vmatmul.mubr.msk.bf16.vlgmr.msra.gmra.mxu1 %vm432_vm2, %v1508_v1 }
 0xeaf   : > { %v4488_v3 = vpop.eup %4487  ;;  %4123 = vmatpush3.bf16.msra.mxu1 %v1661_v2  ;;  %4124 = vmatprep.mubr.msk.bf16.mxu1 %vm4597_vm1, %v4596_v8  ;;  %v1796_v2 = vrot.slane %v4938_v27, %v4893_v50 }
 0xeb0   : > { %v1505_v4 = vmul.f32 %v4488_v3, %v4480_v46  ;;  %4136 = vmatprep.subr.bf16.mxu1 %v4596_v8 }
 0xeb2   : > { %v1509_v6 = vpack.c.bf16 %v1505_v4, %v1505_v4 }
 0xeb3   : > { %v4490_v7 = vpop.eup %4489 }
 0xeb4   : > { %4119 = vmatmul.mubr.msk.bf16.vlgmr.msra.gmra.mxu0 %vm432_vm2, %v1509_v6  ;;  %v1506_v9 = vmul.f32 %v4490_v7, %v4482_v48  ;;  %v4423_v7 = vld [vmem:[%s5536_s5 + $0x48] sm:$0xff]  }
 0xeb5   : > { %4132 = vmatprep.mubr.msk.bf16.mxu0 %vm4597_vm1, %v4596_v8  ;;  %4129 = vmatpush3.bf16.msra.mxu0 %v4413_v20 }
 0xeb6   : > { %v1510_v10 = vpack.c.bf16 %v1506_v9, %v1506_v9  ;;  %4130 = vmatprep.subr.bf16.mxu0 %v4596_v8  ;;  %v4424_v9 = vld [vmem:[%s5536_s5 + $0x40] sm:$0xff]  }
 0xeb8   : > { %4125 = vmatmul.mubr.msk.bf16.vlgmr.msra.gmra.mxu1 %vm432_vm2, %v1510_v10  ;;  %v3746_v10 = vld [vmem:[%s5538_s7 + $0x1] ss:$0 sm:$0xff] }
 0xeb9   : > { %4140 = vmatprep.mubr.msk.bf16.mxu1 %vm4597_vm1, %v4596_v8  ;;  %4131 = vmatpush3.bf16.msra.mxu0 %v4414_v14 }
 0xeba   : > { %4144 = vmatprep.subr.bf16.mxu0 %v4596_v8 }
 0xf04   : > { %v1553_v12 = vpop.f32.mrf.mxu0 }
 0xf06   : > { %v4108_v13 = vpop.f32.mrf.mxu0 }
 0xf08   : > { %v1556_v18 = vpop.f32.mrf.mxu0 }
 0xf0a   : > { %v4109_v19 = vpop.f32.mrf.mxu0 }
 0xf6e   : > { %v1601_v21 = vpop.f32.mrf.mxu1 }
 0xf6f   : > { %1704 = vrot.lane.b32.xlu0 %v1601_v21, %s5558_s20 }
 0xf70   : > { %v4114_v22 = vpop.f32.mrf.mxu1 }
 0xf71   : > { %v1954_v22 = vrot.slane %v4938_v27, %v4916_v5  ;;  %v4425_v27 = vld [vmem:[%s5533_s2 + $0x8] sm:$0xff]  }
 0xf72   : > { %v1604_v16 = vpop.f32.mrf.mxu1 }
 0xf74   : > { %v4115_v23 = vpop.f32.mrf.mxu1  ;;  %v1649_v24 = vpop.f32.mrf.mxu0 }
 0xf75   : > { %1708 = vrot.lane.b32.xlu1 %v1649_v24, %s5559_s22 }
 0xf76   : > { %v4120_v25 = vpop.f32.mrf.mxu0 }
 0xf78   : > { %v1652_v26 = vpop.f32.mrf.mxu0  ;;  %v1697_v28 = vpop.f32.mrf.mxu1 }
 0xf79   : > { %1712 = vrot.lane.b32.xlu0 %v1697_v28, %s5560_s23 }
 0xf7a   : > { %v4121_v29 = vpop.f32.mrf.mxu0  ;;  %v4126_v30 = vpop.f32.mrf.mxu1 }
 0xf7c   : > { %v1700_v32 = vpop.f32.mrf.mxu1 }
 0xf7e   : > { %v4127_v45 = vpop.f32.mrf.mxu1 }
 0xfe1   : > { %v1705_v33 = vpop.permute.xlu0 %1704 }
 0xfe2   : > { %v1715_v35 = vsel %vm432_vm2, %v1553_v12, %v1705_v33 }
 0xfe7   : > { %v1709_v34 = vpop.permute.xlu1 %1708 }
 0xfe8   : > { %v1716_v37 = vsel %vm888_vm4, %v1715_v35, %v1709_v34  ;;  %v4426_v35 = vld [vmem:[%s5533_s2] sm:$0xff]  }
 0xfeb   : > { %v1713_v38 = vpop.permute.xlu0 %1712 }
 0xfec   : > { %v1717_v39 = vsel %vm890_vm5, %v1716_v37, %v1713_v38 }
 0xfed   : > { %v1718_v0 = vpack.c.bf16 %v1717_v39, %v1717_v39 }
 0xfef   : > { %4133 = vmatmul.mubr.msk.bf16.vlgmr.msra.gmra.mxu0 %vm334_vm0, %v1718_v0  ;;  %v5126_v0 = vld [vmem:[%s5537_s6] sm:$0xff] }
 0xff0   : > { %4160 = vmatprep.mubr.msk.bf16.mxu0 %vm4597_vm1, %v4596_v8  ;;  %4145 = vmatpush3.bf16.msra.mxu0 %v4417_v55 }
 0xff1   : > { %4146 = vmatprep.subr.bf16.mxu0 %v4596_v8 }
 0xff4   : > { %4147 = vmatpush3.bf16.msra.mxu0 %v4418_v56 }
 0xff5   : > { %4148 = vmatprep.subr.bf16.mxu0 %v4596_v8 }
 0xff8   : > { %4149 = vmatpush3.bf16.msra.mxu0 %v4419_v57 }
 0xff9   : > { %4150 = vmatprep.subr.bf16.mxu0 %v4596_v8 }
 0xffc   : > { %4151 = vmatpush3.bf16.msra.mxu0 %v4420_v31 }
 0xffd   : > { %4152 = vmatprep.subr.bf16.mxu0 %v4596_v8 }
0x1000   : > { %4153 = vmatpush3.bf16.msra.mxu0 %v4421_v58 }
0x1001   : > { %4154 = vmatprep.subr.bf16.mxu0 %v4596_v8 }
0x1004   : > { %4155 = vmatpush3.bf16.msra.mxu0 %v4422_v59 }
0x1005   : > { %4156 = vmatprep.subr.bf16.mxu0 %v4596_v8 }
0x1008   : > { %4157 = vmatpush3.bf16.msra.mxu0 %v4423_v7  ;;  %v5181_v7 = vld [vmem:[%s5532_s1] sm:$0xff] }
0x1009   : > { %4158 = vmatprep.subr.bf16.mxu0 %v4596_v8 }
0x100c   : > { %4159 = vmatpush3.bf16.msra.mxu0 %v4424_v9 }
0x100d   : > { %4190 = vmatprep.subr.bf16.mxu0 %v4596_v8 }
0x10af   : > { %v1768_v40 = vpop.f32.mrf.mxu0 }
0x10b0   : > { %v5048_v41 = vadd.f32 %v1768_v40, %v4921_v11  ;;  %v4415_v11 = vld [vmem:[%s5535_s4 + $0x18] sm:$0xff]   ;;  %v2002_v40 = vrot.slane %v5126_v0, %v4728_v15 }
0x10b1   : > { %v4134_v42 = vpop.f32.mrf.mxu0  ;;  %4137 = vmatpush3.bf16.msra.mxu1 %v4415_v11 }
0x10b2   : > { %v1775_v36 = vsel %vm334_vm0, %v5048_v41, 0.0  ;;  %4138 = vmatprep.subr.bf16.mxu1 %v4596_v8 }
0x10b3   : > { %1776 = vadd.xlane.f32.xlu1 %v1775_v36  ;;  %v1771_v43 = vpop.f32.mrf.mxu0  ;;  %v2007_v36 = vrot.slane %v5126_v0, %v4736_v17 }
0x10b5   : > { %v4135_v46 = vpop.f32.mrf.mxu0  ;;  %4139 = vmatpush3.bf16.msra.mxu1 %v4416_v54 }
0x10b6   : > { %4164 = vmatprep.subr.bf16.mxu1 %v4596_v8 }
0x113c   : > { %v1777_v47 = vpop.xlane.xlu1 %1776 }
0x113d   : > { %v1778_v48 = vmul.f32 0.03125, %v1777_v47 }
0x113f   : > { %v1779_v51 = vsub.f32 %v5048_v41, %v1778_v48 }
0x1141   : > { %v1780_v52 = vmul.f32 %v1779_v51, %v1779_v51 }
0x1143   : > { %v1781_v53 = vsel %vm334_vm0, %v1780_v52, 0.0 }
0x1144   : > { %1782 = vadd.xlane.f32.xlu0 %v1781_v53 }
0x11cd   : > { %v1783_v44 = vpop.xlane.xlu0 %1782 }
0x11ce   : > { %v1784_v60 = vmul.f32 0.03125, %v1783_v44 }
0x11d0   : > { %v1785_v61 = vadd.f32 1e-05, %v1784_v60 }
0x11d2   : > { %4491 = vrsqrt.f32 %v1785_v61 }
0x11df   : > { %v4492_v63 = vpop.eup %4491 }
0x11e0   : > { %v1787_v1 = vmul.f32 %v4492_v63, %v1779_v51 }
0x11e2   : > { %v1792_v3 = vmul.f32 %v1791_v62, %v1787_v1 }
0x11e4   : > { %v1797_v4 = vadd.f32 %v1796_v2, %v1792_v3 }
0x11e6   : > { %v1798_v6 = vpack.c.bf16 %v1797_v4, %v1797_v4 }
0x11e8   : > { %4141 = vmatmul.mubr.msk.bf16.vlgmr.msra.gmra.mxu1 %vm334_vm0, %v1798_v6 }
0x11e9   : > { %4168 = vmatprep.mubr.msk.bf16.mxu1 %vm4597_vm1, %v4596_v8  ;;  %4165 = vmatpush3.bf16.msra.mxu1 %v4425_v27 }
0x11ea   : > { %4166 = vmatprep.subr.bf16.mxu1 %v4596_v8 }
0x11ed   : > { %4167 = vmatpush3.bf16.msra.mxu1 %v4426_v35 }
0x11ee   : > { %4172 = vmatprep.subr.bf16.mxu1 %v4596_v8 }
0x12a8   : > { %v1854_v12 = vpop.f32.mrf.mxu1 }
0x12a9   : > { %v1855_v13 = vadd.f32 %v3746_v10, %v1854_v12 }
0x12aa   : > { %v4142_v18 = vpop.f32.mrf.mxu1 }
0x12ab   : > { %v1860_v19 = vmax.f32 %v1855_v13, 0.0 }
0x12ac   : > { %v1857_v20 = vpop.f32.mrf.mxu1 }
0x12ad   : > { %v1861_v14 = vpack.c.bf16 %v1860_v19, %v1860_v19 }
0x12ae   : > { %v4143_v21 = vpop.f32.mrf.mxu1 }
0x12af   : > { %4161 = vmatmul.mubr.bf16.vlgmr.msra.gmra.mxu0 %v1861_v14 }
0x12b0   : > { %4192 = vmatprep.mubr.msk.bf16.mxu0 %vm4597_vm1, %v4596_v8 }
0x136f   : > { %v1944_v16 = vpop.f32.mrf.mxu0 }
0x1370   : > { %v1950_v23 = vadd.f32 %v1944_v16, %v5048_v41 }
0x1371   : > { %v4162_v24 = vpop.f32.mrf.mxu0 }
0x1372   : > { %v5109_v25 = vadd.f32 %v1954_v22, %v1950_v23 }
0x1373   : > { %v1947_v26 = vpop.f32.mrf.mxu0 }
0x1374   : > { %v1986_v28 = vsel %vm334_vm0, %v5109_v25, 0.0 }
0x1375   : > { %1987 = vadd.xlane.f32.xlu0 %v1986_v28  ;;  %v4163_v29 = vpop.f32.mrf.mxu0 }
0x13fe   : > { %v1988_v30 = vpop.xlane.xlu0 %1987 }
0x13ff   : > { %v1989_v32 = vmul.f32 0.03125, %v1988_v30 }
0x1401   : > { %v1990_v45 = vsub.f32 %v5109_v25, %v1989_v32 }
0x1403   : > { %v1991_v33 = vmul.f32 %v1990_v45, %v1990_v45 }
0x1405   : > { %v1992_v34 = vsel %vm334_vm0, %v1991_v33, 0.0 }
0x1406   : > { %1993 = vadd.xlane.f32.xlu1 %v1992_v34 }
0x148f   : > { %v1994_v37 = vpop.xlane.xlu1 %1993 }
0x1490   : > { %v1995_v38 = vmul.f32 0.03125, %v1994_v37 }
0x1492   : > { %v1996_v39 = vadd.f32 1e-05, %v1995_v38 }
0x1494   : > { %4493 = vrsqrt.f32 %v1996_v39 }
0x14a1   : > { %v4494_v41 = vpop.eup %4493 }
0x14a2   : > { %v1998_v42 = vmul.f32 %v4494_v41, %v1990_v45 }
0x14a4   : > { %v2003_v43 = vmul.f32 %v2002_v40, %v1998_v42 }
0x14a6   : > { %v2008_v46 = vadd.f32 %v2007_v36, %v2003_v43 }
0x14a8   : > { %v2009_v47 = vpack.c.bf16 %v2008_v46, %v2008_v46 }
0x14aa   : > { %4169 = vmatmul.mubr.msk.bf16.vlgmr.msra.gmra.mxu1 %vm334_vm0, %v2009_v47 }
0x14ab   : > { %4174 = vmatprep.mubr.msk.bf16.mxu1 %vm4597_vm1, %v4596_v8 }
0x156a   : > { %v2059_v48 = vpop.f32.mrf.mxu1 }
0x156b   : > { %2069 = vrot.lane.b32.xlu1 %v2059_v48, %s5553_s17  ;;  %2066 = vrot.lane.b32.xlu0 %v2059_v48, %s5552_s13  ;;  %v5137_v52 = vpack.c.bf16 %v2059_v48, %v2059_v48  ;;  %s5564_s13 = smov 112  }
0x156c   : > { %v4170_v51 = vpop.f32.mrf.mxu1 }
0x156e   : > { %v2062_v53 = vpop.f32.mrf.mxu1 }
0x156f   : > { %2072 = vrot.lane.b32.xlu1 %v2059_v48, %s5561_s21  ;;  %2080 = vrot.lane.b32.xlu0 %v5137_v52, %s5562_s12 }
0x1570   : > { %v4171_v11 = vpop.f32.mrf.mxu1 }
0x15dd   : > { %v2070_v54 = vpop.permute.xlu1 %2069  ;;  %v2067_v55 = vpop.permute.xlu0 %2066 }
0x15de   : > { %v5142_v56 = vpack.c.bf16 %v2070_v54, %v2070_v54  ;;  %v5144_v57 = vpack.c.bf16 %v2067_v55, %v2067_v55 }
0x15e0   : > { %2129 = vrot.lane.b32.xlu1 %v5144_v57, %s5562_s12  ;;  %2178 = vrot.lane.b32.xlu0 %v5142_v56, %s5562_s12 }
0x15e1   : > { %v2073_v31 = vpop.permute.xlu1 %2072  ;;  %v2081_v58 = vpop.permute.xlu0 %2080 }
0x15e2   : > { %v5150_v59 = vpack.c.bf16 %v2073_v31, %v2073_v31  ;;  %v2086_v44 = vsel %vm432_vm2, %v2081_v58, 0 }
0x15e3   : > { %4173 = vmatpush3.bf16.xpose.msra.mxu1 %v2086_v44 }
0x15e4   : > { %2227 = vrot.lane.b32.xlu1 %v5150_v59, %s5562_s12  ;;  %4178 = vmatprep.subr.bf16.mxu1 %v4596_v8 }
0x15ea   : > { %4175 = vmatmul.mubr.msk.bf16.vlgmr.msra.gmra.mxu1 %vm432_vm2, %v5137_v52 }
0x15eb   : > { %4180 = vmatprep.mubr.msk.bf16.mxu1 %vm4597_vm1, %v4596_v8 }
0x1652   : > { %v2130_v60 = vpop.permute.xlu1 %2129  ;;  %v2179_v1 = vpop.permute.xlu0 %2178 }
0x1653   : > { %v2135_v61 = vsel %vm432_vm2, %v2130_v60, 0  ;;  %v2184_v2 = vsel %vm432_vm2, %v2179_v1, 0 }
0x1654   : > { %4179 = vmatpush3.bf16.xpose.msra.mxu1 %v2135_v61 }
0x1655   : > { %4184 = vmatprep.subr.bf16.mxu1 %v4596_v8 }
0x1656   : > { %v2228_v62 = vpop.permute.xlu1 %2227 }
0x1657   : > { %v2233_v63 = vsel %vm432_vm2, %v2228_v62, 0 }
0x1658   : > { %4191 = vmatpush3.bf16.xpose.msra.mxu0 %v2233_v63 }
0x1659   : > { %4202 = vmatprep.subr.bf16.mxu0 %v4596_v8 }
0x165b   : > { %4181 = vmatmul.mubr.msk.bf16.vlgmr.msra.gmra.mxu1 %vm432_vm2, %v5144_v57 }
0x165c   : > { %4185 = vmatpush3.bf16.xpose.msra.mxu1 %v2184_v2  ;;  %4186 = vmatprep.mubr.msk.bf16.mxu1 %vm4597_vm1, %v4596_v8 }
0x165d   : > { %4196 = vmatprep.subr.bf16.mxu1 %v4596_v8 }
0x165f   : > { %4193 = vmatmul.mubr.msk.bf16.vlgmr.msra.gmra.mxu0 %vm432_vm2, %v5150_v59 }
0x1660   : > { %4204 = vmatprep.mubr.msk.bf16.mxu0 %vm4597_vm1, %v4596_v8 }
0x1663   : > { %4187 = vmatmul.mubr.msk.bf16.vlgmr.msra.gmra.mxu1 %vm432_vm2, %v5142_v56 }
0x1664   : > { %4198 = vmatprep.mubr.msk.bf16.mxu1 %vm4597_vm1, %v4596_v8 }
0x16aa   : > { %v2122_v3 = vpop.f32.mrf.mxu1 }
0x16ab   : > { %v2275_v4 = vmul.f32 0.35355338, %v2122_v3 }
0x16ac   : > { %v4176_v6 = vpop.f32.mrf.mxu1 }
0x16ad   : > { %v2279_v9 = vadd.f32 %v5181_v7, %v2275_v4 }
0x16ae   : > { %v2125_v10 = vpop.f32.mrf.mxu1 }
0x16af   : > { %v2283_v12 = vsel %vm432_vm2, %v2279_v9, -inf }
0x16b0   : > { %2284 = vmax.xlane.f32.xlu0 %v2283_v12  ;;  %v4177_v13 = vpop.f32.mrf.mxu1 }
0x171b   : > { %v2171_v18 = vpop.f32.mrf.mxu1 }
0x171c   : > { %v2276_v19 = vmul.f32 0.35355338, %v2171_v18 }
0x171d   : > { %v4182_v20 = vpop.f32.mrf.mxu1 }
0x171e   : > { %v2280_v14 = vadd.f32 %v5181_v7, %v2276_v19 }
0x171f   : > { %v2174_v21 = vpop.f32.mrf.mxu1  ;;  %v2269_v22 = vpop.f32.mrf.mxu0 }
0x1720   : > { %v2286_v16 = vsel %vm432_vm2, %v2280_v14, -inf  ;;  %v2278_v29 = vmul.f32 0.35355338, %v2269_v22 }
0x1721   : > { %v4194_v23 = vpop.f32.mrf.mxu0  ;;  %2287 = vmax.xlane.f32.xlu1 %v2286_v16  ;;  %v4183_v24 = vpop.f32.mrf.mxu1 }
0x1722   : > { %v2282_v35 = vadd.f32 %v5181_v7, %v2278_v29 }
0x1723   : > { %v2220_v26 = vpop.f32.mrf.mxu1  ;;  %v2272_v28 = vpop.f32.mrf.mxu0 }
0x1724   : > { %v2277_v30 = vmul.f32 0.35355338, %v2220_v26  ;;  %v2292_v38 = vsel %vm432_vm2, %v2282_v35, -inf }
0x1725   : > { %v4188_v32 = vpop.f32.mrf.mxu1  ;;  %v4195_v45 = vpop.f32.mrf.mxu0 }
0x1726   : > { %v2281_v33 = vadd.f32 %v5181_v7, %v2277_v30  ;;  %v4427_v45 = vld [vmem:[%s5534_s3 + $0x8] sm:$0xff]  }
0x1727   : > { %v2223_v34 = vpop.f32.mrf.mxu1 }
0x1728   : > { %v2289_v27 = vsel %vm432_vm2, %v2281_v33, -inf }
0x1729   : > { %2290 = vmax.xlane.f32.xlu0 %v2289_v27  ;;  %v4189_v37 = vpop.f32.mrf.mxu1 }
0x172d   : > { %2293 = vmax.xlane.f32.xlu0 %v2292_v38 }
0x1732   : > { %2331 = vrot.lane.b32.xlu1 %v5137_v52, %s5563_s24 }
0x1739   : > { %v2285_v39 = vpop.xlane.xlu0 %2284 }
0x173a   : > { %v2295_v40 = vsub.f32 %v2279_v9, %v2285_v39 }
0x173c   : > { %v2299_v41 = vmul.f32 1.442695, %v2295_v40 }
0x173e   : > { %4495 = vpow2.f32 %v2299_v41 }
0x174b   : > { %v4496_v42 = vpop.eup %4495 }
0x174c   : > { %v2307_v36 = vsel %vm432_vm2, %v4496_v42, 0.0 }
0x1756   : > { %2308 = vadd.xlane.f32.xlu1 %v2307_v36 }
0x1767   : > { %2427 = vrot.lane.b32.xlu1 %v5142_v56, %s5563_s24 }
0x17aa   : > { %v2288_v43 = vpop.xlane.xlu1 %2287 }
0x17ab   : > { %v2296_v46 = vsub.f32 %v2280_v14, %v2288_v43 }
0x17ad   : > { %v2301_v47 = vmul.f32 1.442695, %v2296_v46 }
0x17ae   : > { %v2332_v48 = vpop.permute.xlu1 %2331 }
0x17af   : > { %4497 = vpow2.f32 %v2301_v47  ;;  %v2337_v51 = vsel %vm687_vm3, %v2332_v48, 0 }
0x17b0   : > { %4197 = vmatpush3.bf16.msra.mxu1 %v2337_v51 }
0x17b1   : > { %4208 = vmatprep.subr.bf16.mxu1 %v4596_v8 }
0x17b2   : > { %v2291_v52 = vpop.xlane.xlu0 %2290 }
0x17b3   : > { %v2297_v53 = vsub.f32 %v2281_v33, %v2291_v52  ;;  %v4428_v33 = vld [vmem:[%s5534_s3] sm:$0xff]  }
0x17b5   : > { %v2303_v11 = vmul.f32 1.442695, %v2297_v53 }
0x17b6   : > { %v2294_v54 = vpop.xlane.xlu0 %2293 }
0x17b7   : > { %4499 = vpow2.f32 %v2303_v11  ;;  %v2298_v55 = vsub.f32 %v2282_v35, %v2294_v54 }
0x17b9   : > { %v2305_v31 = vmul.f32 1.442695, %v2298_v55 }
0x17bb   : > { %4501 = vpow2.f32 %v2305_v31 }
0x17bc   : > { %v4498_v58 = vpop.eup %4497 }
0x17bd   : > { %v2310_v56 = vsel %vm432_vm2, %v4498_v58, 0.0 }
0x17be   : > { %2311 = vadd.xlane.f32.xlu0 %v2310_v56 }
0x17c4   : > { %v4500_v44 = vpop.eup %4499 }
0x17c5   : > { %v2313_v60 = vsel %vm432_vm2, %v4500_v44, 0.0 }
0x17c6   : > { %2314 = vadd.xlane.f32.xlu1 %v2313_v60 }
0x17c8   : > { %v4502_v61 = vpop.eup %4501 }
0x17c9   : > { %v2316_v62 = vsel %vm432_vm2, %v4502_v61, 0.0 }
0x17ca   : > { %2317 = vadd.xlane.f32.xlu0 %v2316_v62 }
0x17d7   : > { %2475 = vrot.lane.b32.xlu1 %v5150_v59, %s5563_s24 }
0x17df   : > { %v2309_v63 = vpop.xlane.xlu1 %2308 }
0x17e0   : > { %4503 = vrcp.f32 %v2309_v63  ;;  %2379 = vrot.lane.b32.xlu0 %v5144_v57, %s5563_s24 }
0x17e3   : > { %v2428_v3 = vpop.permute.xlu1 %2427 }
0x17e4   : > { %v2433_v6 = vsel %vm687_vm3, %v2428_v3, 0  ;;  %v4430_v3 = vld [vmem:[%s5535_s4] sm:$0xff]  }
0x17ed   : > { %v4504_v1 = vpop.eup %4503 }
0x17ee   : > { %v2323_v2 = vmul.f32 %v4504_v1, %v4496_v42 }
0x17f0   : > { %v2327_v4 = vpack.c.bf16 %v2323_v2, %v2323_v2 }
0x17f2   : > { %4199 = vmatmul.mubr.msk.bf16.vlgmr.msra.gmra.mxu1 %vm432_vm2, %v2327_v4  ;;  %v4431_v4 = vld [vmem:[%s5536_s5 + $0x38] sm:$0xff]  }
0x17f3   : > { %4209 = vmatpush3.bf16.msra.mxu1 %v2433_v6  ;;  %4210 = vmatprep.mubr.msk.bf16.mxu1 %vm4597_vm1, %v4596_v8  ;;  %v4432_v6 = vld [vmem:[%s5536_s5 + $0x30] sm:$0xff]  }
0x17f4   : > { %4220 = vmatprep.subr.bf16.mxu1 %v4596_v8 }
0x1847   : > { %v2312_v59 = vpop.xlane.xlu0 %2311 }
0x1848   : > { %4505 = vrcp.f32 %v2312_v59  ;;  %v4433_v59 = vld [vmem:[%s5536_s5 + $0x28] sm:$0xff]  }
0x184f   : > { %v2315_v9 = vpop.xlane.xlu1 %2314 }
0x1850   : > { %4507 = vrcp.f32 %v2315_v9  ;;  %v4434_v9 = vld [vmem:[%s5536_s5 + $0x20] sm:$0xff]  }
0x1853   : > { %v2318_v10 = vpop.xlane.xlu0 %2317  ;;  %v2476_v19 = vpop.permute.xlu1 %2475 }
0x1854   : > { %4509 = vrcp.f32 %v2318_v10  ;;  %v2481_v14 = vsel %vm687_vm3, %v2476_v19, 0  ;;  %v4435_v10 = vld [vmem:[%s5536_s5 + $0x18] sm:$0xff]   ;;  %v2611_v19 = vrot.slane %v5126_v0, %v4890_v49 }
0x1855   : > { %v4506_v57 = vpop.eup %4505 }
0x1856   : > { %v2324_v12 = vmul.f32 %v4506_v57, %v4498_v58  ;;  %v4436_v57 = vld [vmem:[%s5536_s5 + $0x10] sm:$0xff]  }
0x1857   : > { %v2380_v13 = vpop.permute.xlu0 %2379 }
0x1858   : > { %v2385_v18 = vsel %vm687_vm3, %v2380_v13, 0  ;;  %v2328_v20 = vpack.c.bf16 %v2324_v12, %v2324_v12 }
0x1859   : > { %4203 = vmatpush3.bf16.msra.mxu0 %v2385_v18 }
0x185a   : > { %4214 = vmatprep.subr.bf16.mxu0 %v4596_v8 }
0x185c   : > { %4205 = vmatmul.mubr.msk.bf16.vlgmr.msra.gmra.mxu0 %vm432_vm2, %v2328_v20 }
0x185d   : > { %v4508_v21 = vpop.eup %4507  ;;  %4215 = vmatpush3.bf16.msra.mxu0 %v2481_v14  ;;  %4216 = vmatprep.mubr.msk.bf16.mxu0 %vm4597_vm1, %v4596_v8 }
0x185e   : > { %v2325_v22 = vmul.f32 %v4508_v21, %v4500_v44  ;;  %4228 = vmatprep.subr.bf16.mxu0 %v4596_v8  ;;  %v2616_v21 = vrot.slane %v5126_v0, %v4893_v50 }
0x1860   : > { %v2329_v16 = vpack.c.bf16 %v2325_v22, %v2325_v22 }
0x1861   : > { %v4510_v23 = vpop.eup %4509 }
0x1862   : > { %4211 = vmatmul.mubr.msk.bf16.vlgmr.msra.gmra.mxu1 %vm432_vm2, %v2329_v16  ;;  %v2326_v24 = vmul.f32 %v4510_v23, %v4502_v61 }
0x1863   : > { %4224 = vmatprep.mubr.msk.bf16.mxu1 %vm4597_vm1, %v4596_v8  ;;  %4221 = vmatpush3.bf16.msra.mxu1 %v4427_v45 }
0x1864   : > { %v2330_v26 = vpack.c.bf16 %v2326_v24, %v2326_v24  ;;  %4222 = vmatprep.subr.bf16.mxu1 %v4596_v8  ;;  %v4437_v24 = vld [vmem:[%s5536_s5 + $0x8] sm:$0xff]  }
0x1866   : > { %4217 = vmatmul.mubr.msk.bf16.vlgmr.msra.gmra.mxu0 %vm432_vm2, %v2330_v26  ;;  %v4438_v26 = vld [vmem:[%s5536_s5] sm:$0xff]  }
0x1867   : > { %4232 = vmatprep.mubr.msk.bf16.mxu0 %vm4597_vm1, %v4596_v8  ;;  %4223 = vmatpush3.bf16.msra.mxu1 %v4428_v33 }
0x1868   : > { %4236 = vmatprep.subr.bf16.mxu1 %v4596_v8 }
0x18b2   : > { %v2373_v28 = vpop.f32.mrf.mxu1 }
0x18b4   : > { %v4200_v29 = vpop.f32.mrf.mxu1 }
0x18b6   : > { %v2376_v30 = vpop.f32.mrf.mxu1 }
0x18b8   : > { %v4201_v32 = vpop.f32.mrf.mxu1 }
0x191c   : > { %v2421_v34 = vpop.f32.mrf.mxu0 }
0x191d   : > { %2524 = vrot.lane.b32.xlu0 %v2421_v34, %s5558_s20 }
0x191e   : > { %v4206_v27 = vpop.f32.mrf.mxu0 }
0x1920   : > { %v2424_v35 = vpop.f32.mrf.mxu0 }
0x1921   : > { %v2774_v35 = vrot.slane %v5126_v0, %v4916_v5  ;;  %v4439_v0 = vld [vmem:[%s5533_s2 + $0x18] sm:$0xff]  }
0x1922   : > { %v4207_v37 = vpop.f32.mrf.mxu0  ;;  %v2469_v38 = vpop.f32.mrf.mxu1 }
0x1923   : > { %2528 = vrot.lane.b32.xlu1 %v2469_v38, %s5559_s22 }
0x1924   : > { %v4212_v39 = vpop.f32.mrf.mxu1 }
0x1926   : > { %v2472_v40 = vpop.f32.mrf.mxu1  ;;  %v2517_v41 = vpop.f32.mrf.mxu0 }
0x1927   : > { %2532 = vrot.lane.b32.xlu0 %v2517_v41, %s5560_s23 }
0x1928   : > { %v4213_v42 = vpop.f32.mrf.mxu1  ;;  %v4218_v36 = vpop.f32.mrf.mxu0 }
0x192a   : > { %v2520_v43 = vpop.f32.mrf.mxu0 }
0x192c   : > { %v4219_v46 = vpop.f32.mrf.mxu0 }
0x198f   : > { %v2525_v47 = vpop.permute.xlu0 %2524 }
0x1990   : > { %v2535_v51 = vsel %vm432_vm2, %v2373_v28, %v2525_v47  ;;  %v3772_v28 = vld [vmem:[%s5538_s7] ss:$0 sm:$0xff] }
0x1995   : > { %v2529_v48 = vpop.permute.xlu1 %2528 }
0x1996   : > { %v2536_v52 = vsel %vm888_vm4, %v2535_v51, %v2529_v48 }
0x1999   : > { %v2533_v53 = vpop.permute.xlu0 %2532 }
0x199a   : > { %v2537_v11 = vsel %vm890_vm5, %v2536_v52, %v2533_v53  ;;  %v4440_v52 = vld [vmem:[%s5533_s2 + $0x10] sm:$0xff]  }
0x199b   : > { %v2538_v54 = vpack.c.bf16 %v2537_v11, %v2537_v11 }
0x199d   : > { %4225 = vmatmul.mubr.msk.bf16.vlgmr.msra.gmra.mxu1 %vm334_vm0, %v2538_v54 }
0x199e   : > { %4252 = vmatprep.mubr.msk.bf16.mxu1 %vm4597_vm1, %v4596_v8  ;;  %4237 = vmatpush3.bf16.msra.mxu1 %v4431_v4 }
0x199f   : > { %4238 = vmatprep.subr.bf16.mxu1 %v4596_v8 }
0x19a2   : > { %4239 = vmatpush3.bf16.msra.mxu1 %v4432_v6 }
0x19a3   : > { %4240 = vmatprep.subr.bf16.mxu1 %v4596_v8 }
0x19a6   : > { %4241 = vmatpush3.bf16.msra.mxu1 %v4433_v59 }
0x19a7   : > { %4242 = vmatprep.subr.bf16.mxu1 %v4596_v8 }
0x19aa   : > { %4243 = vmatpush3.bf16.msra.mxu1 %v4434_v9 }
0x19ab   : > { %4244 = vmatprep.subr.bf16.mxu1 %v4596_v8 }
0x19ae   : > { %4245 = vmatpush3.bf16.msra.mxu1 %v4435_v10 }
0x19af   : > { %4246 = vmatprep.subr.bf16.mxu1 %v4596_v8 }
0x19b2   : > { %4247 = vmatpush3.bf16.msra.mxu1 %v4436_v57 }
0x19b3   : > { %4248 = vmatprep.subr.bf16.mxu1 %v4596_v8 }
0x19b6   : > { %4249 = vmatpush3.bf16.msra.mxu1 %v4437_v24 }
0x19b7   : > { %4250 = vmatprep.subr.bf16.mxu1 %v4596_v8 }
0x19ba   : > { %4251 = vmatpush3.bf16.msra.mxu1 %v4438_v26 }
0x19bb   : > { %4282 = vmatprep.subr.bf16.mxu1 %v4596_v8 }
0x1a5d   : > { %v2588_v55 = vpop.f32.mrf.mxu1 }
0x1a5e   : > { %v5241_v31 = vadd.f32 %v2588_v55, %v5109_v25  ;;  %v4429_v25 = vld [vmem:[%s5535_s4 + $0x8] sm:$0xff]  }
0x1a5f   : > { %v4226_v58 = vpop.f32.mrf.mxu1  ;;  %4229 = vmatpush3.bf16.msra.mxu0 %v4429_v25  ;;  %v5319_v55 = vld [vmem:[%s5537_s6 + $0x8] sm:$0xff] }
0x1a60   : > { %v2595_v56 = vsel %vm334_vm0, %v5241_v31, 0.0  ;;  %4230 = vmatprep.subr.bf16.mxu0 %v4596_v8 }
0x1a61   : > { %2596 = vadd.xlane.f32.xlu1 %v2595_v56  ;;  %v2591_v44 = vpop.f32.mrf.mxu1 }
0x1a62   : > { %v2827_v44 = vrot.slane %v5319_v55, %v4736_v17 }
0x1a63   : > { %v4227_v60 = vpop.f32.mrf.mxu1  ;;  %4231 = vmatpush3.bf16.msra.mxu0 %v4430_v3 }
0x1a64   : > { %4256 = vmatprep.subr.bf16.mxu0 %v4596_v8 }
0x1aea   : > { %v2597_v61 = vpop.xlane.xlu1 %2596 }
0x1aeb   : > { %v2598_v62 = vmul.f32 0.03125, %v2597_v61 }
0x1aed   : > { %v2599_v63 = vsub.f32 %v5241_v31, %v2598_v62 }
0x1aef   : > { %v2600_v1 = vmul.f32 %v2599_v63, %v2599_v63 }
0x1af1   : > { %v2601_v2 = vsel %vm334_vm0, %v2600_v1, 0.0 }
0x1af2   : > { %2602 = vadd.xlane.f32.xlu0 %v2601_v2 }
0x1b7b   : > { %v2603_v12 = vpop.xlane.xlu0 %2602 }
0x1b7c   : > { %v2604_v13 = vmul.f32 0.03125, %v2603_v12 }
0x1b7e   : > { %v2605_v18 = vadd.f32 1e-05, %v2604_v13 }
0x1b80   : > { %4511 = vrsqrt.f32 %v2605_v18 }
0x1b8d   : > { %v4512_v20 = vpop.eup %4511 }
0x1b8e   : > { %v2607_v14 = vmul.f32 %v4512_v20, %v2599_v63 }
0x1b90   : > { %v2612_v22 = vmul.f32 %v2611_v19, %v2607_v14 }
0x1b92   : > { %v2617_v16 = vadd.f32 %v2616_v21, %v2612_v22 }
0x1b94   : > { %v2618_v23 = vpack.c.bf16 %v2617_v16, %v2617_v16 }
0x1b96   : > { %4233 = vmatmul.mubr.msk.bf16.vlgmr.msra.gmra.mxu0 %vm334_vm0, %v2618_v23 }
0x1b97   : > { %4260 = vmatprep.mubr.msk.bf16.mxu0 %vm4597_vm1, %v4596_v8  ;;  %4257 = vmatpush3.bf16.msra.mxu0 %v4439_v0 }
0x1b98   : > { %4258 = vmatprep.subr.bf16.mxu0 %v4596_v8 }
0x1b9b   : > { %4259 = vmatpush3.bf16.msra.mxu0 %v4440_v52 }
0x1b9c   : > { %4264 = vmatprep.subr.bf16.mxu0 %v4596_v8 }
0x1c56   : > { %v2674_v29 = vpop.f32.mrf.mxu0 }
0x1c57   : > { %v2675_v30 = vadd.f32 %v3772_v28, %v2674_v29 }
0x1c58   : > { %v4234_v32 = vpop.f32.mrf.mxu0 }
0x1c59   : > { %v2680_v45 = vmax.f32 %v2675_v30, 0.0 }
0x1c5a   : > { %v2677_v33 = vpop.f32.mrf.mxu0 }
0x1c5b   : > { %v2681_v34 = vpack.c.bf16 %v2680_v45, %v2680_v45 }
0x1c5c   : > { %v4235_v27 = vpop.f32.mrf.mxu0 }
0x1c5d   : > { %4253 = vmatmul.mubr.bf16.vlgmr.msra.gmra.mxu1 %v2681_v34 }
0x1c5e   : > { %4284 = vmatprep.mubr.msk.bf16.mxu1 %vm4597_vm1, %v4596_v8 }
0x1d1d   : > { %v2764_v37 = vpop.f32.mrf.mxu1 }
0x1d1e   : > { %v2770_v38 = vadd.f32 %v2764_v37, %v5241_v31  ;;  %v2822_v31 = vrot.slane %v5319_v55, %v4728_v15 }
0x1d1f   : > { %v4254_v39 = vpop.f32.mrf.mxu1 }
0x1d20   : > { %v5302_v40 = vadd.f32 %v2774_v35, %v2770_v38 }
0x1d21   : > { %v2767_v41 = vpop.f32.mrf.mxu1 }
0x1d22   : > { %v2806_v42 = vsel %vm334_vm0, %v5302_v40, 0.0 }
0x1d23   : > { %2807 = vadd.xlane.f32.xlu0 %v2806_v42  ;;  %v4255_v36 = vpop.f32.mrf.mxu1 }
0x1dac   : > { %v2808_v43 = vpop.xlane.xlu0 %2807 }
0x1dad   : > { %v2809_v46 = vmul.f32 0.03125, %v2808_v43 }
0x1daf   : > { %v2810_v47 = vsub.f32 %v5302_v40, %v2809_v46 }
0x1db1   : > { %v2811_v48 = vmul.f32 %v2810_v47, %v2810_v47 }
0x1db3   : > { %v2812_v51 = vsel %vm334_vm0, %v2811_v48, 0.0 }
0x1db4   : > { %2813 = vadd.xlane.f32.xlu1 %v2812_v51 }
0x1e3d   : > { %v2814_v53 = vpop.xlane.xlu1 %2813 }
0x1e3e   : > { %v2815_v11 = vmul.f32 0.03125, %v2814_v53 }
0x1e40   : > { %v2816_v54 = vadd.f32 1e-05, %v2815_v11 }
0x1e42   : > { %4513 = vrsqrt.f32 %v2816_v54 }
0x1e4f   : > { %v4514_v58 = vpop.eup %4513 }
0x1e50   : > { %v2818_v56 = vmul.f32 %v4514_v58, %v2810_v47 }
0x1e52   : > { %v2823_v60 = vmul.f32 %v2822_v31, %v2818_v56 }
0x1e54   : > { %v2828_v61 = vadd.f32 %v2827_v44, %v2823_v60 }
0x1e56   : > { %v2829_v62 = vpack.c.bf16 %v2828_v61, %v2828_v61 }
0x1e58   : > { %4261 = vmatmul.mubr.msk.bf16.vlgmr.msra.gmra.mxu0 %vm334_vm0, %v2829_v62 }
0x1e59   : > { %4266 = vmatprep.mubr.msk.bf16.mxu0 %vm4597_vm1, %v4596_v8 }
0x1f18   : > { %v2879_v63 = vpop.f32.mrf.mxu0 }
0x1f19   : > { %2889 = vrot.lane.b32.xlu1 %v2879_v63, %s5564_s13  ;;  %2886 = vrot.lane.b32.xlu0 %v2879_v63, %s5565_s0  ;;  %v5330_v15 = vpack.c.bf16 %v2879_v63, %v2879_v63  ;;  %s294_s13 = sand.u32 1, %s4586_s28  }
0x1f1a   : > { %v4262_v1 = vpop.f32.mrf.mxu0  ;;  %s3674_s0 = sshll.u32 %s294_s13, 3 }
0x1f1c   : > { %v2882_v2 = vpop.f32.mrf.mxu0 }
0x1f1d   : > { %2892 = vrot.lane.b32.xlu1 %v2879_v63, %s5561_s21  ;;  %2900 = vrot.lane.b32.xlu0 %v5330_v15, %s5562_s12  ;;  %s3841_s21 = sshll.u32 %s4673_s9, 7  ;;  %s3598_s9 = scalar_lea.sflag [#allocation3], %s294_s13 }
0x1f1e   : > { %v4263_v17 = vpop.f32.mrf.mxu0 }
0x1f8b   : > { %v2890_v25 = vpop.permute.xlu1 %2889  ;;  %v2887_v3 = vpop.permute.xlu0 %2886 }
0x1f8c   : > { %v5335_v4 = vpack.c.bf16 %v2890_v25, %v2890_v25  ;;  %v5337_v6 = vpack.c.bf16 %v2887_v3, %v2887_v3 }
0x1f8e   : > { %2949 = vrot.lane.b32.xlu1 %v5337_v6, %s5562_s12  ;;  %2998 = vrot.lane.b32.xlu0 %v5335_v4, %s5562_s12 }
0x1f8f   : > { %v2893_v59 = vpop.permute.xlu1 %2892  ;;  %v2901_v9 = vpop.permute.xlu0 %2900 }
0x1f90   : > { %v5343_v10 = vpack.c.bf16 %v2893_v59, %v2893_v59  ;;  %v2906_v57 = vsel %vm432_vm2, %v2901_v9, 0 }
0x1f91   : > { %4265 = vmatpush3.bf16.xpose.msra.mxu0 %v2906_v57 }
0x1f92   : > { %3047 = vrot.lane.b32.xlu1 %v5343_v10, %s5562_s12  ;;  %4270 = vmatprep.subr.bf16.mxu0 %v4596_v8  ;;  %s296_s12 = scalar_lea.vmem [#allocation2], %s3674_s0 }
0x1f98   : > { %4267 = vmatmul.mubr.msk.bf16.vlgmr.msra.gmra.mxu0 %vm432_vm2, %v5330_v15 }
0x1f99   : > { %4272 = vmatprep.mubr.msk.bf16.mxu0 %vm4597_vm1, %v4596_v8 }
0x2000   : > { %v2950_v12 = vpop.permute.xlu1 %2949  ;;  %v2999_v20 = vpop.permute.xlu0 %2998 }
0x2001   : > { %v2955_v13 = vsel %vm432_vm2, %v2950_v12, 0  ;;  %v3004_v14 = vsel %vm432_vm2, %v2999_v20, 0 }
0x2002   : > { %4271 = vmatpush3.bf16.xpose.msra.mxu0 %v2955_v13 }
0x2003   : > { %4276 = vmatprep.subr.bf16.mxu0 %v4596_v8 }
0x2004   : > { %v3048_v18 = vpop.permute.xlu1 %3047 }
0x2005   : > { %v3053_v19 = vsel %vm432_vm2, %v3048_v18, 0 }
0x2006   : > { %4283 = vmatpush3.bf16.xpose.msra.mxu1 %v3053_v19 }
0x2007   : > { %4294 = vmatprep.subr.bf16.mxu1 %v4596_v8 }
0x2009   : > { %4273 = vmatmul.mubr.msk.bf16.vlgmr.msra.gmra.mxu0 %vm432_vm2, %v5337_v6 }
0x200a   : > { %4277 = vmatpush3.bf16.xpose.msra.mxu0 %v3004_v14  ;;  %4278 = vmatprep.mubr.msk.bf16.mxu0 %vm4597_vm1, %v4596_v8 }
0x200b   : > { %4288 = vmatprep.subr.bf16.mxu0 %v4596_v8 }
0x200d   : > { %4285 = vmatmul.mubr.msk.bf16.vlgmr.msra.gmra.mxu1 %vm432_vm2, %v5343_v10 }
0x200e   : > { %4296 = vmatprep.mubr.msk.bf16.mxu1 %vm4597_vm1, %v4596_v8 }
0x2011   : > { %4279 = vmatmul.mubr.msk.bf16.vlgmr.msra.gmra.mxu0 %vm432_vm2, %v5335_v4 }
0x2012   : > { %4290 = vmatprep.mubr.msk.bf16.mxu0 %vm4597_vm1, %v4596_v8 }
0x2058   : > { %v2942_v21 = vpop.f32.mrf.mxu0 }
0x2059   : > { %v3095_v22 = vmul.f32 0.35355338, %v2942_v21 }
0x205a   : > { %v4268_v16 = vpop.f32.mrf.mxu0 }
0x205b   : > { %v3099_v23 = vadd.f32 %v5181_v7, %v3095_v22 }
0x205c   : > { %v2945_v24 = vpop.f32.mrf.mxu0 }
0x205d   : > { %v3103_v26 = vsel %vm432_vm2, %v3099_v23, -inf }
0x205e   : > { %3104 = vmax.xlane.f32.xlu0 %v3103_v26  ;;  %v4269_v28 = vpop.f32.mrf.mxu0 }
0x20c9   : > { %v2991_v29 = vpop.f32.mrf.mxu0 }
0x20ca   : > { %v3096_v30 = vmul.f32 0.35355338, %v2991_v29 }
0x20cb   : > { %v4274_v32 = vpop.f32.mrf.mxu0 }
0x20cc   : > { %v3100_v45 = vadd.f32 %v5181_v7, %v3096_v30 }
0x20cd   : > { %v2994_v33 = vpop.f32.mrf.mxu0  ;;  %v3089_v34 = vpop.f32.mrf.mxu1 }
0x20ce   : > { %v3106_v27 = vsel %vm432_vm2, %v3100_v45, -inf  ;;  %v3098_v41 = vmul.f32 0.35355338, %v3089_v34 }
0x20cf   : > { %3107 = vmax.xlane.f32.xlu1 %v3106_v27  ;;  %v4275_v35 = vpop.f32.mrf.mxu0  ;;  %v4286_v37 = vpop.f32.mrf.mxu1 }
0x20d0   : > { %v3102_v51 = vadd.f32 %v5181_v7, %v3098_v41  ;;  %v4441_v41 = vld [vmem:[%s5534_s3 + $0x18] sm:$0xff]  }
0x20d1   : > { %v3040_v38 = vpop.f32.mrf.mxu0  ;;  %v3092_v39 = vpop.f32.mrf.mxu1 }
0x20d2   : > { %v3097_v42 = vmul.f32 0.35355338, %v3040_v38  ;;  %v3112_v52 = vsel %vm432_vm2, %v3102_v51, -inf }
0x20d3   : > { %v4280_v36 = vpop.f32.mrf.mxu0  ;;  %v4287_v43 = vpop.f32.mrf.mxu1 }
0x20d4   : > { %v3101_v46 = vadd.f32 %v5181_v7, %v3097_v42  ;;  %v4442_v42 = vld [vmem:[%s5534_s3 + $0x10] sm:$0xff]  }
0x20d5   : > { %v3043_v47 = vpop.f32.mrf.mxu0 }
0x20d6   : > { %v3109_v48 = vsel %vm432_vm2, %v3101_v46, -inf }
0x20d7   : > { %3110 = vmax.xlane.f32.xlu0 %v3109_v48  ;;  %v4281_v0 = vpop.f32.mrf.mxu0 }
0x20db   : > { %3113 = vmax.xlane.f32.xlu0 %v3112_v52 }
0x20e0   : > { %3151 = vrot.lane.b32.xlu1 %v5330_v15, %s5563_s24 }
0x20e7   : > { %v3105_v53 = vpop.xlane.xlu0 %3104 }
0x20e8   : > { %v3115_v11 = vsub.f32 %v3099_v23, %v3105_v53 }
0x20ea   : > { %v3119_v54 = vmul.f32 1.442695, %v3115_v11 }
0x20ec   : > { %4515 = vpow2.f32 %v3119_v54 }
0x20f9   : > { %v4516_v31 = vpop.eup %4515 }
0x20fa   : > { %v3127_v58 = vsel %vm432_vm2, %v4516_v31, 0.0 }
0x2104   : > { %3128 = vadd.xlane.f32.xlu1 %v3127_v58 }
0x2115   : > { %3247 = vrot.lane.b32.xlu1 %v5335_v4, %s5563_s24 }
0x2158   : > { %v3108_v7 = vpop.xlane.xlu1 %3107 }
0x2159   : > { %v3116_v56 = vsub.f32 %v3100_v45, %v3108_v7 }
0x215b   : > { %v3121_v44 = vmul.f32 1.442695, %v3116_v56 }
0x215c   : > { %v3152_v60 = vpop.permute.xlu1 %3151 }
0x215d   : > { %4517 = vpow2.f32 %v3121_v44  ;;  %v3157_v61 = vsel %vm687_vm3, %v3152_v60, 0 }
0x215e   : > { %4289 = vmatpush3.bf16.msra.mxu0 %v3157_v61 }
0x215f   : > { %4300 = vmatprep.subr.bf16.mxu0 %v4596_v8 }
0x2160   : > { %v3111_v62 = vpop.xlane.xlu0 %3110 }
0x2161   : > { %v3117_v63 = vsub.f32 %v3101_v46, %v3111_v62 }
0x2163   : > { %v3123_v1 = vmul.f32 1.442695, %v3117_v63 }
0x2164   : > { %v3114_v15 = vpop.xlane.xlu0 %3113 }
0x2165   : > { %4519 = vpow2.f32 %v3123_v1  ;;  %v3118_v2 = vsub.f32 %v3102_v51, %v3114_v15 }
0x2167   : > { %v3125_v17 = vmul.f32 1.442695, %v3118_v2 }
0x2169   : > { %4521 = vpow2.f32 %v3125_v17 }
0x216a   : > { %v4518_v25 = vpop.eup %4517 }
0x216b   : > { %v3130_v3 = vsel %vm432_vm2, %v4518_v25, 0.0 }
0x216c   : > { %3131 = vadd.xlane.f32.xlu0 %v3130_v3 }
0x2172   : > { %v4520_v4 = vpop.eup %4519 }
0x2173   : > { %v3133_v59 = vsel %vm432_vm2, %v4520_v4, 0.0 }
0x2174   : > { %3134 = vadd.xlane.f32.xlu1 %v3133_v59 }
0x2176   : > { %v4522_v9 = vpop.eup %4521 }
0x2177   : > { %v3136_v57 = vsel %vm432_vm2, %v4522_v9, 0.0 }
0x2178   : > { %3137 = vadd.xlane.f32.xlu0 %v3136_v57 }
0x2185   : > { %3295 = vrot.lane.b32.xlu1 %v5343_v10, %s5563_s24 }
0x218d   : > { %v3129_v12 = vpop.xlane.xlu1 %3128 }
0x218e   : > { %4523 = vrcp.f32 %v3129_v12  ;;  %3199 = vrot.lane.b32.xlu0 %v5337_v6, %s5563_s24  ;;  %v4444_v12 = vld [vmem:[%s5535_s4 + $0x10] sm:$0xff]   ;;  %s3611_s24 = sshll.u32 %s296_s12, 4  ;;  %s5491_s24 = int_to_ptr.vmem [resolvable:$true] %s3611_s24 }
0x218f   : > { %p4541_p0 = scmp.lt.s32.totalorder %s5491_s24, %s4539_s25 }
0x2191   : > { %v3248_v19 = vpop.permute.xlu1 %3247 }
0x2192   : > { %v3253_v14 = vsel %vm687_vm3, %v3248_v19, 0  ;;  %v4447_v19 = vld [vmem:[%s5536_s5 + $0x68] sm:$0xff]  }
0x219b   : > { %v4524_v13 = vpop.eup %4523 }
0x219c   : > { %v3143_v18 = vmul.f32 %v4524_v13, %v4516_v31  ;;  %v4445_v13 = vld [vmem:[%s5536_s5 + $0x78] sm:$0xff]  }
0x219e   : > { %v3147_v20 = vpack.c.bf16 %v3143_v18, %v3143_v18  ;;  %v4446_v18 = vld [vmem:[%s5536_s5 + $0x70] sm:$0xff]  }
0x21a0   : > { %4291 = vmatmul.mubr.msk.bf16.vlgmr.msra.gmra.mxu0 %vm432_vm2, %v3147_v20  ;;  %v4448_v20 = vld [vmem:[%s5536_s5 + $0x60] sm:$0xff]  }
0x21a1   : > { %4301 = vmatpush3.bf16.msra.mxu0 %v3253_v14  ;;  %4302 = vmatprep.mubr.msk.bf16.mxu0 %vm4597_vm1, %v4596_v8  ;;  %v4449_v14 = vld [vmem:[%s5536_s5 + $0x58] sm:$0xff]  }
0x21a2   : > { %4312 = vmatprep.subr.bf16.mxu0 %v4596_v8 }
0x21f5   : > { %v3132_v10 = vpop.xlane.xlu0 %3131 }
0x21f6   : > { %4525 = vrcp.f32 %v3132_v10  ;;  %v4450_v10 = vld [vmem:[%s5536_s5 + $0x50] sm:$0xff]  }
0x21fd   : > { %v3135_v21 = vpop.xlane.xlu1 %3134 }
0x21fe   : > { %4527 = vrcp.f32 %v3135_v21 }
0x2201   : > { %v3138_v22 = vpop.xlane.xlu0 %3137  ;;  %v3296_v26 = vpop.permute.xlu1 %3295 }
0x2202   : > { %4529 = vrcp.f32 %v3138_v22  ;;  %v3301_v29 = vsel %vm687_vm3, %v3296_v26, 0  ;;  %v3436_v26 = vrot.slane %v5319_v55, %v4893_v50  ;;  %v3828_v50 = vld [vmem:[%s5538_s7 + $0x1] ss:$0 sm:$0xff] }
0x2203   : > { %v4526_v6 = vpop.eup %4525 }
0x2204   : > { %v3144_v16 = vmul.f32 %v4526_v6, %v4518_v25 }
0x2205   : > { %v3200_v23 = vpop.permute.xlu0 %3199 }
0x2206   : > { %v3205_v24 = vsel %vm687_vm3, %v3200_v23, 0  ;;  %v3148_v28 = vpack.c.bf16 %v3144_v16, %v3144_v16  ;;  %v3431_v16 = vrot.slane %v5319_v55, %v4890_v49  ;;  %v4452_v49 = vld [vmem:[%s5536_s5 + $0x40] sm:$0xff]  }
0x2207   : > { %4295 = vmatpush3.bf16.msra.mxu1 %v3205_v24 }
0x2208   : > { %4306 = vmatprep.subr.bf16.mxu1 %v4596_v8 }
0x220a   : > { %4297 = vmatmul.mubr.msk.bf16.vlgmr.msra.gmra.mxu1 %vm432_vm2, %v3148_v28 }
0x220b   : > { %v4528_v30 = vpop.eup %4527  ;;  %4307 = vmatpush3.bf16.msra.mxu1 %v3301_v29  ;;  %4308 = vmatprep.mubr.msk.bf16.mxu1 %vm4597_vm1, %v4596_v8 }
0x220c   : > { %v3145_v32 = vmul.f32 %v4528_v30, %v4520_v4  ;;  %4320 = vmatprep.subr.bf16.mxu1 %v4596_v8 }
0x220e   : > { %v3149_v45 = vpack.c.bf16 %v3145_v32, %v3145_v32  ;;  %v4451_v32 = vld [vmem:[%s5536_s5 + $0x48] sm:$0xff]  }
0x220f   : > { %v4530_v33 = vpop.eup %4529 }
0x2210   : > { %4303 = vmatmul.mubr.msk.bf16.vlgmr.msra.gmra.mxu0 %vm432_vm2, %v3149_v45  ;;  %v3146_v34 = vmul.f32 %v4530_v33, %v4522_v9 }
0x2211   : > { %4316 = vmatprep.mubr.msk.bf16.mxu0 %vm4597_vm1, %v4596_v8  ;;  %4313 = vmatpush3.bf16.msra.mxu0 %v4441_v41 }
0x2212   : > { %v3150_v27 = vpack.c.bf16 %v3146_v34, %v3146_v34  ;;  %4314 = vmatprep.subr.bf16.mxu0 %v4596_v8 }
0x2214   : > { %4309 = vmatmul.mubr.msk.bf16.vlgmr.msra.gmra.mxu1 %vm432_vm2, %v3150_v27 }
0x2215   : > { %4324 = vmatprep.mubr.msk.bf16.mxu1 %vm4597_vm1, %v4596_v8  ;;  %4315 = vmatpush3.bf16.msra.mxu0 %v4442_v42 }
0x2216   : > { %4328 = vmatprep.subr.bf16.mxu0 %v4596_v8 }
0x2260   : > { %v3193_v35 = vpop.f32.mrf.mxu0 }
0x2262   : > { %v4292_v37 = vpop.f32.mrf.mxu0 }
0x2264   : > { %v3196_v38 = vpop.f32.mrf.mxu0 }
0x2266   : > { %v4293_v39 = vpop.f32.mrf.mxu0 }
0x22ca   : > { %v3241_v36 = vpop.f32.mrf.mxu1 }
0x22cb   : > { %3344 = vrot.lane.b32.xlu0 %v3241_v36, %s5558_s20 }
0x22cc   : > { %v4298_v43 = vpop.f32.mrf.mxu1 }
0x22ce   : > { %v3244_v46 = vpop.f32.mrf.mxu1 }
0x22d0   : > { %v4299_v47 = vpop.f32.mrf.mxu1  ;;  %v3289_v48 = vpop.f32.mrf.mxu0 }
0x22d1   : > { %3348 = vrot.lane.b32.xlu1 %v3289_v48, %s5559_s22  ;;  %s5489_s22 = scalar_lea.hbm %s5539_s8, %s3841_s21 }
0x22d2   : > { %v4304_v51 = vpop.f32.mrf.mxu0 }
0x22d4   : > { %v3292_v0 = vpop.f32.mrf.mxu0  ;;  %v3337_v52 = vpop.f32.mrf.mxu1 }
0x22d5   : > { %3352 = vrot.lane.b32.xlu0 %v3337_v52, %s5560_s23  ;;  %s4534_s23 = scalar_lea.vmem %s5491_s24, 128 }
0x22d6   : > { %v4305_v53 = vpop.f32.mrf.mxu0  ;;  %v4310_v11 = vpop.f32.mrf.mxu1  ;;  %p4535_p11 = scmp.ne.s32.totalorder %s5491_s24, %s4534_s23  ;;  %p4542_p1 = scmp.lt.s32.totalorder %s4540_s10, %s4534_s23 }
0x22d8   : > { %v3340_v54 = vpop.f32.mrf.mxu1  ;;  %p4536_p12 = pnand %p4535_p11, %p4690_p5  ;;  %p4543_p2 = por %p4542_p1, %p4541_p0 }
0x22da   : > { %v4311_v31 = vpop.f32.mrf.mxu1  ;;  %p4537_p13 = pneg %p4536_p12 }
0x22dc   : > { %p4544_p3 = pnand %p4543_p2, %p4537_p13 }
0x233d   : > { %v3345_v58 = vpop.permute.xlu0 %3344 }
0x233e   : > { %v3355_v56 = vsel %vm432_vm2, %v3193_v35, %v3345_v58 }
0x2343   : > { %v3349_v7 = vpop.permute.xlu1 %3348 }
0x2344   : > { %v3356_v44 = vsel %vm888_vm4, %v3355_v56, %v3349_v7 }
0x2347   : > { %v3353_v60 = vpop.permute.xlu0 %3352 }
0x2348   : > { %v3357_v61 = vsel %vm890_vm5, %v3356_v44, %v3353_v60 }
0x2349   : > { %v3358_v62 = vpack.c.bf16 %v3357_v61, %v3357_v61 }
0x234b   : > { %4317 = vmatmul.mubr.msk.bf16.vlgmr.msra.gmra.mxu0 %vm334_vm0, %v3358_v62 }
0x234c   : > { %4344 = vmatprep.mubr.msk.bf16.mxu0 %vm4597_vm1, %v4596_v8  ;;  %4329 = vmatpush3.bf16.msra.mxu0 %v4445_v13 }
0x234d   : > { %4330 = vmatprep.subr.bf16.mxu0 %v4596_v8 }
0x2350   : > { %4331 = vmatpush3.bf16.msra.mxu0 %v4446_v18 }
0x2351   : > { %4332 = vmatprep.subr.bf16.mxu0 %v4596_v8 }
0x2354   : > { %4333 = vmatpush3.bf16.msra.mxu0 %v4447_v19 }
0x2355   : > { %4334 = vmatprep.subr.bf16.mxu0 %v4596_v8 }
0x2358   : > { %4335 = vmatpush3.bf16.msra.mxu0 %v4448_v20 }
0x2359   : > { %4336 = vmatprep.subr.bf16.mxu0 %v4596_v8 }
0x235c   : > { %4337 = vmatpush3.bf16.msra.mxu0 %v4449_v14 }
0x235d   : > { %4338 = vmatprep.subr.bf16.mxu0 %v4596_v8 }
0x2360   : > { %4339 = vmatpush3.bf16.msra.mxu0 %v4450_v10 }
0x2361   : > { %4340 = vmatprep.subr.bf16.mxu0 %v4596_v8 }
0x2364   : > { %4341 = vmatpush3.bf16.msra.mxu0 %v4451_v32 }
0x2365   : > { %4342 = vmatprep.subr.bf16.mxu0 %v4596_v8 }
0x2368   : > { %4343 = vmatpush3.bf16.msra.mxu0 %v4452_v49 }
0x240b   : > { %v3408_v63 = vpop.f32.mrf.mxu0 }
0x240c   : > { %v5429_v1 = vadd.f32 %v3408_v63, %v5302_v40  ;;  %v4443_v40 = vld [vmem:[%s5535_s4 + $0x18] sm:$0xff]  }
0x240d   : > { %v4318_v15 = vpop.f32.mrf.mxu0  ;;  %4321 = vmatpush3.bf16.msra.mxu1 %v4443_v40 }
0x240e   : > { %v3415_v2 = vsel %vm334_vm0, %v5429_v1, 0.0  ;;  %4322 = vmatprep.subr.bf16.mxu1 %v4596_v8  ;;  %v3594_v8 = vrot.slane %v5319_v55, %v4916_v5 }
0x240f   : > { %3416 = vadd.xlane.f32.xlu1 %v3415_v2  ;;  %v3411_v17 = vpop.f32.mrf.mxu0 }
0x2411   : > { %v4319_v25 = vpop.f32.mrf.mxu0  ;;  %4323 = vmatpush3.bf16.msra.mxu1 %v4444_v12 }
0x2498   : > { %v3417_v3 = vpop.xlane.xlu1 %3416 }
0x2499   : > { %v3418_v4 = vmul.f32 0.03125, %v3417_v3 }
0x249b   : > { %v3419_v59 = vsub.f32 %v5429_v1, %v3418_v4 }
0x249d   : > { %v3420_v9 = vmul.f32 %v3419_v59, %v3419_v59 }
0x249f   : > { %v3421_v57 = vsel %vm334_vm0, %v3420_v9, 0.0 }
0x24a0   : > { %3422 = vadd.xlane.f32.xlu0 %v3421_v57 }
0x2529   : > { %v3423_v21 = vpop.xlane.xlu0 %3422 }
0x252a   : > { %v3424_v22 = vmul.f32 0.03125, %v3423_v21 }
0x252c   : > { %v3425_v6 = vadd.f32 1e-05, %v3424_v22 }
0x252e   : > { %4531 = vrsqrt.f32 %v3425_v6 }
0x253b   : > { %v4532_v23 = vpop.eup %4531 }
0x253c   : > { %v3427_v24 = vmul.f32 %v4532_v23, %v3419_v59 }
0x253e   : > { %v3432_v28 = vmul.f32 %v3431_v16, %v3427_v24 }
0x2540   : > { %v3437_v29 = vadd.f32 %v3436_v26, %v3432_v28 }
0x2542   : > { %v3438_v30 = vpack.c.bf16 %v3437_v29, %v3437_v29 }
0x2544   : > { %4325 = vmatmul.mubr.msk.bf16.vlgmr.msra.gmra.mxu1 %vm334_vm0, %v3438_v30 }
0x2604   : > { %v3494_v45 = vpop.f32.mrf.mxu1 }
0x2605   : > { %v3495_v33 = vadd.f32 %v3828_v50, %v3494_v45 }
0x2606   : > { %v4326_v34 = vpop.f32.mrf.mxu1 }
0x2607   : > { %v3500_v27 = vmax.f32 %v3495_v33, 0.0 }
0x2608   : > { %v3497_v35 = vpop.f32.mrf.mxu1 }
0x2609   : > { %v3501_v37 = vpack.c.bf16 %v3500_v27, %v3500_v27 }
0x260a   : > { %v4327_v38 = vpop.f32.mrf.mxu1 }
0x260b   : > { %4345 = vmatmul.mubr.bf16.vlgmr.msra.gmra.mxu0 %v3501_v37 }
0x26cb   : > { %v3584_v39 = vpop.f32.mrf.mxu0 }
0x26cc   : > { %v3590_v41 = vadd.f32 %v3584_v39, %v5429_v1 }
0x26cd   : > { %v4346_v42 = vpop.f32.mrf.mxu0 }
0x26ce   : > { %v3595_v36 = vadd.f32 %v3594_v8, %v3590_v41 }
0x26cf   : > { %v3587_v5 = vpop.f32.mrf.mxu0 }
0x26d0   : > { %3596 = vst.msk [vmem:[%s296_s12] sm:$0xff] %vm334_vm0, %v3595_v36 }
0x26d1   : > { %v4347_v55 = vpop.f32.mrf.mxu0 }
0x26d2   : > { %4547 = shalt.err (!%p4544_p3)
}
0x26d3   : > { %s4548_s26 = scalar_lea.hbm %s5489_s22, 128  ;;  %s4552_s0 = scalar_lea.hbm %s5539_s8, 256 }
0x26d4   : > { %p4549_p4 = scmp.ne.s32.totalorder %s5489_s22, %s4548_s26  ;;  %p4553_p9 = scmp.lt.s32.totalorder %s5489_s22, %s5539_s8 }
0x26d5   : > { %p4554_p10 = scmp.lt.s32.totalorder %s4552_s0, %s4548_s26 }
0x26d6   : > { %p4550_p7 = pnand %p4549_p4, %p4690_p5 }
0x26d7   : > { %p4555_p11 = por %p4554_p10, %p4553_p9 }
0x26d8   : > { %p4551_p8 = pneg %p4550_p7 }
0x26da   : > { %p4556_p12 = pnand %p4555_p11, %p4551_p8 }
0x26dc   : > { %4559 = shalt.err (!%p4556_p12)
}
0x26dd   : > { %4348 = dma.vmem_to_hbm [thread:$0]  (%p4690_p5), %s5491_s24, 128, %s5489_s22, %s3598_s9  }
0x26de PF: > { %p4354_p13 = scmp.ge.s32.totalorder %s4594_s30, 2  ;;  %s3623_s17 = sand.u32 1, %s4582_s27  }
0x26df   : > { %s3624_s20 = scalar_lea.sflag [#allocation3], %s3623_s17 }
0x26e0   : > { %p4351_p0 = pnand %p4354_p13, %p4694_p6 }
0x26e2   : > { %p4352_p1 = pneg %p4351_p0 }
0x26e4   : > { %4577 = dma.done.wait (%p4352_p1), %s3624_s20, 128  }
0x26e5   : > { %4579 = vsyncadd (%p4352_p1), %s3624_s20, 4294967168  ;;  %p18_p2 = scmp.ge.s32.totalorder %s4677_s11, 4   ;;  %s5566_s27 = smov %s4586_s28 }
0x26e6   : > { %s5567_s28 = smov %s4590_s29  ;;  %s5568_s29 = smov %s4688_s14 }
0x26e7   : > { %s5569_s30 = smov %s4677_s11  ;;  %20 = sbr.rel (!%p18_p2) target bundleno = 5 (0x5), region = 93 }
0x26ec   :  { %3629 = vsyncpa [#allocation3], 1 }
0x26ed   :  { %3631 = vsyncpa [#allocation3 + $0x1], 1 }

</bundles_post_ra>
